<compile_context>
chip_gen: v5e
topology: v5e:2x2
jax: 0.10.0
libtpu: 0.0.40
codegen_flags: <defaults>
</compile_context>

<pallas_src>
import functools

import jax
import jax.numpy as jnp
from jax.experimental import pallas as pl
from jax.experimental.pallas import tpu as pltpu


def _round_up(x, m):
    return (x + m - 1) // m * m


def _cdiv(a, b):
    return (a + b - 1) // b


def _pick_row_tile(n, h, wp, c, acc_budget_bytes=96 * 1024):
    """Output rows per grid step: largest tile whose f32 accumulator fits the
    budget, rebalanced so the padded row count (th*nr) overshoots h minimally."""
    max_th = max(1, acc_budget_bytes // (wp * c * 4))
    th = min(h, max_th)
    nr = _cdiv(h, th)
    th = _cdiv(h, nr)                 # minimize junk rows
    if n * nr < 2 and h >= 2:         # give v7x's 2nd TensorCore something to do
        nr = 2
        th = _cdiv(h, nr)
    return th, nr


def _resnet_kernel(x_ref, w_ref, b_ref, out_ref, *, th, wp):
    """One (batch, row-tile) step: fused 3x3 conv + bias + residual.

    x_ref:   (1, (h_pad+3)*wp, C)  whole padded image of this batch element,
                                   resident in VMEM across all row tiles.
    w_ref:   (9, C, C)             conv taps, (ky*3+kx)-major   (resident).
    b_ref:   (1, C)                f32 bias                      (resident).
    out_ref: (1, th*wp, C)         flattened padded output rows of this tile.
    """
    r = pl.program_id(1)
    m = th * wp
    base = pl.multiple_of(r * m, 8)      # wp % 8 == 0  =>  8-aligned start
    x2 = x_ref.at[0]                     # (flat_rows, C) view, no copy

    # 3x3 conv as 9 contiguous-row-slice MXU matmuls, accumulated in registers.
    # Output flat position q reads padded flat position base + q + dy*wp + dx.
    # (The right-hand junk columns this introduces are stripped in the wrapper;
    #  one guard row of zeros at the bottom keeps every slice in bounds.)
    acc = None
    for dy in range(3):
        for dx in range(3):
            lhs = x2[pl.ds(base + dy * wp + dx, m), :]
            contrib = jnp.dot(lhs, w_ref[3 * dy + dx, :, :],
                              preferred_element_type=jnp.float32)
            acc = contrib if acc is None else acc + contrib

    # Fused epilogue, single store: + bias + residual.  The residual is the
    # centre-tap slice of the resident padded image (== the original data), so
    # no separate residual operand / DMA is needed.
    resid = x2[pl.ds(base + wp + 1, m), :].astype(jnp.float32)
    bias = b_ref[0, :].astype(jnp.float32)
    out_ref[0] = (acc + bias[None, :] + resid).astype(out_ref.dtype)


def resnet_forward(x_nchw, w_oihw, bias, *, compute_dtype=jnp.float32,
                   row_tile=None):
    """out = conv3x3_same(x) + bias + x, matching PyTorch NCHW semantics."""
    n, c, h, w = x_nchw.shape
    c_out, c_in, kh, kw = w_oihw.shape
    assert (kh, kw) == (3, 3) and c_in == c
    assert c_out == c, "residual add requires a channel-preserving cnn"

    wp = _round_up(w + 2, 8)             # padded row width (sublane aligned)
    if row_tile is not None:
        nr = _cdiv(h, row_tile)
        th = _cdiv(h, nr)
    else:
        th, nr = _pick_row_tile(n, h, wp, c)
    h_pad = th * nr
    m = th * wp
    # +1 top conv pad, +1 bottom conv pad, +(h_pad-h) tile pad, +1 OOB guard row
    flat_rows = (h_pad + 3) * wp

    # Single fused layout pass: NCHW -> NHWC, zero pad, flatten padded rows.
    x_nhwc = jnp.transpose(x_nchw, (0, 2, 3, 1))
    x_pad = jnp.pad(x_nhwc,
                    ((0, 0), (1, (h_pad - h) + 2), (1, wp - (w + 1)), (0, 0)))
    x_flat = x_pad.reshape(n, flat_rows, c).astype(compute_dtype)

    w_taps = (jnp.transpose(w_oihw, (2, 3, 1, 0))
              .reshape(9, c, c_out).astype(compute_dtype))
    b2d = bias.reshape(1, c_out).astype(jnp.float32)

    itm = jnp.dtype(compute_dtype).itemsize
    out_itm = jnp.dtype(x_nchw.dtype).itemsize
    vmem_need = (2 * flat_rows * c * itm          # resident image (double buffered)
                 + 2 * m * c_out * out_itm        # output tile (double buffered)
                 + 9 * c * c_out * itm + c_out * 4
                 + m * c_out * 4)                 # f32 accumulator (regs/spill)
    if vmem_need > 28 * 1024 * 1024:
        # TODO(synk): spatially split the resident image for very large feature maps.
        raise ValueError(f"feature map too large for single-image residency "
                         f"({vmem_need} bytes VMEM needed)")

    kernel = functools.partial(_resnet_kernel, th=th, wp=wp)

    out_flat = pl.pallas_call(
        kernel,
        out_shape=jax.ShapeDtypeStruct((n, h_pad * wp, c_out), x_nchw.dtype),
        grid_spec=pltpu.PrefetchScalarGridSpec(
            num_scalar_prefetch=0,
            grid=(n, nr),
            in_specs=[
                # Whole padded image: block index depends only on b, so it stays
                # resident across the nr row tiles (fetched once per batch elem).
                pl.BlockSpec((1, flat_rows, c), lambda b, r: (b, 0, 0)),
                # Resident conv weights and bias.
                pl.BlockSpec((9, c, c_out), lambda b, r: (0, 0, 0)),
                pl.BlockSpec((1, c_out), lambda b, r: (0, 0)),
            ],
            out_specs=pl.BlockSpec((1, m, c_out), lambda b, r: (b, r, 0)),
        ),
        compiler_params=pltpu.CompilerParams(
            dimension_semantics=("parallel", "parallel"),
            vmem_limit_bytes=32 * 1024 * 1024,
        ),
        cost_estimate=pl.CostEstimate(
            flops=2 * n * h_pad * wp * 9 * c * c_out,
            transcendentals=0,
            bytes_accessed=(n * flat_rows * c * itm
                            + n * h_pad * wp * c_out * out_itm
                            + 9 * c * c_out * itm),
        ),
    )(x_flat, w_taps, b2d)

    # Strip the padded junk rows/columns and return to NCHW (reshape + slice
    # fuse into the transpose copy on the XLA side).
    out_nhwc = out_flat.reshape(n, h_pad, wp, c_out)[:, :h, :w, :]
    return jnp.transpose(out_nhwc, (0, 3, 1, 2))


def reference_forward(x_nchw, w_oihw, bias):
    conv = jax.lax.conv_general_dilated(
        x_nchw, w_oihw, window_strides=(1, 1), padding="SAME",
        dimension_numbers=("NCHW", "OIHW", "NCHW"))
    return conv + bias[None, :, None, None] + x_nchw


if __name__ == "__main__":
    key = jax.random.PRNGKey(0)
    n, c, h, w = 2, 4, 16, 16
    k_x, k_w, k_b = jax.random.split(key, 3)

    x = jax.random.normal(k_x, (n, c, h, w), dtype=jnp.float32)
    # Deterministic Conv2d(C, C, 3, padding=1) parameters (Kaiming-uniform-like scale).
    fan_in = c * 3 * 3
    bound = 1.0 / (fan_in ** 0.5)
    wt = jax.random.uniform(k_w, (c, c, 3, 3), jnp.float32, -bound, bound)
    b = jax.random.uniform(k_b, (c,), jnp.float32, -bound, bound)

    ref = jax.block_until_ready(reference_forward(x, wt, b))

    # f32 path (default): parity with the f32 PyTorch module.
    out = jax.block_until_ready(resnet_forward(x, wt, b))
    assert out.shape == (n, c, h, w)
    assert jnp.allclose(out, ref, atol=1e-4, rtol=1e-4), \
        float(jnp.max(jnp.abs(out - ref)))

    # bf16 MXU path (recommended on v6e/v7x): f32 accumulate + f32 epilogue.
    out_bf16 = jax.block_until_ready(
        resnet_forward(x, wt, b, compute_dtype=jnp.bfloat16))
    assert out_bf16.shape == (n, c, h, w)
    assert jnp.allclose(out_bf16, ref, atol=2.5e-1, rtol=5e-2), \
        float(jnp.max(jnp.abs(out_bf16 - ref)))

    print("KERNEL_OK")
</pallas_src>

<mosaic_0001>
module attributes {stable_mosaic.version = 11 : i64} {
  func.func @_resnet_kernel(%arg0: i32, %arg1: i32, %arg2: memref<1x456x4xf32, #tpu.memory_space<vmem>>, %arg3: memref<9x4x4xf32, #tpu.memory_space<vmem>>, %arg4: memref<1x4xf32, #tpu.memory_space<vmem>>, %arg5: memref<1x384x4xf32, #tpu.memory_space<vmem>>) attributes {dimension_semantics = [#tpu.dimension_semantics<parallel>, #tpu.dimension_semantics<parallel>], iteration_bounds = array<i64: 2, 1>, scalar_prefetch = 0 : i64, scratch_operands = 0 : i64, tpu.core_type = #tpu.core_type<tc>, window_params = [{transform_indices = @transform_0, window_bounds = array<i64: 1, 456, 4>}, {pipeline_mode = #tpu.pipeline_mode<synchronous>, transform_indices = @transform_1, window_bounds = array<i64: 9, 4, 4>}, {pipeline_mode = #tpu.pipeline_mode<synchronous>, transform_indices = @transform_2, window_bounds = array<i64: 1, 4>}, {transform_indices = @transform_3, window_bounds = array<i64: 1, 384, 4>}]} {
    %c384_i32 = arith.constant 384 : i32
    %0 = arith.muli %arg1, %c384_i32 : i32
    %1 = tpu.assume_multiple %0, 8 : i32
    %c0_i32 = arith.constant 0 : i32
    %2 = arith.addi %1, %c0_i32 : i32
    %c0_i32_0 = arith.constant 0 : i32
    %3 = arith.addi %2, %c0_i32_0 : i32
    %c0_i32_1 = arith.constant 0 : i32
    %c0_i32_2 = arith.constant 0 : i32
    %c0_i32_3 = arith.constant 0 : i32
    %4 = tpu.memref_slice %arg2[%c0_i32_1, %c0_i32_2, %c0_i32_3] : memref<1x456x4xf32, #tpu.memory_space<vmem>> -> memref<1x456x4xf32, #tpu.memory_space<vmem>>
    %5 = tpu.memref_squeeze %4 : memref<1x456x4xf32, #tpu.memory_space<vmem>> -> memref<456x4xf32, #tpu.memory_space<vmem>>
    %6 = arith.index_cast %3 : i32 to index
    %c0 = arith.constant 0 : index
    %7 = vector.load %5[%6, %c0] : memref<456x4xf32, #tpu.memory_space<vmem>>, vector<384x4xf32>
    %c0_4 = arith.constant 0 : index
    %c0_5 = arith.constant 0 : index
    %c0_6 = arith.constant 0 : index
    %8 = vector.load %arg3[%c0_4, %c0_5, %c0_6] : memref<9x4x4xf32, #tpu.memory_space<vmem>>, vector<1x4x4xf32>
    %9 = vector.shape_cast %8 : vector<1x4x4xf32> to vector<4x4xf32>
    %cst = arith.constant dense<0.000000e+00> : vector<384x4xf32>
    %10 = tpu.matmul %7, %9, %cst {dimension_numbers = #tpu.dot_dimension_numbers<[1], [0], [0], [1], [0, 0, 1, 1], [], []>} : vector<384x4xf32>, vector<4x4xf32>, vector<384x4xf32> -> vector<384x4xf32>
    %c0_i32_7 = arith.constant 0 : i32
    %11 = arith.addi %1, %c0_i32_7 : i32
    %c1_i32 = arith.constant 1 : i32
    %12 = arith.addi %11, %c1_i32 : i32
    %c0_i32_8 = arith.constant 0 : i32
    %c0_i32_9 = arith.constant 0 : i32
    %c0_i32_10 = arith.constant 0 : i32
    %13 = tpu.memref_slice %arg2[%c0_i32_8, %c0_i32_9, %c0_i32_10] : memref<1x456x4xf32, #tpu.memory_space<vmem>> -> memref<1x456x4xf32, #tpu.memory_space<vmem>>
    %14 = tpu.memref_squeeze %13 : memref<1x456x4xf32, #tpu.memory_space<vmem>> -> memref<456x4xf32, #tpu.memory_space<vmem>>
    %15 = arith.index_cast %12 : i32 to index
    %c0_11 = arith.constant 0 : index
    %16 = vector.load %14[%15, %c0_11] : memref<456x4xf32, #tpu.memory_space<vmem>>, vector<384x4xf32>
    %c1 = arith.constant 1 : index
    %c0_12 = arith.constant 0 : index
    %c0_13 = arith.constant 0 : index
    %17 = vector.load %arg3[%c1, %c0_12, %c0_13] : memref<9x4x4xf32, #tpu.memory_space<vmem>>, vector<1x4x4xf32>
    %18 = vector.shape_cast %17 : vector<1x4x4xf32> to vector<4x4xf32>
    %cst_14 = arith.constant dense<0.000000e+00> : vector<384x4xf32>
    %19 = tpu.matmul %16, %18, %cst_14 {dimension_numbers = #tpu.dot_dimension_numbers<[1], [0], [0], [1], [0, 0, 1, 1], [], []>} : vector<384x4xf32>, vector<4x4xf32>, vector<384x4xf32> -> vector<384x4xf32>
    %20 = arith.addf %10, %19 : vector<384x4xf32>
    %c0_i32_15 = arith.constant 0 : i32
    %21 = arith.addi %1, %c0_i32_15 : i32
    %c2_i32 = arith.constant 2 : i32
    %22 = arith.addi %21, %c2_i32 : i32
    %c0_i32_16 = arith.constant 0 : i32
    %c0_i32_17 = arith.constant 0 : i32
    %c0_i32_18 = arith.constant 0 : i32
    %23 = tpu.memref_slice %arg2[%c0_i32_16, %c0_i32_17, %c0_i32_18] : memref<1x456x4xf32, #tpu.memory_space<vmem>> -> memref<1x456x4xf32, #tpu.memory_space<vmem>>
    %24 = tpu.memref_squeeze %23 : memref<1x456x4xf32, #tpu.memory_space<vmem>> -> memref<456x4xf32, #tpu.memory_space<vmem>>
    %25 = arith.index_cast %22 : i32 to index
    %c0_19 = arith.constant 0 : index
    %26 = vector.load %24[%25, %c0_19] : memref<456x4xf32, #tpu.memory_space<vmem>>, vector<384x4xf32>
    %c2 = arith.constant 2 : index
    %c0_20 = arith.constant 0 : index
    %c0_21 = arith.constant 0 : index
    %27 = vector.load %arg3[%c2, %c0_20, %c0_21] : memref<9x4x4xf32, #tpu.memory_space<vmem>>, vector<1x4x4xf32>
    %28 = vector.shape_cast %27 : vector<1x4x4xf32> to vector<4x4xf32>
    %cst_22 = arith.constant dense<0.000000e+00> : vector<384x4xf32>
    %29 = tpu.matmul %26, %28, %cst_22 {dimension_numbers = #tpu.dot_dimension_numbers<[1], [0], [0], [1], [0, 0, 1, 1], [], []>} : vector<384x4xf32>, vector<4x4xf32>, vector<384x4xf32> -> vector<384x4xf32>
    %30 = arith.addf %20, %29 : vector<384x4xf32>
    %c24_i32 = arith.constant 24 : i32
    %31 = arith.addi %1, %c24_i32 : i32
    %c0_i32_23 = arith.constant 0 : i32
    %32 = arith.addi %31, %c0_i32_23 : i32
    %c0_i32_24 = arith.constant 0 : i32
    %c0_i32_25 = arith.constant 0 : i32
    %c0_i32_26 = arith.constant 0 : i32
    %33 = tpu.memref_slice %arg2[%c0_i32_24, %c0_i32_25, %c0_i32_26] : memref<1x456x4xf32, #tpu.memory_space<vmem>> -> memref<1x456x4xf32, #tpu.memory_space<vmem>>
    %34 = tpu.memref_squeeze %33 : memref<1x456x4xf32, #tpu.memory_space<vmem>> -> memref<456x4xf32, #tpu.memory_space<vmem>>
    %35 = arith.index_cast %32 : i32 to index
    %c0_27 = arith.constant 0 : index
    %36 = vector.load %34[%35, %c0_27] : memref<456x4xf32, #tpu.memory_space<vmem>>, vector<384x4xf32>
    %c3 = arith.constant 3 : index
    %c0_28 = arith.constant 0 : index
    %c0_29 = arith.constant 0 : index
    %37 = vector.load %arg3[%c3, %c0_28, %c0_29] : memref<9x4x4xf32, #tpu.memory_space<vmem>>, vector<1x4x4xf32>
    %38 = vector.shape_cast %37 : vector<1x4x4xf32> to vector<4x4xf32>
    %cst_30 = arith.constant dense<0.000000e+00> : vector<384x4xf32>
    %39 = tpu.matmul %36, %38, %cst_30 {dimension_numbers = #tpu.dot_dimension_numbers<[1], [0], [0], [1], [0, 0, 1, 1], [], []>} : vector<384x4xf32>, vector<4x4xf32>, vector<384x4xf32> -> vector<384x4xf32>
    %40 = arith.addf %30, %39 : vector<384x4xf32>
    %c24_i32_31 = arith.constant 24 : i32
    %41 = arith.addi %1, %c24_i32_31 : i32
    %c1_i32_32 = arith.constant 1 : i32
    %42 = arith.addi %41, %c1_i32_32 : i32
    %c0_i32_33 = arith.constant 0 : i32
    %c0_i32_34 = arith.constant 0 : i32
    %c0_i32_35 = arith.constant 0 : i32
    %43 = tpu.memref_slice %arg2[%c0_i32_33, %c0_i32_34, %c0_i32_35] : memref<1x456x4xf32, #tpu.memory_space<vmem>> -> memref<1x456x4xf32, #tpu.memory_space<vmem>>
    %44 = tpu.memref_squeeze %43 : memref<1x456x4xf32, #tpu.memory_space<vmem>> -> memref<456x4xf32, #tpu.memory_space<vmem>>
    %45 = arith.index_cast %42 : i32 to index
    %c0_36 = arith.constant 0 : index
    %46 = vector.load %44[%45, %c0_36] : memref<456x4xf32, #tpu.memory_space<vmem>>, vector<384x4xf32>
    %c4 = arith.constant 4 : index
    %c0_37 = arith.constant 0 : index
    %c0_38 = arith.constant 0 : index
    %47 = vector.load %arg3[%c4, %c0_37, %c0_38] : memref<9x4x4xf32, #tpu.memory_space<vmem>>, vector<1x4x4xf32>
    %48 = vector.shape_cast %47 : vector<1x4x4xf32> to vector<4x4xf32>
    %cst_39 = arith.constant dense<0.000000e+00> : vector<384x4xf32>
    %49 = tpu.matmul %46, %48, %cst_39 {dimension_numbers = #tpu.dot_dimension_numbers<[1], [0], [0], [1], [0, 0, 1, 1], [], []>} : vector<384x4xf32>, vector<4x4xf32>, vector<384x4xf32> -> vector<384x4xf32>
    %50 = arith.addf %40, %49 : vector<384x4xf32>
    %c24_i32_40 = arith.constant 24 : i32
    %51 = arith.addi %1, %c24_i32_40 : i32
    %c2_i32_41 = arith.constant 2 : i32
    %52 = arith.addi %51, %c2_i32_41 : i32
    %c0_i32_42 = arith.constant 0 : i32
    %c0_i32_43 = arith.constant 0 : i32
    %c0_i32_44 = arith.constant 0 : i32
    %53 = tpu.memref_slice %arg2[%c0_i32_42, %c0_i32_43, %c0_i32_44] : memref<1x456x4xf32, #tpu.memory_space<vmem>> -> memref<1x456x4xf32, #tpu.memory_space<vmem>>
    %54 = tpu.memref_squeeze %53 : memref<1x456x4xf32, #tpu.memory_space<vmem>> -> memref<456x4xf32, #tpu.memory_space<vmem>>
    %55 = arith.index_cast %52 : i32 to index
    %c0_45 = arith.constant 0 : index
    %56 = vector.load %54[%55, %c0_45] : memref<456x4xf32, #tpu.memory_space<vmem>>, vector<384x4xf32>
    %c5 = arith.constant 5 : index
    %c0_46 = arith.constant 0 : index
    %c0_47 = arith.constant 0 : index
    %57 = vector.load %arg3[%c5, %c0_46, %c0_47] : memref<9x4x4xf32, #tpu.memory_space<vmem>>, vector<1x4x4xf32>
    %58 = vector.shape_cast %57 : vector<1x4x4xf32> to vector<4x4xf32>
    %cst_48 = arith.constant dense<0.000000e+00> : vector<384x4xf32>
    %59 = tpu.matmul %56, %58, %cst_48 {dimension_numbers = #tpu.dot_dimension_numbers<[1], [0], [0], [1], [0, 0, 1, 1], [], []>} : vector<384x4xf32>, vector<4x4xf32>, vector<384x4xf32> -> vector<384x4xf32>
    %60 = arith.addf %50, %59 : vector<384x4xf32>
    %c48_i32 = arith.constant 48 : i32
    %61 = arith.addi %1, %c48_i32 : i32
    %c0_i32_49 = arith.constant 0 : i32
    %62 = arith.addi %61, %c0_i32_49 : i32
    %c0_i32_50 = arith.constant 0 : i32
    %c0_i32_51 = arith.constant 0 : i32
    %c0_i32_52 = arith.constant 0 : i32
    %63 = tpu.memref_slice %arg2[%c0_i32_50, %c0_i32_51, %c0_i32_52] : memref<1x456x4xf32, #tpu.memory_space<vmem>> -> memref<1x456x4xf32, #tpu.memory_space<vmem>>
    %64 = tpu.memref_squeeze %63 : memref<1x456x4xf32, #tpu.memory_space<vmem>> -> memref<456x4xf32, #tpu.memory_space<vmem>>
    %65 = arith.index_cast %62 : i32 to index
    %c0_53 = arith.constant 0 : index
    %66 = vector.load %64[%65, %c0_53] : memref<456x4xf32, #tpu.memory_space<vmem>>, vector<384x4xf32>
    %c6 = arith.constant 6 : index
    %c0_54 = arith.constant 0 : index
    %c0_55 = arith.constant 0 : index
    %67 = vector.load %arg3[%c6, %c0_54, %c0_55] : memref<9x4x4xf32, #tpu.memory_space<vmem>>, vector<1x4x4xf32>
    %68 = vector.shape_cast %67 : vector<1x4x4xf32> to vector<4x4xf32>
    %cst_56 = arith.constant dense<0.000000e+00> : vector<384x4xf32>
    %69 = tpu.matmul %66, %68, %cst_56 {dimension_numbers = #tpu.dot_dimension_numbers<[1], [0], [0], [1], [0, 0, 1, 1], [], []>} : vector<384x4xf32>, vector<4x4xf32>, vector<384x4xf32> -> vector<384x4xf32>
    %70 = arith.addf %60, %69 : vector<384x4xf32>
    %c48_i32_57 = arith.constant 48 : i32
    %71 = arith.addi %1, %c48_i32_57 : i32
    %c1_i32_58 = arith.constant 1 : i32
    %72 = arith.addi %71, %c1_i32_58 : i32
    %c0_i32_59 = arith.constant 0 : i32
    %c0_i32_60 = arith.constant 0 : i32
    %c0_i32_61 = arith.constant 0 : i32
    %73 = tpu.memref_slice %arg2[%c0_i32_59, %c0_i32_60, %c0_i32_61] : memref<1x456x4xf32, #tpu.memory_space<vmem>> -> memref<1x456x4xf32, #tpu.memory_space<vmem>>
    %74 = tpu.memref_squeeze %73 : memref<1x456x4xf32, #tpu.memory_space<vmem>> -> memref<456x4xf32, #tpu.memory_space<vmem>>
    %75 = arith.index_cast %72 : i32 to index
    %c0_62 = arith.constant 0 : index
    %76 = vector.load %74[%75, %c0_62] : memref<456x4xf32, #tpu.memory_space<vmem>>, vector<384x4xf32>
    %c7 = arith.constant 7 : index
    %c0_63 = arith.constant 0 : index
    %c0_64 = arith.constant 0 : index
    %77 = vector.load %arg3[%c7, %c0_63, %c0_64] : memref<9x4x4xf32, #tpu.memory_space<vmem>>, vector<1x4x4xf32>
    %78 = vector.shape_cast %77 : vector<1x4x4xf32> to vector<4x4xf32>
    %cst_65 = arith.constant dense<0.000000e+00> : vector<384x4xf32>
    %79 = tpu.matmul %76, %78, %cst_65 {dimension_numbers = #tpu.dot_dimension_numbers<[1], [0], [0], [1], [0, 0, 1, 1], [], []>} : vector<384x4xf32>, vector<4x4xf32>, vector<384x4xf32> -> vector<384x4xf32>
    %80 = arith.addf %70, %79 : vector<384x4xf32>
    %c48_i32_66 = arith.constant 48 : i32
    %81 = arith.addi %1, %c48_i32_66 : i32
    %c2_i32_67 = arith.constant 2 : i32
    %82 = arith.addi %81, %c2_i32_67 : i32
    %c0_i32_68 = arith.constant 0 : i32
    %c0_i32_69 = arith.constant 0 : i32
    %c0_i32_70 = arith.constant 0 : i32
    %83 = tpu.memref_slice %arg2[%c0_i32_68, %c0_i32_69, %c0_i32_70] : memref<1x456x4xf32, #tpu.memory_space<vmem>> -> memref<1x456x4xf32, #tpu.memory_space<vmem>>
    %84 = tpu.memref_squeeze %83 : memref<1x456x4xf32, #tpu.memory_space<vmem>> -> memref<456x4xf32, #tpu.memory_space<vmem>>
    %85 = arith.index_cast %82 : i32 to index
    %c0_71 = arith.constant 0 : index
    %86 = vector.load %84[%85, %c0_71] : memref<456x4xf32, #tpu.memory_space<vmem>>, vector<384x4xf32>
    %c8 = arith.constant 8 : index
    %c0_72 = arith.constant 0 : index
    %c0_73 = arith.constant 0 : index
    %87 = vector.load %arg3[%c8, %c0_72, %c0_73] : memref<9x4x4xf32, #tpu.memory_space<vmem>>, vector<1x4x4xf32>
    %88 = vector.shape_cast %87 : vector<1x4x4xf32> to vector<4x4xf32>
    %cst_74 = arith.constant dense<0.000000e+00> : vector<384x4xf32>
    %89 = tpu.matmul %86, %88, %cst_74 {dimension_numbers = #tpu.dot_dimension_numbers<[1], [0], [0], [1], [0, 0, 1, 1], [], []>} : vector<384x4xf32>, vector<4x4xf32>, vector<384x4xf32> -> vector<384x4xf32>
    %90 = arith.addf %80, %89 : vector<384x4xf32>
    %c24_i32_75 = arith.constant 24 : i32
    %91 = arith.addi %1, %c24_i32_75 : i32
    %c1_i32_76 = arith.constant 1 : i32
    %92 = arith.addi %91, %c1_i32_76 : i32
    %c0_i32_77 = arith.constant 0 : i32
    %c0_i32_78 = arith.constant 0 : i32
    %c0_i32_79 = arith.constant 0 : i32
    %93 = tpu.memref_slice %arg2[%c0_i32_77, %c0_i32_78, %c0_i32_79] : memref<1x456x4xf32, #tpu.memory_space<vmem>> -> memref<1x456x4xf32, #tpu.memory_space<vmem>>
    %94 = tpu.memref_squeeze %93 : memref<1x456x4xf32, #tpu.memory_space<vmem>> -> memref<456x4xf32, #tpu.memory_space<vmem>>
    %95 = arith.index_cast %92 : i32 to index
    %c0_80 = arith.constant 0 : index
    %96 = vector.load %94[%95, %c0_80] : memref<456x4xf32, #tpu.memory_space<vmem>>, vector<384x4xf32>
    %c0_81 = arith.constant 0 : index
    %c0_82 = arith.constant 0 : index
    %97 = vector.load %arg4[%c0_81, %c0_82] : memref<1x4xf32, #tpu.memory_space<vmem>>, vector<1x4xf32>
    %98 = vector.shape_cast %97 : vector<1x4xf32> to vector<4xf32>
    %99 = vector.shape_cast %98 : vector<4xf32> to vector<1x4xf32>
    %100 = vector.broadcast %99 : vector<1x4xf32> to vector<384x4xf32>
    %101 = arith.addf %90, %100 : vector<384x4xf32>
    %102 = arith.addf %101, %96 : vector<384x4xf32>
    %c0_83 = arith.constant 0 : index
    %c0_84 = arith.constant 0 : index
    %c0_85 = arith.constant 0 : index
    %103 = vector.load %arg5[%c0_83, %c0_84, %c0_85] : memref<1x384x4xf32, #tpu.memory_space<vmem>>, vector<1x384x4xf32>
    %104 = vector.shape_cast %103 : vector<1x384x4xf32> to vector<384x4xf32>
    %105 = vector.shape_cast %102 : vector<384x4xf32> to vector<1x384x4xf32>
    tpu.vector_store %arg5[%c0_83, %c0_84, %c0_85], %105 {strides = array<i32>} : memref<1x384x4xf32, #tpu.memory_space<vmem>>, vector<1x384x4xf32>,
    return
  }
  func.func @transform_0(%arg0: i32, %arg1: i32) -> (i32, i32, i32) {
    %c0_i32 = arith.constant 0 : i32
    %c0_i32_0 = arith.constant 0 : i32
    %c0_i32_1 = arith.constant 0 : i32
    return %arg0, %c0_i32, %c0_i32_0 : i32, i32, i32
  }
  func.func @transform_1(%arg0: i32, %arg1: i32) -> (i32, i32, i32) {
    %c0_i32 = arith.constant 0 : i32
    %c0_i32_0 = arith.constant 0 : i32
    %c0_i32_1 = arith.constant 0 : i32
    %c0_i32_2 = arith.constant 0 : i32
    return %c0_i32, %c0_i32_0, %c0_i32_1 : i32, i32, i32
  }
  func.func @transform_2(%arg0: i32, %arg1: i32) -> (i32, i32) {
    %c0_i32 = arith.constant 0 : i32
    %c0_i32_0 = arith.constant 0 : i32
    %c0_i32_1 = arith.constant 0 : i32
    return %c0_i32, %c0_i32_0 : i32, i32
  }
  func.func @transform_3(%arg0: i32, %arg1: i32) -> (i32, i32, i32) {
    %c0_i32 = arith.constant 0 : i32
    %c0_i32_0 = arith.constant 0 : i32
    return %arg0, %arg1, %c0_i32 : i32, i32, i32
  }
}

</mosaic_0001>

<bundles_post_ra>
// kernel: tpu_custom_call.1
= control target key start
LH: loop header
LB: loop body
LE: loop exit
PB: predicated region body
PF: predicated region fallthrough
CT: control target
= control target key end

     0   :  { %s4991_s12 = smov 0   ;;  %s4993_s13 = smov 0   ;;  %s6434_s0 = inlined_call_operand.vmem [shape: f32[2,456,4], index: 0, kind: input, shape index: {}]   ;;  %s6435_s1 = inlined_call_operand.vmem [shape: f32[9,4,4], index: 1, kind: input, shape index: {}]   ;;  %s6436_s2 = inlined_call_operand.vmem [shape: f32[1,4], index: 2, kind: input, shape index: {}]   ;;  %s6437_s3 = inlined_call_operand.vmem [shape: f32[2,384,4], index: 3, kind: output, shape index: {}]  }
   0x1   :  { %s4995_s14 = smov 0  }
   0x2 LB: > { %s25_s15 = sadd.s32 1, %s4965_s13  ;;  %p4030_p0 = scmp.ge.s32.totalorder %s4969_s14, 1  ;;  %s4969_s14 = sphi %s4995_s14, %s13_s14   ;;  %s4965_s13 = sphi %s4993_s13, %s6479_s13   ;;  %s4961_s12 = sphi %s4991_s12, %s6478_s12  }
   0x3   : > { %p27_p1 = scmp.ge.s32.totalorder %s25_s15, 2  ;;  %p151_p2 = scmp.lt.s32.totalorder %s4969_s14, 3 }
   0x5   : > { %s6481_s15 = smov (%p27_p1, %s25_s15), 0  ;;  %p152_p3 = pnand %p4030_p0, %p151_p2 }
   0x7   : > { %155 = sbr.rel (%p152_p3) target bundleno = 1019 (0x3fb), region = 32 }
   0xc   : > { %v4081_v0 = vld [vmem:[%s6435_s1 + $0x4] sm:$0xf]  ;;  %vm442_vm0 = vcmask 1043456   ;;  %p179_p4 = scmp.lt.s32.totalorder %s4961_s12, 1  ;;  %v4228_v1 = vld [vmem:[%s6435_s1 + $0x8] sm:$0xf] }
   0xd   : > { %4868 = vmatpush.msk.msra.mxu1 %vm442_vm0, %v4081_v0  ;;  %4869 = vmatpush.msk.msra.mxu2 %vm442_vm0, %v4081_v0  ;;  %v4326_v2 = vld [vmem:[%s6435_s1 + $0xc] sm:$0xf]  ;;  %v244_v3 = vld [vmem:[%s6435_s1] sm:$0xf]  ;;  %v4424_v4 = vld [vmem:[%s6435_s1 + $0x10] sm:$0xf] }
   0xe   : > { %s6483_s12 = smov (!%p179_p4, %s4961_s12), 1  ;;  %4870 = vmatpush.msk.msra.mxu3 %vm442_vm0, %v4081_v0  ;;  %4082 = vmatpush.msk.msra.mxu0 %vm442_vm0, %v4081_v0  ;;  %vm297_vm1 = vcmask 31744   ;;  %v4620_v41 = vld [vmem:[%s6435_s1 + $0x18] sm:$0xf]  ;;  %v4718_v42 = vld [vmem:[%s6435_s1 + $0x1c] sm:$0xf] }
   0xf   : > { %4229 = vmatpush.msk.msrb.mxu2 %vm442_vm0, %v4228_v1  ;;  %4131 = vmatpush.msk.msrb.mxu1 %vm442_vm0, %v244_v3  ;;  %s4871_s26 = smul.u32 456, %s6483_s12  ;;  %v4522_v43 = vld [vmem:[%s6435_s1 + $0x14] sm:$0xf]  ;;  %v4816_v48 = vld [vmem:[%s6435_s1 + $0x20] sm:$0xf] }
  0x10   : > { %4327 = vmatpush.msk.msrb.mxu3 %vm442_vm0, %v4326_v2  ;;  %4425 = vmatpush.msk.msrb.mxu0 %vm442_vm0, %v4424_v4  ;;  %s4872_s17 = smul.u32 384, %s6483_s12 }
  0x11   : > { %s5038_s29 = scalar_lea.vmem %s6434_s0, %s4871_s26 }
  0x12   : > { %v5041_v5 = vld [vmem:[%s5038_s29 + $0x61] sm:$0xff]  ;;  %v5055_v9 = vld [vmem:[%s5038_s29 + $0x69] sm:$0xff]  ;;  %v5069_v13 = vld [vmem:[%s5038_s29 + $0x71] sm:$0xff]  ;;  %s5971_s20 = scalar_lea.vmem %s6437_s3, %s4872_s17 }
  0x13   : > { %v5044_v6 = vld [vmem:[%s5038_s29 + $0xc1] sm:$0xff]  ;;  %4095 = vmatmul.msk.f32.vlgmr.msra.gmra.mxu1 %vm297_vm1, %v5041_v5  ;;  %v5058_v10 = vld [vmem:[%s5038_s29 + $0xc9] sm:$0xff]  ;;  %v5072_v14 = vld [vmem:[%s5038_s29 + $0xd1] sm:$0xff] }
  0x14   : > { %v4069_v7 = vld [vmem:[%s5038_s29 + $0x121] sm:$0xff]  ;;  %4107 = vmatmul.msk.f32.vlgmr.msra.gmra.mxu2 %vm297_vm1, %v5044_v6  ;;  %v4070_v11 = vld [vmem:[%s5038_s29 + $0x129] sm:$0xff]  ;;  %v4071_v15 = vld [vmem:[%s5038_s29 + $0x131] sm:$0xff]  ;;  %4523 = vmatpush.msk.msra.mxu1 %vm442_vm0, %v4522_v43 }
  0x15   : > { %v4033_v8 = vld [vmem:[%s5038_s29 + $0x1] sm:$0xff]  ;;  %4119 = vmatmul.msk.f32.vlgmr.msra.gmra.mxu3 %vm297_vm1, %v4069_v7  ;;  %v4034_v12 = vld [vmem:[%s5038_s29 + $0x9] sm:$0xff]  ;;  %v4035_v16 = vld [vmem:[%s5038_s29 + $0x11] sm:$0xff]  ;;  %4621 = vmatpush.msk.msra.mxu2 %vm442_vm0, %v4620_v41 }
  0x16   : > { %4083 = vmatmul.msk.f32.vlgmr.msra.gmra.mxu0 %vm297_vm1, %v4033_v8  ;;  %v5083_v17 = vld [vmem:[%s5038_s29 + $0x79] sm:$0xff]  ;;  %v5100_v21 = vld [vmem:[%s5038_s29 + $0x81] sm:$0xff]  ;;  %v5117_v25 = vld [vmem:[%s5038_s29 + $0x89] sm:$0xff]  ;;  %4719 = vmatpush.msk.msra.mxu3 %vm442_vm0, %v4718_v42 }
  0x17   : > { %v5086_v18 = vld [vmem:[%s5038_s29 + $0xd9] sm:$0xff]  ;;  %v5103_v22 = vld [vmem:[%s5038_s29 + $0xe1] sm:$0xff]  ;;  %v5120_v26 = vld [vmem:[%s5038_s29 + $0xe9] sm:$0xff]  ;;  %4817 = vmatpush.msk.msra.mxu0 %vm442_vm0, %v4816_v48 }
  0x18   : > { %v4072_v19 = vld [vmem:[%s5038_s29 + $0x139] sm:$0xff]  ;;  %v4073_v23 = vld [vmem:[%s5038_s29 + $0x141] sm:$0xff]  ;;  %v4074_v27 = vld [vmem:[%s5038_s29 + $0x149] sm:$0xff] }
  0x19   : > { %v5090_v20 = vld [vmem:[%s5038_s29 + $0x19] sm:$0xff]  ;;  %v5107_v24 = vld [vmem:[%s5038_s29 + $0x21] sm:$0xff]  ;;  %v5124_v28 = vld [vmem:[%s5038_s29 + $0x29] sm:$0xff] }
  0x1a   : > { %v5134_v29 = vld [vmem:[%s5038_s29 + $0x91] sm:$0xff]  ;;  %v5151_v33 = vld [vmem:[%s5038_s29 + $0x99] sm:$0xff]  ;;  %v5168_v37 = vld [vmem:[%s5038_s29 + $0xa1] sm:$0xff] }
  0x1b   : > { %4096 = vmatmul.msk.f32.gmra.mxu1 %vm297_vm1, %v5055_v9  ;;  %v5137_v30 = vld [vmem:[%s5038_s29 + $0xf1] sm:$0xff]  ;;  %v5154_v34 = vld [vmem:[%s5038_s29 + $0xf9] sm:$0xff]  ;;  %v5171_v38 = vld [vmem:[%s5038_s29 + $0x101] sm:$0xff] }
  0x1c   : > { %4108 = vmatmul.msk.f32.gmra.mxu2 %vm297_vm1, %v5058_v10  ;;  %v4075_v31 = vld [vmem:[%s5038_s29 + $0x151] sm:$0xff]  ;;  %v4076_v35 = vld [vmem:[%s5038_s29 + $0x159] sm:$0xff]  ;;  %v4077_v39 = vld [vmem:[%s5038_s29 + $0x161] sm:$0xff] }
  0x1d   : > { %4120 = vmatmul.msk.f32.gmra.mxu3 %vm297_vm1, %v4070_v11  ;;  %v5141_v32 = vld [vmem:[%s5038_s29 + $0x31] sm:$0xff]  ;;  %v5158_v36 = vld [vmem:[%s5038_s29 + $0x39] sm:$0xff]  ;;  %v5175_v40 = vld [vmem:[%s5038_s29 + $0x41] sm:$0xff] }
  0x1e   : > { %4084 = vmatmul.msk.f32.gmra.mxu0 %vm297_vm1, %v4034_v12  ;;  %v5197_v44 = vld [vmem:[%s5038_s29 + $0xa9] sm:$0xff]  ;;  %v5218_v49 = vld [vmem:[%s5038_s29 + $0xb1] sm:$0xff]  ;;  %v5235_v53 = vld [vmem:[%s5038_s29 + $0xb9] sm:$0xff] }
  0x1f   : > { %v5200_v45 = vld [vmem:[%s5038_s29 + $0x109] sm:$0xff]  ;;  %v5221_v50 = vld [vmem:[%s5038_s29 + $0x111] sm:$0xff]  ;;  %v5238_v54 = vld [vmem:[%s5038_s29 + $0x119] sm:$0xff] }
  0x20   : > { %v4078_v46 = vld [vmem:[%s5038_s29 + $0x169] sm:$0xff]  ;;  %v4079_v51 = vld [vmem:[%s5038_s29 + $0x171] sm:$0xff]  ;;  %v4080_v55 = vld [vmem:[%s5038_s29 + $0x179] sm:$0xff] }
  0x21   : > { %v5204_v47 = vld [vmem:[%s5038_s29 + $0x49] sm:$0xff]  ;;  %v5225_v52 = vld [vmem:[%s5038_s29 + $0x51] sm:$0xff]  ;;  %v5242_v56 = vld [vmem:[%s5038_s29 + $0x59] sm:$0xff] }
  0x22   : > { %v196_v57 = vld [vmem:[%s5038_s29] sm:$0xff]  ;;  %v4278_v59 = vld [vmem:[%s5038_s29 + $0x18] sm:$0xff]  ;;  %v197_v60 = vld [vmem:[%s5038_s29 + $0x8] sm:$0xff] }
  0x23   : > { %4097 = vmatmul.msk.f32.gmra.mxu1 %vm297_vm1, %v5069_v13  ;;  %v4180_v58 = vld [vmem:[%s5038_s29 + $0x2] sm:$0xff]  ;;  %v4181_v61 = vld [vmem:[%s5038_s29 + $0xa] sm:$0xff]  ;;  %v4182_v0 = vld [vmem:[%s5038_s29 + $0x12] sm:$0xff] }
  0x24   : > { %4109 = vmatmul.msk.f32.gmra.mxu2 %vm297_vm1, %v5072_v14  ;;  %v4279_v62 = vld [vmem:[%s5038_s29 + $0x20] sm:$0xff]  ;;  %v198_v63 = vld [vmem:[%s5038_s29 + $0x10] sm:$0xff]  ;;  %v4280_v1 = vld [vmem:[%s5038_s29 + $0x28] sm:$0xff] }
  0x25   : > { %4121 = vmatmul.msk.f32.gmra.mxu3 %vm297_vm1, %v4071_v15  ;;  %v4183_v2 = vld [vmem:[%s5038_s29 + $0x1a] sm:$0xff]  ;;  %v4281_v3 = vld [vmem:[%s5038_s29 + $0x30] sm:$0xff]  ;;  %v4184_v7 = vld [vmem:[%s5038_s29 + $0x22] sm:$0xff] }
  0x26   : > { %4085 = vmatmul.msk.f32.gmra.mxu0 %vm297_vm1, %v4035_v16  ;;  %v4282_v8 = vld [vmem:[%s5038_s29 + $0x38] sm:$0xff]  ;;  %v4285_v42 = vld [vmem:[%s5038_s29 + $0x50] sm:$0xff] }
  0x27   : > { %v4187_v41 = vld [vmem:[%s5038_s29 + $0x3a] sm:$0xff] }
  0x2b   : > { %4098 = vmatmul.msk.f32.gmra.mxu1 %vm297_vm1, %v5083_v17 }
  0x2c   : > { %4110 = vmatmul.msk.f32.gmra.mxu2 %vm297_vm1, %v5086_v18 }
  0x2d   : > { %4122 = vmatmul.msk.f32.gmra.mxu3 %vm297_vm1, %v4072_v19  ;;  %v4185_v19 = vld [vmem:[%s5038_s29 + $0x2a] sm:$0xff] }
  0x2e   : > { %4086 = vmatmul.msk.f32.gmra.mxu0 %vm297_vm1, %v5090_v20 }
  0x33   : > { %4099 = vmatmul.msk.f32.gmra.mxu1 %vm297_vm1, %v5100_v21 }
  0x34   : > { %4111 = vmatmul.msk.f32.gmra.mxu2 %vm297_vm1, %v5103_v22 }
  0x35   : > { %4123 = vmatmul.msk.f32.gmra.mxu3 %vm297_vm1, %v4073_v23 }
  0x36   : > { %4087 = vmatmul.msk.f32.gmra.mxu0 %vm297_vm1, %v5107_v24 }
  0x3b   : > { %4100 = vmatmul.msk.f32.gmra.mxu1 %vm297_vm1, %v5117_v25 }
  0x3c   : > { %4112 = vmatmul.msk.f32.gmra.mxu2 %vm297_vm1, %v5120_v26 }
  0x3d   : > { %4124 = vmatmul.msk.f32.gmra.mxu3 %vm297_vm1, %v4074_v27 }
  0x3e   : > { %4088 = vmatmul.msk.f32.gmra.mxu0 %vm297_vm1, %v5124_v28 }
  0x43   : > { %4101 = vmatmul.msk.f32.gmra.mxu1 %vm297_vm1, %v5134_v29 }
  0x44   : > { %4113 = vmatmul.msk.f32.gmra.mxu2 %vm297_vm1, %v5137_v30 }
  0x45   : > { %4125 = vmatmul.msk.f32.gmra.mxu3 %vm297_vm1, %v4075_v31  ;;  %v4186_v31 = vld [vmem:[%s5038_s29 + $0x32] sm:$0xff] }
  0x46   : > { %4089 = vmatmul.msk.f32.gmra.mxu0 %vm297_vm1, %v5141_v32 }
  0x4b   : > { %4102 = vmatmul.msk.f32.gmra.mxu1 %vm297_vm1, %v5151_v33 }
  0x4c   : > { %4114 = vmatmul.msk.f32.gmra.mxu2 %vm297_vm1, %v5154_v34 }
  0x4d   : > { %4126 = vmatmul.msk.f32.gmra.mxu3 %vm297_vm1, %v4076_v35 }
  0x4e   : > { %4090 = vmatmul.msk.f32.gmra.mxu0 %vm297_vm1, %v5158_v36 }
  0x53   : > { %4103 = vmatmul.msk.f32.gmra.mxu1 %vm297_vm1, %v5168_v37 }
  0x54   : > { %4115 = vmatmul.msk.f32.gmra.mxu2 %vm297_vm1, %v5171_v38 }
  0x55   : > { %4127 = vmatmul.msk.f32.gmra.mxu3 %vm297_vm1, %v4077_v39 }
  0x56   : > { %4091 = vmatmul.msk.f32.gmra.mxu0 %vm297_vm1, %v5175_v40 }
  0x5b   : > { %4104 = vmatmul.msk.f32.gmra.mxu1 %vm297_vm1, %v5197_v44 }
  0x5c   : > { %4116 = vmatmul.msk.f32.gmra.mxu2 %vm297_vm1, %v5200_v45 }
  0x5d   : > { %4128 = vmatmul.msk.f32.gmra.mxu3 %vm297_vm1, %v4078_v46 }
  0x5e   : > { %4092 = vmatmul.msk.f32.gmra.mxu0 %vm297_vm1, %v5204_v47 }
  0x63   : > { %4105 = vmatmul.msk.f32.gmra.mxu1 %vm297_vm1, %v5218_v49 }
  0x64   : > { %4117 = vmatmul.msk.f32.gmra.mxu2 %vm297_vm1, %v5221_v50 }
  0x65   : > { %4129 = vmatmul.msk.f32.gmra.mxu3 %vm297_vm1, %v4079_v51  ;;  %v4188_v51 = vld [vmem:[%s5038_s29 + $0x42] sm:$0xff] }
  0x66   : > { %4093 = vmatmul.msk.f32.gmra.mxu0 %vm297_vm1, %v5225_v52 }
  0x6b   : > { %4106 = vmatmul.msk.f32.gmra.mxu1 %vm297_vm1, %v5235_v53 }
  0x6c   : > { %4118 = vmatmul.msk.f32.gmra.mxu2 %vm297_vm1, %v5238_v54 }
  0x6d   : > { %4130 = vmatmul.msk.f32.gmra.mxu3 %vm297_vm1, %v4080_v55  ;;  %v4286_v55 = vld [vmem:[%s5038_s29 + $0x58] sm:$0xff] }
  0x6e   : > { %4094 = vmatmul.msk.f32.gmra.mxu0 %vm297_vm1, %v5242_v56 }
  0x73   : > { %4132 = vmatmul.msk.f32.vlgmr.msrb.gmra.mxu1 %vm297_vm1, %v196_v57 }
  0x74   : > { %4230 = vmatmul.msk.f32.vlgmr.msrb.gmra.mxu2 %vm297_vm1, %v4180_v58 }
  0x75   : > { %4328 = vmatmul.msk.f32.vlgmr.msrb.gmra.mxu3 %vm297_vm1, %v4278_v59 }
  0x76   : > { %4426 = vmatmul.msk.f32.vlgmr.msrb.gmra.mxu0 %vm297_vm1, %v5090_v20  ;;  %v4283_v20 = vld [vmem:[%s5038_s29 + $0x40] sm:$0xff] }
  0x7b   : > { %4133 = vmatmul.msk.f32.gmra.mxu1 %vm297_vm1, %v197_v60  ;;  %v4189_v60 = vld [vmem:[%s5038_s29 + $0x4a] sm:$0xff] }
  0x7c   : > { %4231 = vmatmul.msk.f32.gmra.mxu2 %vm297_vm1, %v4181_v61  ;;  %v4287_v61 = vld [vmem:[%s5038_s29 + $0x60] sm:$0xff] }
  0x7d   : > { %4329 = vmatmul.msk.f32.gmra.mxu3 %vm297_vm1, %v4279_v62 }
  0x7e   : > { %4427 = vmatmul.msk.f32.gmra.mxu0 %vm297_vm1, %v5107_v24 }
  0x83   : > { %4134 = vmatmul.msk.f32.gmra.mxu1 %vm297_vm1, %v198_v63 }
  0x84   : > { %4232 = vmatmul.msk.f32.gmra.mxu2 %vm297_vm1, %v4182_v0 }
  0x85   : > { %4330 = vmatmul.msk.f32.gmra.mxu3 %vm297_vm1, %v4280_v1 }
  0x86   : > { %4428 = vmatmul.msk.f32.gmra.mxu0 %vm297_vm1, %v5124_v28 }
  0x8b   : > { %4135 = vmatmul.msk.f32.gmra.mxu1 %vm297_vm1, %v4278_v59 }
  0x8c   : > { %4233 = vmatmul.msk.f32.gmra.mxu2 %vm297_vm1, %v4183_v2  ;;  %v4288_v2 = vld [vmem:[%s5038_s29 + $0x68] sm:$0xff] }
  0x8d   : > { %4331 = vmatmul.msk.f32.gmra.mxu3 %vm297_vm1, %v4281_v3 }
  0x8e   : > { %4429 = vmatmul.msk.f32.gmra.mxu0 %vm297_vm1, %v5141_v32  ;;  %v4284_v32 = vld [vmem:[%s5038_s29 + $0x48] sm:$0xff] }
  0x90   : > { %v5282_v4 = vpop.f32.mrf.mxu1 }
  0x93   : > { %v5286_v11 = vpop.f32.mrf.mxu0  ;;  %4136 = vmatmul.msk.f32.gmra.mxu1 %vm297_vm1, %v4279_v62 }
  0x94   : > { %4234 = vmatmul.msk.f32.gmra.mxu2 %vm297_vm1, %v4184_v7 }
  0x95   : > { %4332 = vmatmul.msk.f32.gmra.mxu3 %vm297_vm1, %v4282_v8 }
  0x96   : > { %4430 = vmatmul.msk.f32.gmra.mxu0 %vm297_vm1, %v5158_v36 }
  0x97   : > { %v5293_v12 = vpop.f32.mrf.mxu2 }
  0x98   : > { %v5295_v15 = vpop.f32.mrf.mxu3  ;;  %v5297_v16 = vpop.f32.mrf.mxu1 }
  0x99   : > { %6438 = vst [vmem:[#allocation2_spill] sm:$0xff] %v5295_v15 }
  0x9b   : > { %v5301_v23 = vpop.f32.mrf.mxu0  ;;  %4137 = vmatmul.msk.f32.gmra.mxu1 %vm297_vm1, %v4280_v1  ;;  %v4190_v1 = vld [vmem:[%s5038_s29 + $0x52] sm:$0xff] }
  0x9c   : > { %4235 = vmatmul.msk.f32.gmra.mxu2 %vm297_vm1, %v4185_v19  ;;  %v4191_v19 = vld [vmem:[%s5038_s29 + $0x5a] sm:$0xff] }
  0x9d   : > { %4333 = vmatmul.msk.f32.gmra.mxu3 %vm297_vm1, %v4283_v20 }
  0x9e   : > { %4431 = vmatmul.msk.f32.gmra.mxu0 %vm297_vm1, %v5175_v40 }
  0x9f   : > { %v5308_v24 = vpop.f32.mrf.mxu2 }
  0xa0   : > { %v5310_v27 = vpop.f32.mrf.mxu3  ;;  %v5312_v28 = vpop.f32.mrf.mxu1 }
  0xa1   : > { %6439 = vst [vmem:[#allocation3_spill] sm:$0xff] %v5310_v27  ;;  %v4294_v27 = vld [vmem:[%s5038_s29 + $0x98] sm:$0xff] }
  0xa3   : > { %v5316_v35 = vpop.f32.mrf.mxu0  ;;  %4138 = vmatmul.msk.f32.gmra.mxu1 %vm297_vm1, %v4281_v3 }
  0xa4   : > { %4236 = vmatmul.msk.f32.gmra.mxu2 %vm297_vm1, %v4186_v31 }
  0xa5   : > { %4334 = vmatmul.msk.f32.gmra.mxu3 %vm297_vm1, %v4284_v32 }
  0xa6   : > { %4432 = vmatmul.msk.f32.gmra.mxu0 %vm297_vm1, %v5204_v47 }
  0xa7   : > { %v5323_v36 = vpop.f32.mrf.mxu2 }
  0xa8   : > { %v5325_v39 = vpop.f32.mrf.mxu3  ;;  %v5327_v40 = vpop.f32.mrf.mxu1 }
  0xa9   : > { %6440 = vst [vmem:[#allocation4_spill] sm:$0xff] %v5325_v39 }
  0xab   : > { %v5331_v43 = vpop.f32.mrf.mxu0  ;;  %4139 = vmatmul.msk.f32.gmra.mxu1 %vm297_vm1, %v4282_v8 }
  0xac   : > { %4237 = vmatmul.msk.f32.gmra.mxu2 %vm297_vm1, %v4187_v41 }
  0xad   : > { %4335 = vmatmul.msk.f32.gmra.mxu3 %vm297_vm1, %v4285_v42 }
  0xae   : > { %4433 = vmatmul.msk.f32.gmra.mxu0 %vm297_vm1, %v5225_v52 }
  0xaf   : > { %v5338_v46 = vpop.f32.mrf.mxu2 }
  0xb0   : > { %v5340_v47 = vpop.f32.mrf.mxu3  ;;  %v5342_v48 = vpop.f32.mrf.mxu1 }
  0xb1   : > { %6441 = vst [vmem:[#allocation5_spill] sm:$0xff] %v5340_v47  ;;  %v4293_v47 = vld [vmem:[%s5038_s29 + $0x90] sm:$0xff] }
  0xb3   : > { %v5346_v57 = vpop.f32.mrf.mxu0  ;;  %4140 = vmatmul.msk.f32.gmra.mxu1 %vm297_vm1, %v4283_v20  ;;  %v4289_v20 = vld [vmem:[%s5038_s29 + $0x70] sm:$0xff] }
  0xb4   : > { %4238 = vmatmul.msk.f32.gmra.mxu2 %vm297_vm1, %v4188_v51  ;;  %v4290_v51 = vld [vmem:[%s5038_s29 + $0x78] sm:$0xff] }
  0xb5   : > { %4336 = vmatmul.msk.f32.gmra.mxu3 %vm297_vm1, %v4286_v55 }
  0xb6   : > { %4434 = vmatmul.msk.f32.gmra.mxu0 %vm297_vm1, %v5242_v56 }
  0xb7   : > { %v5353_v52 = vpop.f32.mrf.mxu2 }
  0xb8   : > { %v5355_v58 = vpop.f32.mrf.mxu3  ;;  %v5357_v59 = vpop.f32.mrf.mxu1 }
  0xb9   : > { %6442 = vst [vmem:[#allocation6_spill] sm:$0xff] %v5355_v58 }
  0xbb   : > { %v5361_v62 = vpop.f32.mrf.mxu0  ;;  %4141 = vmatmul.msk.f32.gmra.mxu1 %vm297_vm1, %v4284_v32 }
  0xbc   : > { %4239 = vmatmul.msk.f32.gmra.mxu2 %vm297_vm1, %v4189_v60 }
  0xbd   : > { %4337 = vmatmul.msk.f32.gmra.mxu3 %vm297_vm1, %v4287_v61 }
  0xbe   : > { %4435 = vmatmul.msk.f32.gmra.mxu0 %vm297_vm1, %v5041_v5 }
  0xbf   : > { %v5368_v56 = vpop.f32.mrf.mxu2 }
  0xc0   : > { %v5370_v63 = vpop.f32.mrf.mxu3  ;;  %v5372_v0 = vpop.f32.mrf.mxu1 }
  0xc1   : > { %6443 = vst [vmem:[#allocation7_spill] sm:$0xff] %v5370_v63  ;;  %v4292_v63 = vld [vmem:[%s5038_s29 + $0x88] sm:$0xff] }
  0xc3   : > { %v5376_v3 = vpop.f32.mrf.mxu0  ;;  %4142 = vmatmul.msk.f32.gmra.mxu1 %vm297_vm1, %v4285_v42  ;;  %v4192_v42 = vld [vmem:[%s5038_s29 + $0x62] sm:$0xff] }
  0xc4   : > { %4240 = vmatmul.msk.f32.gmra.mxu2 %vm297_vm1, %v4190_v1 }
  0xc5   : > { %4338 = vmatmul.msk.f32.gmra.mxu3 %vm297_vm1, %v4288_v2 }
  0xc6   : > { %4436 = vmatmul.msk.f32.gmra.mxu0 %vm297_vm1, %v5055_v9 }
  0xc7   : > { %v5383_v5 = vpop.f32.mrf.mxu2 }
  0xc8   : > { %v5385_v7 = vpop.f32.mrf.mxu3  ;;  %v5387_v8 = vpop.f32.mrf.mxu1 }
  0xc9   : > { %6444 = vst [vmem:[#allocation8_spill] sm:$0xff] %v5385_v7 }
  0xcb   : > { %v5391_v31 = vpop.f32.mrf.mxu0  ;;  %4143 = vmatmul.msk.f32.gmra.mxu1 %vm297_vm1, %v4286_v55 }
  0xcc   : > { %4241 = vmatmul.msk.f32.gmra.mxu2 %vm297_vm1, %v4191_v19  ;;  %v4193_v19 = vld [vmem:[%s5038_s29 + $0x6a] sm:$0xff] }
  0xcd   : > { %4339 = vmatmul.msk.f32.gmra.mxu3 %vm297_vm1, %v4289_v20 }
  0xce   : > { %4437 = vmatmul.msk.f32.gmra.mxu0 %vm297_vm1, %v5069_v13 }
  0xcf   : > { %v5398_v9 = vpop.f32.mrf.mxu2 }
  0xd0   : > { %6445 = vst [vmem:[#allocation9_spill] sm:$0xff] %v5398_v9  ;;  %v5400_v32 = vpop.f32.mrf.mxu3  ;;  %v5402_v41 = vpop.f32.mrf.mxu1 }
  0xd1   : > { %6446 = vst [vmem:[#allocation10_spill] sm:$0xff] %v5400_v32  ;;  %v4291_v32 = vld [vmem:[%s5038_s29 + $0x80] sm:$0xff] }
  0xd3   : > { %v5406_v60 = vpop.f32.mrf.mxu0  ;;  %4144 = vmatmul.msk.f32.gmra.mxu1 %vm297_vm1, %v4287_v61 }
  0xd4   : > { %4242 = vmatmul.msk.f32.gmra.mxu2 %vm297_vm1, %v4192_v42 }
  0xd5   : > { %4340 = vmatmul.msk.f32.gmra.mxu3 %vm297_vm1, %v4290_v51 }
  0xd6   : > { %4438 = vmatmul.msk.f32.gmra.mxu0 %vm297_vm1, %v5083_v17 }
  0xd7   : > { %v5413_v13 = vpop.f32.mrf.mxu2 }
  0xd8   : > { %6447 = vst [vmem:[#allocation11_spill] sm:$0xff] %v5413_v13  ;;  %v5415_v55 = vpop.f32.mrf.mxu3  ;;  %v5417_v1 = vpop.f32.mrf.mxu1  ;;  %v4295_v13 = vld [vmem:[%s5038_s29 + $0xa0] sm:$0xff] }
  0xd9   : > { %6448 = vst [vmem:[#allocation12_spill] sm:$0xff] %v5415_v55  ;;  %v4194_v55 = vld [vmem:[%s5038_s29 + $0x72] sm:$0xff] }
  0xdb   : > { %v5421_v7 = vpop.f32.mrf.mxu0  ;;  %4145 = vmatmul.msk.f32.gmra.mxu1 %vm297_vm1, %v4288_v2 }
  0xdc   : > { %4243 = vmatmul.msk.f32.gmra.mxu2 %vm297_vm1, %v4193_v19 }
  0xdd   : > { %4341 = vmatmul.msk.f32.gmra.mxu3 %vm297_vm1, %v4291_v32 }
  0xde   : > { %4439 = vmatmul.msk.f32.gmra.mxu0 %vm297_vm1, %v5100_v21 }
  0xdf   : > { %v5428_v17 = vpop.f32.mrf.mxu2 }
  0xe0   : > { %6449 = vst [vmem:[#allocation13_spill] sm:$0xff] %v5428_v17  ;;  %v5430_v61 = vpop.f32.mrf.mxu3  ;;  %v5432_v42 = vpop.f32.mrf.mxu1 }
  0xe1   : > { %6450 = vst [vmem:[#allocation14_spill] sm:$0xff] %v5430_v61  ;;  %v4195_v61 = vld [vmem:[%s5038_s29 + $0x7a] sm:$0xff] }
  0xe3   : > { %v5436_v58 = vpop.f32.mrf.mxu0  ;;  %4146 = vmatmul.msk.f32.gmra.mxu1 %vm297_vm1, %v4289_v20 }
  0xe4   : > { %4244 = vmatmul.msk.f32.gmra.mxu2 %vm297_vm1, %v4194_v55 }
  0xe5   : > { %4342 = vmatmul.msk.f32.gmra.mxu3 %vm297_vm1, %v4292_v63 }
  0xe6   : > { %4440 = vmatmul.msk.f32.gmra.mxu0 %vm297_vm1, %v5117_v25 }
  0xe7   : > { %v5443_v21 = vpop.f32.mrf.mxu2 }
  0xe8   : > { %6451 = vst [vmem:[#allocation15_spill] sm:$0xff] %v5443_v21  ;;  %v5445_v2 = vpop.f32.mrf.mxu3  ;;  %v5447_v19 = vpop.f32.mrf.mxu1  ;;  %v4197_v21 = vld [vmem:[%s5038_s29 + $0x8a] sm:$0xff] }
  0xe9   : > { %6452 = vst [vmem:[#allocation16_spill] sm:$0xff] %v5445_v2  ;;  %v4196_v2 = vld [vmem:[%s5038_s29 + $0x82] sm:$0xff] }
  0xeb   : > { %v5451_v39 = vpop.f32.mrf.mxu0  ;;  %4147 = vmatmul.msk.f32.gmra.mxu1 %vm297_vm1, %v4290_v51 }
  0xec   : > { %4245 = vmatmul.msk.f32.gmra.mxu2 %vm297_vm1, %v4195_v61 }
  0xed   : > { %4343 = vmatmul.msk.f32.gmra.mxu3 %vm297_vm1, %v4293_v47 }
  0xee   : > { %4441 = vmatmul.msk.f32.gmra.mxu0 %vm297_vm1, %v5134_v29 }
  0xef   : > { %v5458_v25 = vpop.f32.mrf.mxu2 }
  0xf0   : > { %6453 = vst [vmem:[#allocation17_spill] sm:$0xff] %v5458_v25  ;;  %v5460_v20 = vpop.f32.mrf.mxu3  ;;  %v771_v55 = vpop.f32.mrf.mxu1 }
  0xf1   : > { %6454 = vst [vmem:[#allocation18_spill] sm:$0xff] %v5460_v20  ;;  %v772_v29 = vadd.f32 %v771_v55, %v5286_v11 }
  0xf3   : > { %v1947_v15 = vpop.f32.mrf.mxu0  ;;  %4148 = vmatmul.msk.f32.gmra.mxu1 %vm297_vm1, %v4291_v32 }
  0xf4   : > { %4246 = vmatmul.msk.f32.gmra.mxu2 %vm297_vm1, %v4196_v2 }
  0xf5   : > { %4344 = vmatmul.msk.f32.gmra.mxu3 %vm297_vm1, %v4294_v27 }
  0xf6   : > { %4442 = vmatmul.msk.f32.gmra.mxu0 %vm297_vm1, %v5151_v33 }
  0xf7   : > { %v1131_v51 = vpop.f32.mrf.mxu2 }
  0xf8   : > { %v1275_v61 = vadd.f32 %v1131_v51, %v772_v29  ;;  %v1539_v25 = vpop.f32.mrf.mxu3  ;;  %v774_v20 = vpop.f32.mrf.mxu1  ;;  %v4198_v29 = vld [vmem:[%s5038_s29 + $0x92] sm:$0xff] }
  0xf9   : > { %v775_v33 = vadd.f32 %v774_v20, %v5301_v23 }
  0xfa   : > { %v1683_v17 = vadd.f32 %v1539_v25, %v1275_v61 }
  0xfb   : > { %v1950_v9 = vpop.f32.mrf.mxu0  ;;  %4149 = vmatmul.msk.f32.gmra.mxu1 %vm297_vm1, %v4292_v63 }
  0xfc   : > { %v5472_v32 = vadd.f32 %v1947_v15, %v1683_v17  ;;  %4247 = vmatmul.msk.f32.gmra.mxu2 %vm297_vm1, %v4197_v21  ;;  %v4296_v17 = vld [vmem:[%s5038_s29 + $0xa8] sm:$0xff] }
  0xfd   : > { %4345 = vmatmul.msk.f32.gmra.mxu3 %vm297_vm1, %v4295_v13 }
  0xfe   : > { %4443 = vmatmul.msk.f32.gmra.mxu0 %vm297_vm1, %v5168_v37 }
  0xff   : > { %v1134_v11 = vpop.f32.mrf.mxu2 }
 0x100   : > { %v1276_v2 = vadd.f32 %v1134_v11, %v775_v33  ;;  %v1542_v55 = vpop.f32.mrf.mxu3  ;;  %v777_v25 = vpop.f32.mrf.mxu1  ;;  %v4199_v33 = vld [vmem:[%s5038_s29 + $0x9a] sm:$0xff]  ;;  %v4297_v11 = vld [vmem:[%s5038_s29 + $0xb0] sm:$0xff] }
 0x101   : > { %v778_v37 = vadd.f32 %v777_v25, %v5316_v35 }
 0x102   : > { %v1684_v15 = vadd.f32 %v1542_v55, %v1276_v2 }
 0x103   : > { %v1953_v51 = vpop.f32.mrf.mxu0  ;;  %4150 = vmatmul.msk.f32.gmra.mxu1 %vm297_vm1, %v4293_v47 }
 0x104   : > { %v5482_v63 = vadd.f32 %v1950_v9, %v1684_v15  ;;  %4248 = vmatmul.msk.f32.gmra.mxu2 %vm297_vm1, %v4198_v29  ;;  %v4200_v15 = vld [vmem:[%s5038_s29 + $0xa2] sm:$0xff] }
 0x105   : > { %4346 = vmatmul.msk.f32.gmra.mxu3 %vm297_vm1, %v4296_v17 }
 0x106   : > { %4444 = vmatmul.msk.f32.gmra.mxu0 %vm297_vm1, %v5197_v44 }
 0x107   : > { %v1137_v23 = vpop.f32.mrf.mxu2 }
 0x108   : > { %v1277_v21 = vadd.f32 %v1137_v23, %v778_v37  ;;  %v1545_v20 = vpop.f32.mrf.mxu3  ;;  %v780_v61 = vpop.f32.mrf.mxu1  ;;  %v4298_v37 = vld [vmem:[%s5038_s29 + $0xb8] sm:$0xff] }
 0x109   : > { %v781_v44 = vadd.f32 %v780_v61, %v5331_v43 }
 0x10a   : > { %v1685_v9 = vadd.f32 %v1545_v20, %v1277_v21 }
 0x10b   : > { %v1956_v2 = vpop.f32.mrf.mxu0  ;;  %4151 = vmatmul.msk.f32.gmra.mxu1 %vm297_vm1, %v4294_v27 }
 0x10c   : > { %v5492_v47 = vadd.f32 %v1953_v51, %v1685_v9  ;;  %4249 = vmatmul.msk.f32.gmra.mxu2 %vm297_vm1, %v4199_v33  ;;  %v4201_v33 = vld [vmem:[%s5038_s29 + $0xaa] sm:$0xff] }
 0x10d   : > { %4347 = vmatmul.msk.f32.gmra.mxu3 %vm297_vm1, %v4297_v11 }
 0x10e   : > { %4445 = vmatmul.msk.f32.gmra.mxu0 %vm297_vm1, %v5218_v49 }
 0x10f   : > { %v1140_v35 = vpop.f32.mrf.mxu2 }
 0x110   : > { %v1278_v55 = vadd.f32 %v1140_v35, %v781_v44  ;;  %v1548_v25 = vpop.f32.mrf.mxu3  ;;  %v783_v29 = vpop.f32.mrf.mxu1 }
 0x111   : > { %v784_v49 = vadd.f32 %v783_v29, %v5346_v57  ;;  %v4202_v29 = vld [vmem:[%s5038_s29 + $0xb2] sm:$0xff] }
 0x112   : > { %v1686_v51 = vadd.f32 %v1548_v25, %v1278_v55 }
 0x113   : > { %v1959_v23 = vpop.f32.mrf.mxu0  ;;  %4152 = vmatmul.msk.f32.gmra.mxu1 %vm297_vm1, %v4295_v13 }
 0x114   : > { %v5502_v27 = vadd.f32 %v1956_v2, %v1686_v51  ;;  %4250 = vmatmul.msk.f32.gmra.mxu2 %vm297_vm1, %v4200_v15  ;;  %v4299_v2 = vld [vmem:[%s5038_s29 + $0xc0] sm:$0xff]  ;;  %v4300_v51 = vld [vmem:[%s5038_s29 + $0xc8] sm:$0xff] }
 0x115   : > { %4348 = vmatmul.msk.f32.gmra.mxu3 %vm297_vm1, %v4298_v37 }
 0x116   : > { %4446 = vmatmul.msk.f32.gmra.mxu0 %vm297_vm1, %v5235_v53 }
 0x117   : > { %v1143_v43 = vpop.f32.mrf.mxu2 }
 0x118   : > { %v1279_v21 = vadd.f32 %v1143_v43, %v784_v49  ;;  %v1551_v20 = vpop.f32.mrf.mxu3  ;;  %v786_v61 = vpop.f32.mrf.mxu1 }
 0x119   : > { %v787_v53 = vadd.f32 %v786_v61, %v5361_v62 }
 0x11a   : > { %v1687_v9 = vadd.f32 %v1551_v20, %v1279_v21  ;;  %v4203_v20 = vld [vmem:[%s5038_s29 + $0xba] sm:$0xff] }
 0x11b   : > { %v1962_v44 = vpop.f32.mrf.mxu0  ;;  %4153 = vmatmul.msk.f32.gmra.mxu1 %vm297_vm1, %v4296_v17 }
 0x11c   : > { %v5512_v13 = vadd.f32 %v1959_v23, %v1687_v9  ;;  %4251 = vmatmul.msk.f32.gmra.mxu2 %vm297_vm1, %v4201_v33  ;;  %v4301_v33 = vld [vmem:[%s5038_s29 + $0xd0] sm:$0xff] }
 0x11d   : > { %4349 = vmatmul.msk.f32.gmra.mxu3 %vm297_vm1, %v4299_v2 }
 0x11e   : > { %4447 = vmatmul.msk.f32.gmra.mxu0 %vm297_vm1, %v5044_v6 }
 0x11f   : > { %v1146_v57 = vpop.f32.mrf.mxu2 }
 0x120   : > { %v1280_v35 = vadd.f32 %v1146_v57, %v787_v53  ;;  %v1554_v55 = vpop.f32.mrf.mxu3  ;;  %v789_v25 = vpop.f32.mrf.mxu1 }
 0x121   : > { %v790_v6 = vadd.f32 %v789_v25, %v5376_v3  ;;  %v4302_v25 = vld [vmem:[%s5038_s29 + $0xd8] sm:$0xff] }
 0x122   : > { %v1688_v15 = vadd.f32 %v1554_v55, %v1280_v35  ;;  %v4204_v35 = vld [vmem:[%s5038_s29 + $0xc2] sm:$0xff] }
 0x123   : > { %v1965_v23 = vpop.f32.mrf.mxu0  ;;  %4154 = vmatmul.msk.f32.gmra.mxu1 %vm297_vm1, %v4297_v11 }
 0x124   : > { %v5522_v17 = vadd.f32 %v1962_v44, %v1688_v15  ;;  %4252 = vmatmul.msk.f32.gmra.mxu2 %vm297_vm1, %v4202_v29 }
 0x125   : > { %4350 = vmatmul.msk.f32.gmra.mxu3 %vm297_vm1, %v4300_v51 }
 0x126   : > { %4448 = vmatmul.msk.f32.gmra.mxu0 %vm297_vm1, %v5058_v10 }
 0x127   : > { %v1149_v62 = vpop.f32.mrf.mxu2 }
 0x128   : > { %v1281_v49 = vadd.f32 %v1149_v62, %v790_v6  ;;  %v1557_v43 = vpop.f32.mrf.mxu3  ;;  %v792_v21 = vpop.f32.mrf.mxu1  ;;  %v4205_v62 = vld [vmem:[%s5038_s29 + $0xca] sm:$0xff] }
 0x129   : > { %v793_v10 = vadd.f32 %v792_v21, %v5391_v31 }
 0x12a   : > { %v1689_v61 = vadd.f32 %v1557_v43, %v1281_v49  ;;  %v4303_v43 = vld [vmem:[%s5038_s29 + $0xe0] sm:$0xff] }
 0x12b   : > { %v1968_v9 = vpop.f32.mrf.mxu0  ;;  %4155 = vmatmul.msk.f32.gmra.mxu1 %vm297_vm1, %v4298_v37 }
 0x12c   : > { %v5532_v11 = vadd.f32 %v1965_v23, %v1689_v61  ;;  %4253 = vmatmul.msk.f32.gmra.mxu2 %vm297_vm1, %v4203_v20 }
 0x12d   : > { %4351 = vmatmul.msk.f32.gmra.mxu3 %vm297_vm1, %v4301_v33 }
 0x12e   : > { %4449 = vmatmul.msk.f32.gmra.mxu0 %vm297_vm1, %v5072_v14 }
 0x12f   : > { %v1152_v3 = vpop.f32.mrf.mxu2 }
 0x130   : > { %v1282_v44 = vadd.f32 %v1152_v3, %v793_v10  ;;  %v1560_v53 = vpop.f32.mrf.mxu3  ;;  %v795_v57 = vpop.f32.mrf.mxu1  ;;  %v4206_v10 = vld [vmem:[%s5038_s29 + $0xd2] sm:$0xff] }
 0x131   : > { %v796_v14 = vadd.f32 %v795_v57, %v5406_v60 }
 0x132   : > { %v1690_v55 = vadd.f32 %v1560_v53, %v1282_v44  ;;  %v4304_v44 = vld [vmem:[%s5038_s29 + $0xe8] sm:$0xff] }
 0x133   : > { %v1971_v29 = vpop.f32.mrf.mxu0  ;;  %4156 = vmatmul.msk.f32.gmra.mxu1 %vm297_vm1, %v4299_v2 }
 0x134   : > { %v5542_v37 = vadd.f32 %v1968_v9, %v1690_v55  ;;  %4254 = vmatmul.msk.f32.gmra.mxu2 %vm297_vm1, %v4204_v35 }
 0x135   : > { %4352 = vmatmul.msk.f32.gmra.mxu3 %vm297_vm1, %v4302_v25 }
 0x136   : > { %4450 = vmatmul.msk.f32.gmra.mxu0 %vm297_vm1, %v5086_v18 }
 0x137   : > { %v1155_v31 = vpop.f32.mrf.mxu2 }
 0x138   : > { %v1283_v15 = vadd.f32 %v1155_v31, %v796_v14  ;;  %v1563_v23 = vpop.f32.mrf.mxu3  ;;  %v798_v6 = vpop.f32.mrf.mxu1  ;;  %v4305_v31 = vld [vmem:[%s5038_s29 + $0xf0] sm:$0xff] }
 0x139   : > { %v799_v18 = vadd.f32 %v798_v6, %v5421_v7 }
 0x13a   : > { %v1691_v49 = vadd.f32 %v1563_v23, %v1283_v15 }
 0x13b   : > { %v1974_v21 = vpop.f32.mrf.mxu0  ;;  %4157 = vmatmul.msk.f32.gmra.mxu1 %vm297_vm1, %v4300_v51 }
 0x13c   : > { %v5552_v2 = vadd.f32 %v1971_v29, %v1691_v49  ;;  %4255 = vmatmul.msk.f32.gmra.mxu2 %vm297_vm1, %v4205_v62  ;;  %v4207_v29 = vld [vmem:[%s5038_s29 + $0xda] sm:$0xff]  ;;  %v4208_v49 = vld [vmem:[%s5038_s29 + $0xe2] sm:$0xff] }
 0x13d   : > { %4353 = vmatmul.msk.f32.gmra.mxu3 %vm297_vm1, %v4303_v43 }
 0x13e   : > { %4451 = vmatmul.msk.f32.gmra.mxu0 %vm297_vm1, %v5103_v22 }
 0x13f   : > { %v1158_v60 = vpop.f32.mrf.mxu2 }
 0x140   : > { %v1284_v20 = vadd.f32 %v1158_v60, %v799_v18  ;;  %v1566_v61 = vpop.f32.mrf.mxu3  ;;  %v801_v9 = vpop.f32.mrf.mxu1  ;;  %v4306_v18 = vld [vmem:[%s5038_s29 + $0xf8] sm:$0xff] }
 0x141   : > { %v802_v22 = vadd.f32 %v801_v9, %v5436_v58 }
 0x142   : > { %v1692_v3 = vadd.f32 %v1566_v61, %v1284_v20 }
 0x143   : > { %v1977_v53 = vpop.f32.mrf.mxu0  ;;  %4158 = vmatmul.msk.f32.gmra.mxu1 %vm297_vm1, %v4301_v33 }
 0x144   : > { %v5562_v51 = vadd.f32 %v1974_v21, %v1692_v3  ;;  %4256 = vmatmul.msk.f32.gmra.mxu2 %vm297_vm1, %v4206_v10  ;;  %v4209_v10 = vld [vmem:[%s5038_s29 + $0xea] sm:$0xff] }
 0x145   : > { %4354 = vmatmul.msk.f32.gmra.mxu3 %vm297_vm1, %v4304_v44 }
 0x146   : > { %4452 = vmatmul.msk.f32.gmra.mxu0 %vm297_vm1, %v5120_v26 }
 0x147   : > { %v1161_v7 = vpop.f32.mrf.mxu2 }
 0x148   : > { %v1285_v57 = vadd.f32 %v1161_v7, %v802_v22  ;;  %v1569_v35 = vpop.f32.mrf.mxu3  ;;  %v804_v55 = vpop.f32.mrf.mxu1 }
 0x149   : > { %v805_v26 = vadd.f32 %v804_v55, %v5451_v39  ;;  %v4210_v55 = vld [vmem:[%s5038_s29 + $0xf2] sm:$0xff] }
 0x14a   : > { %v1693_v14 = vadd.f32 %v1569_v35, %v1285_v57 }
 0x14b   : > { %v1980_v15 = vpop.f32.mrf.mxu0  ;;  %4159 = vmatmul.msk.f32.gmra.mxu1 %vm297_vm1, %v4302_v25 }
 0x14c   : > { %v5572_v33 = vadd.f32 %v1977_v53, %v1693_v14  ;;  %4257 = vmatmul.msk.f32.gmra.mxu2 %vm297_vm1, %v4207_v29  ;;  %v4307_v53 = vld [vmem:[%s5038_s29 + $0x100] sm:$0xff]  ;;  %v4308_v14 = vld [vmem:[%s5038_s29 + $0x108] sm:$0xff] }
 0x14d   : > { %4355 = vmatmul.msk.f32.gmra.mxu3 %vm297_vm1, %v4305_v31 }
 0x14e   : > { %4453 = vmatmul.msk.f32.gmra.mxu0 %vm297_vm1, %v5137_v30 }
 0x14f   : > { %v1164_v58 = vpop.f32.mrf.mxu2 }
 0x150   : > { %v1286_v23 = vadd.f32 %v1164_v58, %v805_v26  ;;  %v1572_v6 = vpop.f32.mrf.mxu3  ;;  %v807_v62 = vpop.f32.mrf.mxu1 }
 0x151   : > { %v808_v30 = vadd.f32 %v807_v62, %v5282_v4 }
 0x152   : > { %v1694_v21 = vadd.f32 %v1572_v6, %v1286_v23  ;;  %v4211_v6 = vld [vmem:[%s5038_s29 + $0xfa] sm:$0xff] }
 0x153   : > { %v1983_v60 = vpop.f32.mrf.mxu0  ;;  %4160 = vmatmul.msk.f32.gmra.mxu1 %vm297_vm1, %v4303_v43 }
 0x154   : > { %v5582_v25 = vadd.f32 %v1980_v15, %v1694_v21  ;;  %4258 = vmatmul.msk.f32.gmra.mxu2 %vm297_vm1, %v4208_v49  ;;  %v4309_v49 = vld [vmem:[%s5038_s29 + $0x110] sm:$0xff] }
 0x155   : > { %4356 = vmatmul.msk.f32.gmra.mxu3 %vm297_vm1, %v4306_v18 }
 0x156   : > { %4454 = vmatmul.msk.f32.gmra.mxu0 %vm297_vm1, %v5154_v34 }
 0x157   : > { %v1167_v39 = vpop.f32.mrf.mxu2 }
 0x158   : > { %v1287_v20 = vadd.f32 %v1167_v39, %v808_v30  ;;  %v1575_v61 = vpop.f32.mrf.mxu3  ;;  %v810_v9 = vpop.f32.mrf.mxu1 }
 0x159   : > { %v811_v34 = vadd.f32 %v810_v9, %v5297_v16  ;;  %v4310_v9 = vld [vmem:[%s5038_s29 + $0x118] sm:$0xff] }
 0x15a   : > { %v1695_v3 = vadd.f32 %v1575_v61, %v1287_v20  ;;  %v4212_v20 = vld [vmem:[%s5038_s29 + $0x102] sm:$0xff] }
 0x15b   : > { %v1986_v22 = vpop.f32.mrf.mxu0  ;;  %4161 = vmatmul.msk.f32.gmra.mxu1 %vm297_vm1, %v4304_v44 }
 0x15c   : > { %v5592_v43 = vadd.f32 %v1983_v60, %v1695_v3  ;;  %4259 = vmatmul.msk.f32.gmra.mxu2 %vm297_vm1, %v4209_v10 }
 0x15d   : > { %4357 = vmatmul.msk.f32.gmra.mxu3 %vm297_vm1, %v4307_v53 }
 0x15e   : > { %4455 = vmatmul.msk.f32.gmra.mxu0 %vm297_vm1, %v5171_v38 }
 0x15f   : > { %v1170_v4 = vpop.f32.mrf.mxu2 }
 0x160   : > { %v1288_v7 = vadd.f32 %v1170_v4, %v811_v34  ;;  %v1578_v57 = vpop.f32.mrf.mxu3  ;;  %v813_v35 = vpop.f32.mrf.mxu1  ;;  %v4213_v4 = vld [vmem:[%s5038_s29 + $0x10a] sm:$0xff] }
 0x161   : > { %v814_v38 = vadd.f32 %v813_v35, %v5312_v28 }
 0x162   : > { %v1696_v29 = vadd.f32 %v1578_v57, %v1288_v7  ;;  %v4311_v57 = vld [vmem:[%s5038_s29 + $0x120] sm:$0xff] }
 0x163   : > { %v1989_v15 = vpop.f32.mrf.mxu0  ;;  %4162 = vmatmul.msk.f32.gmra.mxu1 %vm297_vm1, %v4305_v31 }
 0x164   : > { %v5602_v44 = vadd.f32 %v1986_v22, %v1696_v29  ;;  %4260 = vmatmul.msk.f32.gmra.mxu2 %vm297_vm1, %v4210_v55 }
 0x165   : > { %4358 = vmatmul.msk.f32.gmra.mxu3 %vm297_vm1, %v4308_v14 }
 0x166   : > { %4456 = vmatmul.msk.f32.gmra.mxu0 %vm297_vm1, %v5200_v45 }
 0x167   : > { %v1173_v16 = vpop.f32.mrf.mxu2 }
 0x168   : > { %v1289_v26 = vadd.f32 %v1173_v16, %v814_v38  ;;  %v1581_v58 = vpop.f32.mrf.mxu3  ;;  %v816_v23 = vpop.f32.mrf.mxu1  ;;  %v4214_v16 = vld [vmem:[%s5038_s29 + $0x112] sm:$0xff] }
 0x169   : > { %v817_v45 = vadd.f32 %v816_v23, %v5327_v40 }
 0x16a   : > { %v1697_v62 = vadd.f32 %v1581_v58, %v1289_v26  ;;  %v4312_v58 = vld [vmem:[%s5038_s29 + $0x128] sm:$0xff] }
 0x16b   : > { %v1992_v21 = vpop.f32.mrf.mxu0  ;;  %4163 = vmatmul.msk.f32.gmra.mxu1 %vm297_vm1, %v4306_v18 }
 0x16c   : > { %v5612_v31 = vadd.f32 %v1989_v15, %v1697_v62  ;;  %4261 = vmatmul.msk.f32.gmra.mxu2 %vm297_vm1, %v4211_v6 }
 0x16d   : > { %4359 = vmatmul.msk.f32.gmra.mxu3 %vm297_vm1, %v4309_v49 }
 0x16e   : > { %4457 = vmatmul.msk.f32.gmra.mxu0 %vm297_vm1, %v5221_v50 }
 0x16f   : > { %v1176_v28 = vpop.f32.mrf.mxu2 }
 0x170   : > { %v1290_v60 = vadd.f32 %v1176_v28, %v817_v45  ;;  %v1584_v30 = vpop.f32.mrf.mxu3  ;;  %v819_v39 = vpop.f32.mrf.mxu1 }
 0x171   : > { %v820_v50 = vadd.f32 %v819_v39, %v5342_v48  ;;  %v4313_v39 = vld [vmem:[%s5038_s29 + $0x130] sm:$0xff] }
 0x172   : > { %v1698_v61 = vadd.f32 %v1584_v30, %v1290_v60  ;;  %v4215_v60 = vld [vmem:[%s5038_s29 + $0x11a] sm:$0xff] }
 0x173   : > { %v1995_v18 = vpop.f32.mrf.mxu0  ;;  %4164 = vmatmul.msk.f32.gmra.mxu1 %vm297_vm1, %v4307_v53  ;;  %v4409_v53 = vld [vmem:[%s5038_s29 + $0x121] sm:$0xff] }
 0x174   : > { %v5622_v10 = vadd.f32 %v1992_v21, %v1698_v61  ;;  %4262 = vmatmul.msk.f32.gmra.mxu2 %vm297_vm1, %v4212_v20 }
 0x175   : > { %4360 = vmatmul.msk.f32.gmra.mxu3 %vm297_vm1, %v4310_v9 }
 0x176   : > { %4458 = vmatmul.msk.f32.gmra.mxu0 %vm297_vm1, %v5238_v54 }
 0x177   : > { %v1179_v40 = vpop.f32.mrf.mxu2 }
 0x178   : > { %v1291_v3 = vadd.f32 %v1179_v40, %v820_v50  ;;  %v1587_v22 = vpop.f32.mrf.mxu3  ;;  %v822_v34 = vpop.f32.mrf.mxu1 }
 0x179   : > { %v823_v54 = vadd.f32 %v822_v34, %v5357_v59 }
 0x17a   : > { %v1699_v7 = vadd.f32 %v1587_v22, %v1291_v3  ;;  %v4216_v22 = vld [vmem:[%s5038_s29 + $0x122] sm:$0xff] }
 0x17b   : > { %v1998_v35 = vpop.f32.mrf.mxu0  ;;  %4165 = vmatmul.msk.f32.gmra.mxu1 %vm297_vm1, %v4308_v14  ;;  %v4410_v14 = vld [vmem:[%s5038_s29 + $0x129] sm:$0xff] }
 0x17c   : > { %v5633_v55 = vadd.f32 %v1995_v18, %v1699_v7  ;;  %4263 = vmatmul.msk.f32.gmra.mxu2 %vm297_vm1, %v4213_v4  ;;  %v4314_v4 = vld [vmem:[%s5038_s29 + $0x138] sm:$0xff] }
 0x17d   : > { %4361 = vmatmul.msk.f32.gmra.mxu3 %vm297_vm1, %v4311_v57 }
 0x17e   : > { %4459 = vmatmul.msk.f32.gmra.mxu0 %vm297_vm1, %v4409_v53 }
 0x17f   : > { %v1182_v48 = vpop.f32.mrf.mxu2 }
 0x180   : > { %v1292_v29 = vadd.f32 %v1182_v48, %v823_v54  ;;  %v1590_v15 = vpop.f32.mrf.mxu3  ;;  %v825_v38 = vpop.f32.mrf.mxu1 }
 0x181   : > { %v826_v59 = vadd.f32 %v825_v38, %v5372_v0 }
 0x182   : > { %v1700_v26 = vadd.f32 %v1590_v15, %v1292_v29  ;;  %v4217_v15 = vld [vmem:[%s5038_s29 + $0x12a] sm:$0xff] }
 0x183   : > { %v2001_v23 = vpop.f32.mrf.mxu0  ;;  %4166 = vmatmul.msk.f32.gmra.mxu1 %vm297_vm1, %v4309_v49  ;;  %v4411_v49 = vld [vmem:[%s5038_s29 + $0x131] sm:$0xff] }
 0x184   : > { %v5643_v6 = vadd.f32 %v1998_v35, %v1700_v26  ;;  %4264 = vmatmul.msk.f32.gmra.mxu2 %vm297_vm1, %v4214_v16  ;;  %v4315_v16 = vld [vmem:[%s5038_s29 + $0x140] sm:$0xff] }
 0x185   : > { %4362 = vmatmul.msk.f32.gmra.mxu3 %vm297_vm1, %v4312_v58 }
 0x186   : > { %4460 = vmatmul.msk.f32.gmra.mxu0 %vm297_vm1, %v4410_v14 }
 0x187   : > { %v1185_v62 = vpop.f32.mrf.mxu2 }
 0x188   : > { %v1293_v21 = vadd.f32 %v1185_v62, %v826_v59  ;;  %v1593_v45 = vpop.f32.mrf.mxu3  ;;  %v828_v28 = vpop.f32.mrf.mxu1 }
 0x189   : > { %v829_v0 = vadd.f32 %v828_v28, %v5387_v8 }
 0x18a   : > { %v1701_v30 = vadd.f32 %v1593_v45, %v1293_v21  ;;  %v4218_v45 = vld [vmem:[%s5038_s29 + $0x132] sm:$0xff] }
 0x18b   : > { %v2004_v20 = vpop.f32.mrf.mxu0  ;;  %4167 = vmatmul.msk.f32.gmra.mxu1 %vm297_vm1, %v4310_v9  ;;  %v4412_v9 = vld [vmem:[%s5038_s29 + $0x139] sm:$0xff] }
 0x18c   : > { %v5653_v61 = vadd.f32 %v2001_v23, %v1701_v30  ;;  %4265 = vmatmul.msk.f32.gmra.mxu2 %vm297_vm1, %v4215_v60  ;;  %v4316_v60 = vld [vmem:[%s5038_s29 + $0x148] sm:$0xff] }
 0x18d   : > { %4363 = vmatmul.msk.f32.gmra.mxu3 %vm297_vm1, %v4313_v39 }
 0x18e   : > { %4461 = vmatmul.msk.f32.gmra.mxu0 %vm297_vm1, %v4411_v49 }
 0x18f   : > { %v1188_v18 = vpop.f32.mrf.mxu2 }
 0x190   : > { %v1294_v50 = vadd.f32 %v1188_v18, %v829_v0  ;;  %v1596_v40 = vpop.f32.mrf.mxu3  ;;  %v831_v3 = vpop.f32.mrf.mxu1 }
 0x191   : > { %v832_v8 = vadd.f32 %v831_v3, %v5402_v41 }
 0x192   : > { %v1702_v34 = vadd.f32 %v1596_v40, %v1294_v50  ;;  %v4219_v40 = vld [vmem:[%s5038_s29 + $0x13a] sm:$0xff] }
 0x193   : > { %v2007_v7 = vpop.f32.mrf.mxu0  ;;  %4168 = vmatmul.msk.f32.gmra.mxu1 %vm297_vm1, %v4311_v57  ;;  %v4413_v57 = vld [vmem:[%s5038_s29 + $0x141] sm:$0xff] }
 0x194   : > { %v5663_v35 = vadd.f32 %v2004_v20, %v1702_v34  ;;  %4266 = vmatmul.msk.f32.gmra.mxu2 %vm297_vm1, %v4216_v22  ;;  %v4317_v22 = vld [vmem:[%s5038_s29 + $0x150] sm:$0xff] }
 0x195   : > { %4364 = vmatmul.msk.f32.gmra.mxu3 %vm297_vm1, %v4314_v4 }
 0x196   : > { %4462 = vmatmul.msk.f32.gmra.mxu0 %vm297_vm1, %v4412_v9 }
 0x197   : > { %v1191_v53 = vpop.f32.mrf.mxu2 }
 0x198   : > { %v1295_v54 = vadd.f32 %v1191_v53, %v832_v8  ;;  %v1599_v48 = vpop.f32.mrf.mxu3  ;;  %v834_v29 = vpop.f32.mrf.mxu1 }
 0x199   : > { %v835_v41 = vadd.f32 %v834_v29, %v5417_v1 }
 0x19a   : > { %v1703_v38 = vadd.f32 %v1599_v48, %v1295_v54  ;;  %v4220_v48 = vld [vmem:[%s5038_s29 + $0x142] sm:$0xff] }
 0x19b   : > { %v2010_v26 = vpop.f32.mrf.mxu0  ;;  %4169 = vmatmul.msk.f32.gmra.mxu1 %vm297_vm1, %v4312_v58  ;;  %v4414_v58 = vld [vmem:[%s5038_s29 + $0x149] sm:$0xff] }
 0x19c   : > { %v5673_v23 = vadd.f32 %v2007_v7, %v1703_v38  ;;  %4267 = vmatmul.msk.f32.gmra.mxu2 %vm297_vm1, %v4217_v15  ;;  %v4318_v15 = vld [vmem:[%s5038_s29 + $0x158] sm:$0xff] }
 0x19d   : > { %4365 = vmatmul.msk.f32.gmra.mxu3 %vm297_vm1, %v4315_v16 }
 0x19e   : > { %4463 = vmatmul.msk.f32.gmra.mxu0 %vm297_vm1, %v4413_v57 }
 0x19f   : > { %v1194_v14 = vpop.f32.mrf.mxu2 }
 0x1a0   : > { %v1296_v59 = vadd.f32 %v1194_v14, %v835_v41  ;;  %v1602_v62 = vpop.f32.mrf.mxu3  ;;  %v837_v21 = vpop.f32.mrf.mxu1 }
 0x1a1   : > { %v838_v1 = vadd.f32 %v837_v21, %v5432_v42 }
 0x1a2   : > { %v1704_v28 = vadd.f32 %v1602_v62, %v1296_v59  ;;  %v4221_v62 = vld [vmem:[%s5038_s29 + $0x14a] sm:$0xff] }
 0x1a3   : > { %v2013_v30 = vpop.f32.mrf.mxu0  ;;  %4170 = vmatmul.msk.f32.gmra.mxu1 %vm297_vm1, %v4313_v39  ;;  %v4415_v39 = vld [vmem:[%s5038_s29 + $0x151] sm:$0xff] }
 0x1a4   : > { %v5683_v20 = vadd.f32 %v2010_v26, %v1704_v28  ;;  %4268 = vmatmul.msk.f32.gmra.mxu2 %vm297_vm1, %v4218_v45  ;;  %v4319_v45 = vld [vmem:[%s5038_s29 + $0x160] sm:$0xff] }
 0x1a5   : > { %4366 = vmatmul.msk.f32.gmra.mxu3 %vm297_vm1, %v4316_v60 }
 0x1a6   : > { %4464 = vmatmul.msk.f32.gmra.mxu0 %vm297_vm1, %v4414_v58 }
 0x1a7   : > { %v1197_v49 = vpop.f32.mrf.mxu2 }
 0x1a8   : > { %v1297_v0 = vadd.f32 %v1197_v49, %v838_v1  ;;  %v1605_v18 = vpop.f32.mrf.mxu3  ;;  %v840_v50 = vpop.f32.mrf.mxu1 }
 0x1a9   : > { %v841_v42 = vadd.f32 %v840_v50, %v5447_v19 }
 0x1aa   : > { %v1705_v3 = vadd.f32 %v1605_v18, %v1297_v0  ;;  %v4222_v18 = vld [vmem:[%s5038_s29 + $0x152] sm:$0xff] }
 0x1ab   : > { %v2016_v34 = vpop.f32.mrf.mxu0  ;;  %4171 = vmatmul.msk.f32.gmra.mxu1 %vm297_vm1, %v4314_v4  ;;  %v4416_v4 = vld [vmem:[%s5038_s29 + $0x159] sm:$0xff] }
 0x1ac   : > { %v5693_v7 = vadd.f32 %v2013_v30, %v1705_v3  ;;  %4269 = vmatmul.msk.f32.gmra.mxu2 %vm297_vm1, %v4219_v40  ;;  %v4320_v40 = vld [vmem:[%s5038_s29 + $0x168] sm:$0xff] }
 0x1ad   : > { %4367 = vmatmul.msk.f32.gmra.mxu3 %vm297_vm1, %v4317_v22 }
 0x1ae   : > { %4465 = vmatmul.msk.f32.gmra.mxu0 %vm297_vm1, %v4415_v39 }
 0x1af   : > { %v1200_v9 = vpop.f32.mrf.mxu2 }
 0x1b0   : > { %v1298_v8 = vadd.f32 %v1200_v9, %v841_v42  ;;  %v1608_v53 = vpop.f32.mrf.mxu3  ;;  %v843_v54 = vpop.f32.mrf.mxu1 }
 0x1b1   : > { %v844_v19 = vadd.f32 %v843_v54, %v5293_v12 }
 0x1b2   : > { %v1706_v29 = vadd.f32 %v1608_v53, %v1298_v8  ;;  %v4223_v53 = vld [vmem:[%s5038_s29 + $0x15a] sm:$0xff] }
 0x1b3   : > { %v2019_v38 = vpop.f32.mrf.mxu0  ;;  %4172 = vmatmul.msk.f32.gmra.mxu1 %vm297_vm1, %v4315_v16  ;;  %v4417_v16 = vld [vmem:[%s5038_s29 + $0x161] sm:$0xff] }
 0x1b4   : > { %v5703_v26 = vadd.f32 %v2016_v34, %v1706_v29  ;;  %4270 = vmatmul.msk.f32.gmra.mxu2 %vm297_vm1, %v4220_v48  ;;  %v4321_v48 = vld [vmem:[%s5038_s29 + $0x170] sm:$0xff] }
 0x1b5   : > { %4368 = vmatmul.msk.f32.gmra.mxu3 %vm297_vm1, %v4318_v15 }
 0x1b6   : > { %4466 = vmatmul.msk.f32.gmra.mxu0 %vm297_vm1, %v4416_v4 }
 0x1b7   : > { %v1203_v57 = vpop.f32.mrf.mxu2 }
 0x1b8   : > { %v1299_v41 = vadd.f32 %v1203_v57, %v844_v19  ;;  %v1611_v14 = vpop.f32.mrf.mxu3  ;;  %v846_v59 = vpop.f32.mrf.mxu1 }
 0x1b9   : > { %v847_v12 = vadd.f32 %v846_v59, %v5308_v24 }
 0x1ba   : > { %v1707_v21 = vadd.f32 %v1611_v14, %v1299_v41  ;;  %v4224_v14 = vld [vmem:[%s5038_s29 + $0x162] sm:$0xff] }
 0x1bb   : > { %v2022_v28 = vpop.f32.mrf.mxu0  ;;  %4173 = vmatmul.msk.f32.gmra.mxu1 %vm297_vm1, %v4316_v60  ;;  %v4418_v60 = vld [vmem:[%s5038_s29 + $0x169] sm:$0xff] }
 0x1bc   : > { %v5713_v30 = vadd.f32 %v2019_v38, %v1707_v21  ;;  %4271 = vmatmul.msk.f32.gmra.mxu2 %vm297_vm1, %v4221_v62  ;;  %v4322_v62 = vld [vmem:[%s5038_s29 + $0x178] sm:$0xff] }
 0x1bd   : > { %4369 = vmatmul.msk.f32.gmra.mxu3 %vm297_vm1, %v4319_v45 }
 0x1be   : > { %4467 = vmatmul.msk.f32.gmra.mxu0 %vm297_vm1, %v4417_v16 }
 0x1bf   : > { %v1206_v58 = vpop.f32.mrf.mxu2 }
 0x1c0   : > { %v1300_v1 = vadd.f32 %v1206_v58, %v847_v12  ;;  %v1614_v49 = vpop.f32.mrf.mxu3  ;;  %v849_v0 = vpop.f32.mrf.mxu1 }
 0x1c1   : > { %v850_v24 = vadd.f32 %v849_v0, %v5323_v36 }
 0x1c2   : > { %v1708_v50 = vadd.f32 %v1614_v49, %v1300_v1  ;;  %v4225_v49 = vld [vmem:[%s5038_s29 + $0x16a] sm:$0xff] }
 0x1c3   : > { %v2025_v3 = vpop.f32.mrf.mxu0  ;;  %4174 = vmatmul.msk.f32.gmra.mxu1 %vm297_vm1, %v4317_v22  ;;  %v4419_v22 = vld [vmem:[%s5038_s29 + $0x171] sm:$0xff] }
 0x1c4   : > { %v5723_v34 = vadd.f32 %v2022_v28, %v1708_v50  ;;  %4272 = vmatmul.msk.f32.gmra.mxu2 %vm297_vm1, %v4222_v18  ;;  %v4323_v18 = vld [vmem:[%s5038_s29 + $0x180] sm:$0xff] }
 0x1c5   : > { %4370 = vmatmul.msk.f32.gmra.mxu3 %vm297_vm1, %v4320_v40 }
 0x1c6   : > { %4468 = vmatmul.msk.f32.gmra.mxu0 %vm297_vm1, %v4418_v60 }
 0x1c7   : > { %v1209_v39 = vpop.f32.mrf.mxu2 }
 0x1c8   : > { %v1301_v42 = vadd.f32 %v1209_v39, %v850_v24  ;;  %v1617_v9 = vpop.f32.mrf.mxu3  ;;  %v852_v8 = vpop.f32.mrf.mxu1 }
 0x1c9   : > { %v853_v36 = vadd.f32 %v852_v8, %v5338_v46 }
 0x1ca   : > { %v1709_v54 = vadd.f32 %v1617_v9, %v1301_v42  ;;  %v4226_v9 = vld [vmem:[%s5038_s29 + $0x172] sm:$0xff] }
 0x1cb   : > { %v2028_v29 = vpop.f32.mrf.mxu0  ;;  %4175 = vmatmul.msk.f32.gmra.mxu1 %vm297_vm1, %v4318_v15  ;;  %v4420_v15 = vld [vmem:[%s5038_s29 + $0x179] sm:$0xff] }
 0x1cc   : > { %v5733_v38 = vadd.f32 %v2025_v3, %v1709_v54  ;;  %4273 = vmatmul.msk.f32.gmra.mxu2 %vm297_vm1, %v4223_v53  ;;  %v4324_v53 = vld [vmem:[%s5038_s29 + $0x188] sm:$0xff] }
 0x1cd   : > { %4371 = vmatmul.msk.f32.gmra.mxu3 %vm297_vm1, %v4321_v48 }
 0x1ce   : > { %4469 = vmatmul.msk.f32.gmra.mxu0 %vm297_vm1, %v4419_v22 }
 0x1cf   : > { %v1212_v4 = vpop.f32.mrf.mxu2 }
 0x1d0   : > { %v1302_v19 = vadd.f32 %v1212_v4, %v853_v36  ;;  %v1620_v57 = vpop.f32.mrf.mxu3  ;;  %v855_v41 = vpop.f32.mrf.mxu1 }
 0x1d1   : > { %v856_v46 = vadd.f32 %v855_v41, %v5353_v52 }
 0x1d2   : > { %v1710_v59 = vadd.f32 %v1620_v57, %v1302_v19  ;;  %v4227_v57 = vld [vmem:[%s5038_s29 + $0x17a] sm:$0xff] }
 0x1d3   : > { %v2031_v21 = vpop.f32.mrf.mxu0  ;;  %4176 = vmatmul.msk.f32.gmra.mxu1 %vm297_vm1, %v4319_v45  ;;  %v4421_v45 = vld [vmem:[%s5038_s29 + $0x181] sm:$0xff] }
 0x1d4   : > { %v5743_v28 = vadd.f32 %v2028_v29, %v1710_v59  ;;  %4274 = vmatmul.msk.f32.gmra.mxu2 %vm297_vm1, %v4224_v14  ;;  %v4325_v14 = vld [vmem:[%s5038_s29 + $0x190] sm:$0xff] }
 0x1d5   : > { %4372 = vmatmul.msk.f32.gmra.mxu3 %vm297_vm1, %v4322_v62 }
 0x1d6   : > { %4470 = vmatmul.msk.f32.gmra.mxu0 %vm297_vm1, %v4420_v15 }
 0x1d7   : > { %v1215_v16 = vpop.f32.mrf.mxu2 }
 0x1d8   : > { %v1303_v12 = vadd.f32 %v1215_v16, %v856_v46  ;;  %v1623_v58 = vpop.f32.mrf.mxu3  ;;  %v858_v1 = vpop.f32.mrf.mxu1 }
 0x1d9   : > { %v859_v52 = vadd.f32 %v858_v1, %v5368_v56  ;;  %v4474_v1 = vld [vmem:[%s5038_s29 + $0x1a] sm:$0xff] }
 0x1da   : > { %v1711_v0 = vadd.f32 %v1623_v58, %v1303_v12 }
 0x1db   : > { %v2034_v50 = vpop.f32.mrf.mxu0  ;;  %4177 = vmatmul.msk.f32.gmra.mxu1 %vm297_vm1, %v4320_v40  ;;  %v4422_v40 = vld [vmem:[%s5038_s29 + $0x189] sm:$0xff] }
 0x1dc   : > { %v5753_v3 = vadd.f32 %v2031_v21, %v1711_v0  ;;  %4275 = vmatmul.msk.f32.gmra.mxu2 %vm297_vm1, %v4225_v49  ;;  %v4572_v49 = vld [vmem:[%s5038_s29 + $0x30] sm:$0xff] }
 0x1dd   : > { %4373 = vmatmul.msk.f32.gmra.mxu3 %vm297_vm1, %v4323_v18  ;;  %v4670_v18 = vld [vmem:[%s5038_s29 + $0x31] sm:$0xff] }
 0x1de   : > { %4471 = vmatmul.msk.f32.gmra.mxu0 %vm297_vm1, %v4421_v45 }
 0x1df   : > { %v1218_v60 = vpop.f32.mrf.mxu2 }
 0x1e0   : > { %v1304_v24 = vadd.f32 %v1218_v60, %v859_v52  ;;  %v1626_v39 = vpop.f32.mrf.mxu3  ;;  %v861_v42 = vpop.f32.mrf.mxu1  ;;  %v6456_v52 = vld [vmem:[#allocation11_spill] sm:$0xff] }
 0x1e1   : > { %v862_v56 = vadd.f32 %v861_v42, %v5383_v5  ;;  %v6455_v5 = vld [vmem:[#allocation9_spill] sm:$0xff] }
 0x1e2   : > { %v1712_v8 = vadd.f32 %v1626_v39, %v1304_v24 }
 0x1e3   : > { %v2037_v54 = vpop.f32.mrf.mxu0  ;;  %4178 = vmatmul.msk.f32.gmra.mxu1 %vm297_vm1, %v4321_v48  ;;  %v4423_v48 = vld [vmem:[%s5038_s29 + $0x191] sm:$0xff] }
 0x1e4   : > { %v5763_v29 = vadd.f32 %v2034_v50, %v1712_v8  ;;  %4276 = vmatmul.msk.f32.gmra.mxu2 %vm297_vm1, %v4226_v9  ;;  %v4768_v50 = vld [vmem:[%s5038_s29 + $0x32] sm:$0xff]  ;;  %v4475_v8 = vld [vmem:[%s5038_s29 + $0x22] sm:$0xff] }
 0x1e5   : > { %4374 = vmatmul.msk.f32.gmra.mxu3 %vm297_vm1, %v4324_v53  ;;  %v4573_v53 = vld [vmem:[%s5038_s29 + $0x38] sm:$0xff] }
 0x1e6   : > { %4472 = vmatmul.msk.f32.gmra.mxu0 %vm297_vm1, %v4422_v40  ;;  %v4671_v40 = vld [vmem:[%s5038_s29 + $0x39] sm:$0xff] }
 0x1e7   : > { %v1221_v22 = vpop.f32.mrf.mxu2 }
 0x1e8   : > { %v1305_v36 = vadd.f32 %v1221_v22, %v862_v56  ;;  %v1629_v4 = vpop.f32.mrf.mxu3  ;;  %v864_v19 = vpop.f32.mrf.mxu1  ;;  %v4769_v22 = vld [vmem:[%s5038_s29 + $0x3a] sm:$0xff] }
 0x1e9   : > { %v865_v15 = vadd.f32 %v864_v19, %v6455_v5  ;;  %v4574_v5 = vld [vmem:[%s5038_s29 + $0x40] sm:$0xff] }
 0x1ea   : > { %v1713_v41 = vadd.f32 %v1629_v4, %v1305_v36  ;;  %v6457_v4 = vld [vmem:[#allocation13_spill] sm:$0xff] }
 0x1eb   : > { %v2040_v59 = vpop.f32.mrf.mxu0  ;;  %4179 = vmatmul.msk.f32.gmra.mxu1 %vm297_vm1, %v4322_v62 }
 0x1ec   : > { %v5773_v21 = vadd.f32 %v2037_v54, %v1713_v41  ;;  %4277 = vmatmul.msk.f32.gmra.mxu2 %vm297_vm1, %v4227_v57 }
 0x1ed   : > { %4375 = vmatmul.msk.f32.gmra.mxu3 %vm297_vm1, %v4325_v14 }
 0x1ee   : > { %4473 = vmatmul.msk.f32.gmra.mxu0 %vm297_vm1, %v4423_v48  ;;  %v4476_v48 = vld [vmem:[%s5038_s29 + $0x2a] sm:$0xff] }
 0x1ef   : > { %v1224_v46 = vpop.f32.mrf.mxu2 }
 0x1f0   : > { %v1306_v16 = vadd.f32 %v1224_v46, %v865_v15  ;;  %v1632_v12 = vpop.f32.mrf.mxu3  ;;  %v867_v58 = vpop.f32.mrf.mxu1  ;;  %v4672_v46 = vld [vmem:[%s5038_s29 + $0x41] sm:$0xff] }
 0x1f1   : > { %v868_v60 = vadd.f32 %v867_v58, %v6456_v52 }
 0x1f2   : > { %v1714_v0 = vadd.f32 %v1632_v12, %v1306_v16  ;;  %v4770_v12 = vld [vmem:[%s5038_s29 + $0x42] sm:$0xff] }
 0x1f3   : > { %v2043_v62 = vpop.f32.mrf.mxu0  ;;  %4524 = vmatmul.msk.f32.vlgmr.msra.gmra.mxu1 %vm297_vm1, %v4474_v1  ;;  %v6458_v1 = vld [vmem:[#allocation15_spill] sm:$0xff] }
 0x1f4   : > { %v5784_v45 = vadd.f32 %v2040_v59, %v1714_v0  ;;  %4622 = vmatmul.msk.f32.vlgmr.msra.gmra.mxu2 %vm297_vm1, %v4572_v49 }
 0x1f5   : > { %4720 = vmatmul.msk.f32.vlgmr.msra.gmra.mxu3 %vm297_vm1, %v4670_v18 }
 0x1f6   : > { %4818 = vmatmul.msk.f32.vlgmr.msra.gmra.mxu0 %vm297_vm1, %v4768_v50 }
 0x1f7   : > { %v1227_v24 = vpop.f32.mrf.mxu2 }
 0x1f8   : > { %v1307_v39 = vadd.f32 %v1227_v24, %v868_v60  ;;  %v1635_v42 = vpop.f32.mrf.mxu3  ;;  %v870_v9 = vpop.f32.mrf.mxu1  ;;  %v4575_v60 = vld [vmem:[%s5038_s29 + $0x48] sm:$0xff] }
 0x1f9   : > { %v871_v19 = vadd.f32 %v870_v9, %v6457_v4  ;;  %v4771_v9 = vld [vmem:[%s5038_s29 + $0x4a] sm:$0xff] }
 0x1fa   : > { %v1715_v54 = vadd.f32 %v1635_v42, %v1307_v39  ;;  %v4673_v39 = vld [vmem:[%s5038_s29 + $0x49] sm:$0xff] }
 0x1fb   : > { %v2046_v56 = vpop.f32.mrf.mxu0  ;;  %4525 = vmatmul.msk.f32.gmra.mxu1 %vm297_vm1, %v4475_v8 }
 0x1fc   : > { %v5795_v36 = vadd.f32 %v2043_v62, %v1715_v54  ;;  %4623 = vmatmul.msk.f32.gmra.mxu2 %vm297_vm1, %v4573_v53  ;;  %v6459_v53 = vld [vmem:[#allocation17_spill] sm:$0xff] }
 0x1fd   : > { %4721 = vmatmul.msk.f32.gmra.mxu3 %vm297_vm1, %v4671_v40 }
 0x1fe   : > { %4819 = vmatmul.msk.f32.gmra.mxu0 %vm297_vm1, %v4769_v22 }
 0x1ff   : > { %v1230_v57 = vpop.f32.mrf.mxu2 }
 0x200   : > { %v1308_v41 = vadd.f32 %v1230_v57, %v871_v19  ;;  %v1638_v14 = vpop.f32.mrf.mxu3  ;;  %v873_v59 = vpop.f32.mrf.mxu1  ;;  %v4576_v57 = vld [vmem:[%s5038_s29 + $0x50] sm:$0xff] }
 0x201   : > { %v874_v49 = vadd.f32 %v873_v59, %v6458_v1 }
 0x202   : > { %v1716_v15 = vadd.f32 %v1638_v14, %v1308_v41  ;;  %v4674_v14 = vld [vmem:[%s5038_s29 + $0x51] sm:$0xff] }
 0x203   : > { %v2049_v16 = vpop.f32.mrf.mxu0  ;;  %4526 = vmatmul.msk.f32.gmra.mxu1 %vm297_vm1, %v4476_v48 }
 0x204   : > { %v5806_v58 = vadd.f32 %v2046_v56, %v1716_v15  ;;  %4624 = vmatmul.msk.f32.gmra.mxu2 %vm297_vm1, %v4574_v5  ;;  %v6460_v5 = vld [vmem:[#allocation2_spill] sm:$0xff] }
 0x205   : > { %4722 = vmatmul.msk.f32.gmra.mxu3 %vm297_vm1, %v4672_v46 }
 0x206   : > { %4820 = vmatmul.msk.f32.gmra.mxu0 %vm297_vm1, %v4770_v12 }
 0x207   : > { %v1233_v0 = vpop.f32.mrf.mxu2 }
 0x208   : > { %v1309_v18 = vadd.f32 %v1233_v0, %v874_v49  ;;  %v1641_v62 = vpop.f32.mrf.mxu3  ;;  %v876_v52 = vpop.f32.mrf.mxu1  ;;  %v4577_v0 = vld [vmem:[%s5038_s29 + $0x58] sm:$0xff] }
 0x209   : > { %v877_v54 = vadd.f32 %v876_v52, %v6459_v53 }
 0x20a   : > { %v1717_v24 = vadd.f32 %v1641_v62, %v1309_v18  ;;  %v4675_v62 = vld [vmem:[%s5038_s29 + $0x59] sm:$0xff] }
 0x20b   : > { %v2052_v42 = vpop.f32.mrf.mxu0  ;;  %4527 = vmatmul.msk.f32.gmra.mxu1 %vm297_vm1, %v4768_v50  ;;  %v4772_v50 = vld [vmem:[%s5038_s29 + $0x52] sm:$0xff] }
 0x20c   : > { %v5816_v8 = vadd.f32 %v2049_v16, %v1717_v24  ;;  %4625 = vmatmul.msk.f32.gmra.mxu2 %vm297_vm1, %v4575_v60  ;;  %v6461_v24 = vld [vmem:[#allocation3_spill] sm:$0xff] }
 0x20d   : > { %4723 = vmatmul.msk.f32.gmra.mxu3 %vm297_vm1, %v4673_v39 }
 0x20e   : > { %4821 = vmatmul.msk.f32.gmra.mxu0 %vm297_vm1, %v4771_v9 }
 0x20f   : > { %v1236_v40 = vpop.f32.mrf.mxu2 }
 0x210   : > { %v1310_v56 = vadd.f32 %v1236_v40, %v877_v54  ;;  %v1644_v4 = vpop.f32.mrf.mxu3  ;;  %v879_v19 = vpop.f32.mrf.mxu1 }
 0x211   : > { %v880_v15 = vadd.f32 %v879_v19, %v6460_v5  ;;  %v4676_v19 = vld [vmem:[%s5038_s29 + $0x61] sm:$0xff] }
 0x212   : > { %v1718_v41 = vadd.f32 %v1644_v4, %v1310_v56  ;;  %v4578_v56 = vld [vmem:[%s5038_s29 + $0x60] sm:$0xff] }
 0x213   : > { %v2055_v59 = vpop.f32.mrf.mxu0  ;;  %4528 = vmatmul.msk.f32.gmra.mxu1 %vm297_vm1, %v4769_v22  ;;  %v4773_v22 = vld [vmem:[%s5038_s29 + $0x5a] sm:$0xff] }
 0x214   : > { %v5826_v48 = vadd.f32 %v2052_v42, %v1718_v41  ;;  %4626 = vmatmul.msk.f32.gmra.mxu2 %vm297_vm1, %v4576_v57 }
 0x215   : > { %4724 = vmatmul.msk.f32.gmra.mxu3 %vm297_vm1, %v4674_v14  ;;  %v6462_v14 = vld [vmem:[#allocation4_spill] sm:$0xff] }
 0x216   : > { %4822 = vmatmul.msk.f32.gmra.mxu0 %vm297_vm1, %v4772_v50 }
 0x217   : > { %v1239_v46 = vpop.f32.mrf.mxu2 }
 0x218   : > { %v1311_v16 = vadd.f32 %v1239_v46, %v880_v15  ;;  %v1647_v1 = vpop.f32.mrf.mxu3  ;;  %v882_v49 = vpop.f32.mrf.mxu1 }
 0x219   : > { %v883_v39 = vadd.f32 %v882_v49, %v6461_v24 }
 0x21a   : > { %v1719_v18 = vadd.f32 %v1647_v1, %v1311_v16  ;;  %v4579_v1 = vld [vmem:[%s5038_s29 + $0x68] sm:$0xff] }
 0x21b   : > { %v2058_v52 = vpop.f32.mrf.mxu0  ;;  %4529 = vmatmul.msk.f32.gmra.mxu1 %vm297_vm1, %v4770_v12  ;;  %v4774_v12 = vld [vmem:[%s5038_s29 + $0x62] sm:$0xff] }
 0x21c   : > { %v5836_v60 = vadd.f32 %v2055_v59, %v1719_v18  ;;  %4627 = vmatmul.msk.f32.gmra.mxu2 %vm297_vm1, %v4577_v0  ;;  %v4677_v0 = vld [vmem:[%s5038_s29 + $0x69] sm:$0xff] }
 0x21d   : > { %4725 = vmatmul.msk.f32.gmra.mxu3 %vm297_vm1, %v4675_v62 }
 0x21e   : > { %4823 = vmatmul.msk.f32.gmra.mxu0 %vm297_vm1, %v4773_v22 }
 0x21f   : > { %v1242_v42 = vpop.f32.mrf.mxu2 }
 0x220   : > { %v1312_v53 = vadd.f32 %v1242_v42, %v883_v39  ;;  %v1650_v54 = vpop.f32.mrf.mxu3  ;;  %v885_v40 = vpop.f32.mrf.mxu1 }
 0x221   : > { %v886_v59 = vadd.f32 %v885_v40, %v6462_v14  ;;  %v4580_v40 = vld [vmem:[%s5038_s29 + $0x70] sm:$0xff]  ;;  %v6464_v14 = vld [vmem:[#allocation6_spill] sm:$0xff] }
 0x222   : > { %v1720_v4 = vadd.f32 %v1650_v54, %v1312_v53 }
 0x223   : > { %v2061_v57 = vpop.f32.mrf.mxu0  ;;  %4530 = vmatmul.msk.f32.gmra.mxu1 %vm297_vm1, %v4771_v9  ;;  %v4775_v9 = vld [vmem:[%s5038_s29 + $0x6a] sm:$0xff] }
 0x224   : > { %v5846_v41 = vadd.f32 %v2058_v52, %v1720_v4  ;;  %4628 = vmatmul.msk.f32.gmra.mxu2 %vm297_vm1, %v4578_v56  ;;  %v6463_v52 = vld [vmem:[#allocation5_spill] sm:$0xff] }
 0x225   : > { %4726 = vmatmul.msk.f32.gmra.mxu3 %vm297_vm1, %v4676_v19  ;;  %v4678_v4 = vld [vmem:[%s5038_s29 + $0x71] sm:$0xff] }
 0x226   : > { %4824 = vmatmul.msk.f32.gmra.mxu0 %vm297_vm1, %v4774_v12 }
 0x227   : > { %v1245_v5 = vpop.f32.mrf.mxu2 }
 0x228   : > { %v1313_v15 = vadd.f32 %v1245_v5, %v886_v59  ;;  %v1653_v46 = vpop.f32.mrf.mxu3  ;;  %v888_v16 = vpop.f32.mrf.mxu1 }
 0x229   : > { %v889_v24 = vadd.f32 %v888_v16, %v6463_v52 }
 0x22a   : > { %v1721_v49 = vadd.f32 %v1653_v46, %v1313_v15 }
 0x22b   : > { %v2064_v18 = vpop.f32.mrf.mxu0  ;;  %4531 = vmatmul.msk.f32.gmra.mxu1 %vm297_vm1, %v4772_v50  ;;  %v4776_v50 = vld [vmem:[%s5038_s29 + $0x72] sm:$0xff] }
 0x22c   : > { %v5856_v62 = vadd.f32 %v2061_v57, %v1721_v49  ;;  %4629 = vmatmul.msk.f32.gmra.mxu2 %vm297_vm1, %v4579_v1  ;;  %v4581_v1 = vld [vmem:[%s5038_s29 + $0x78] sm:$0xff] }
 0x22d   : > { %4727 = vmatmul.msk.f32.gmra.mxu3 %vm297_vm1, %v4677_v0  ;;  %v4679_v0 = vld [vmem:[%s5038_s29 + $0x79] sm:$0xff] }
 0x22e   : > { %4825 = vmatmul.msk.f32.gmra.mxu0 %vm297_vm1, %v4775_v9 }
 0x22f   : > { %v1248_v39 = vpop.f32.mrf.mxu2 }
 0x230   : > { %v1314_v42 = vadd.f32 %v1248_v39, %v889_v24  ;;  %v1656_v53 = vpop.f32.mrf.mxu3  ;;  %v891_v54 = vpop.f32.mrf.mxu1  ;;  %v6465_v24 = vld [vmem:[#allocation7_spill] sm:$0xff] }
 0x231   : > { %v892_v59 = vadd.f32 %v891_v54, %v6464_v14 }
 0x232   : > { %v1722_v56 = vadd.f32 %v1656_v53, %v1314_v42 }
 0x233   : > { %v2067_v19 = vpop.f32.mrf.mxu0  ;;  %4532 = vmatmul.msk.f32.gmra.mxu1 %vm297_vm1, %v4773_v22  ;;  %v4777_v22 = vld [vmem:[%s5038_s29 + $0x7a] sm:$0xff] }
 0x234   : > { %v5866_v57 = vadd.f32 %v2064_v18, %v1722_v56  ;;  %4630 = vmatmul.msk.f32.gmra.mxu2 %vm297_vm1, %v4580_v40  ;;  %v4582_v56 = vld [vmem:[%s5038_s29 + $0x80] sm:$0xff] }
 0x235   : > { %4728 = vmatmul.msk.f32.gmra.mxu3 %vm297_vm1, %v4678_v4 }
 0x236   : > { %4826 = vmatmul.msk.f32.gmra.mxu0 %vm297_vm1, %v4776_v50 }
 0x237   : > { %v1251_v5 = vpop.f32.mrf.mxu2 }
 0x238   : > { %v1315_v15 = vadd.f32 %v1251_v5, %v892_v59  ;;  %v1659_v46 = vpop.f32.mrf.mxu3  ;;  %v894_v16 = vpop.f32.mrf.mxu1  ;;  %v6466_v5 = vld [vmem:[#allocation8_spill] sm:$0xff] }
 0x239   : > { %v895_v39 = vadd.f32 %v894_v16, %v6465_v24 }
 0x23a   : > { %v1723_v49 = vadd.f32 %v1659_v46, %v1315_v15 }
 0x23b   : > { %v2070_v18 = vpop.f32.mrf.mxu0  ;;  %4533 = vmatmul.msk.f32.gmra.mxu1 %vm297_vm1, %v4774_v12  ;;  %v4778_v12 = vld [vmem:[%s5038_s29 + $0x82] sm:$0xff] }
 0x23c   : > { %v5876_v52 = vadd.f32 %v2067_v19, %v1723_v49  ;;  %4631 = vmatmul.msk.f32.gmra.mxu2 %vm297_vm1, %v4581_v1  ;;  %v4680_v19 = vld [vmem:[%s5038_s29 + $0x81] sm:$0xff] }
 0x23d   : > { %4729 = vmatmul.msk.f32.gmra.mxu3 %vm297_vm1, %v4679_v0  ;;  %v4583_v0 = vld [vmem:[%s5038_s29 + $0x88] sm:$0xff] }
 0x23e   : > { %4827 = vmatmul.msk.f32.gmra.mxu0 %vm297_vm1, %v4777_v22 }
 0x23f   : > { %v1254_v42 = vpop.f32.mrf.mxu2 }
 0x240   : > { %v1316_v53 = vadd.f32 %v1254_v42, %v895_v39  ;;  %v1662_v54 = vpop.f32.mrf.mxu3  ;;  %v897_v40 = vpop.f32.mrf.mxu1 }
 0x241   : > { %v898_v15 = vadd.f32 %v897_v40, %v6466_v5  ;;  %v4584_v5 = vld [vmem:[%s5038_s29 + $0x90] sm:$0xff] }
 0x242   : > { %v1724_v4 = vadd.f32 %v1662_v54, %v1316_v53  ;;  %v6467_v53 = vld [vmem:[#allocation10_spill] sm:$0xff] }
 0x243   : > { %v2073_v14 = vpop.f32.mrf.mxu0  ;;  %4534 = vmatmul.msk.f32.gmra.mxu1 %vm297_vm1, %v4775_v9  ;;  %v4779_v9 = vld [vmem:[%s5038_s29 + $0x8a] sm:$0xff] }
 0x244   : > { %v5886_v59 = vadd.f32 %v2070_v18, %v1724_v4  ;;  %4632 = vmatmul.msk.f32.gmra.mxu2 %vm297_vm1, %v4582_v56  ;;  %v4681_v18 = vld [vmem:[%s5038_s29 + $0x89] sm:$0xff] }
 0x245   : > { %4730 = vmatmul.msk.f32.gmra.mxu3 %vm297_vm1, %v4680_v19 }
 0x246   : > { %4828 = vmatmul.msk.f32.gmra.mxu0 %vm297_vm1, %v4778_v12 }
 0x247   : > { %v1257_v46 = vpop.f32.mrf.mxu2 }
 0x248   : > { %v1317_v16 = vadd.f32 %v1257_v46, %v898_v15  ;;  %v1665_v1 = vpop.f32.mrf.mxu3  ;;  %v900_v49 = vpop.f32.mrf.mxu1 }
 0x249   : > { %v901_v54 = vadd.f32 %v900_v49, %v6467_v53 }
 0x24a   : > { %v1725_v24 = vadd.f32 %v1665_v1, %v1317_v16  ;;  %v6468_v1 = vld [vmem:[#allocation12_spill] sm:$0xff] }
 0x24b   : > { %v2076_v39 = vpop.f32.mrf.mxu0  ;;  %4535 = vmatmul.msk.f32.gmra.mxu1 %vm297_vm1, %v4776_v50  ;;  %v4780_v50 = vld [vmem:[%s5038_s29 + $0x92] sm:$0xff] }
 0x24c   : > { %v5896_v42 = vadd.f32 %v2073_v14, %v1725_v24  ;;  %4633 = vmatmul.msk.f32.gmra.mxu2 %vm297_vm1, %v4583_v0  ;;  %v4682_v14 = vld [vmem:[%s5038_s29 + $0x91] sm:$0xff] }
 0x24d   : > { %4731 = vmatmul.msk.f32.gmra.mxu3 %vm297_vm1, %v4681_v18 }
 0x24e   : > { %4829 = vmatmul.msk.f32.gmra.mxu0 %vm297_vm1, %v4779_v9 }
 0x24f   : > { %v1260_v40 = vpop.f32.mrf.mxu2 }
 0x250   : > { %v1318_v56 = vadd.f32 %v1260_v40, %v901_v54  ;;  %v1668_v4 = vpop.f32.mrf.mxu3  ;;  %v903_v19 = vpop.f32.mrf.mxu1  ;;  %v4585_v54 = vld [vmem:[%s5038_s29 + $0x98] sm:$0xff] }
 0x251   : > { %v904_v49 = vadd.f32 %v903_v19, %v6468_v1  ;;  %v6470_v19 = vld [vmem:[#allocation14_spill] sm:$0xff] }
 0x252   : > { %v1726_v15 = vadd.f32 %v1668_v4, %v1318_v56 }
 0x253   : > { %v2079_v46 = vpop.f32.mrf.mxu0  ;;  %4536 = vmatmul.msk.f32.gmra.mxu1 %vm297_vm1, %v4777_v22  ;;  %v4781_v22 = vld [vmem:[%s5038_s29 + $0x9a] sm:$0xff] }
 0x254   : > { %v5906_v16 = vadd.f32 %v2076_v39, %v1726_v15  ;;  %4634 = vmatmul.msk.f32.gmra.mxu2 %vm297_vm1, %v4584_v5  ;;  %v4683_v39 = vld [vmem:[%s5038_s29 + $0x99] sm:$0xff] }
 0x255   : > { %4732 = vmatmul.msk.f32.gmra.mxu3 %vm297_vm1, %v4682_v14 }
 0x256   : > { %4830 = vmatmul.msk.f32.gmra.mxu0 %vm297_vm1, %v4780_v50 }
 0x257   : > { %v1263_v0 = vpop.f32.mrf.mxu2 }
 0x258   : > { %v1319_v24 = vadd.f32 %v1263_v0, %v904_v49  ;;  %v1671_v18 = vpop.f32.mrf.mxu3  ;;  %v906_v53 = vpop.f32.mrf.mxu1  ;;  %v4586_v0 = vld [vmem:[%s5038_s29 + $0xa0] sm:$0xff] }
 0x259   : > { %v907_v5 = vadd.f32 %v906_v53, %v6470_v19  ;;  %v6472_v53 = vld [vmem:[#allocation16_spill] sm:$0xff] }
 0x25a   : > { %v1727_v40 = vadd.f32 %v1671_v18, %v1319_v24 }
 0x25b   : > { %v2082_v56 = vpop.f32.mrf.mxu0  ;;  %4537 = vmatmul.msk.f32.gmra.mxu1 %vm297_vm1, %v4778_v12  ;;  %v4782_v12 = vld [vmem:[%s5038_s29 + $0xa2] sm:$0xff] }
 0x25c   : > { %v5916_v4 = vadd.f32 %v2079_v46, %v1727_v40  ;;  %4635 = vmatmul.msk.f32.gmra.mxu2 %vm297_vm1, %v4585_v54  ;;  %v4684_v46 = vld [vmem:[%s5038_s29 + $0xa1] sm:$0xff] }
 0x25d   : > { %4733 = vmatmul.msk.f32.gmra.mxu3 %vm297_vm1, %v4683_v39 }
 0x25e   : > { %6469 = vst [vmem:[#allocation9_spill] sm:$0xff] %v5916_v4  ;;  %4831 = vmatmul.msk.f32.gmra.mxu0 %vm297_vm1, %v4781_v22  ;;  %v4686_v4 = vld [vmem:[%s5038_s29 + $0xb1] sm:$0xff] }
 0x25f   : > { %v1266_v15 = vpop.f32.mrf.mxu2 }
 0x260   : > { %v1320_v14 = vadd.f32 %v1266_v15, %v907_v5  ;;  %v1674_v1 = vpop.f32.mrf.mxu3  ;;  %v909_v49 = vpop.f32.mrf.mxu1 }
 0x261   : > { %v910_v54 = vadd.f32 %v909_v49, %v6472_v53  ;;  %v6473_v49 = vld [vmem:[#allocation18_spill] sm:$0xff] }
 0x262   : > { %v1728_v24 = vadd.f32 %v1674_v1, %v1320_v14  ;;  %v4587_v14 = vld [vmem:[%s5038_s29 + $0xa8] sm:$0xff] }
 0x263   : > { %v2085_v18 = vpop.f32.mrf.mxu0  ;;  %4538 = vmatmul.msk.f32.gmra.mxu1 %vm297_vm1, %v4779_v9  ;;  %v4783_v9 = vld [vmem:[%s5038_s29 + $0xaa] sm:$0xff] }
 0x264   : > { %v5926_v40 = vadd.f32 %v2082_v56, %v1728_v24  ;;  %4636 = vmatmul.msk.f32.gmra.mxu2 %vm297_vm1, %v4586_v0  ;;  %v4685_v56 = vld [vmem:[%s5038_s29 + $0xa9] sm:$0xff] }
 0x265   : > { %4734 = vmatmul.msk.f32.gmra.mxu3 %vm297_vm1, %v4684_v46 }
 0x266   : > { %6471 = vst [vmem:[#allocation11_spill] sm:$0xff] %v5926_v40  ;;  %4832 = vmatmul.msk.f32.gmra.mxu0 %vm297_vm1, %v4782_v12 }
 0x267   : > { %v1269_v39 = vpop.f32.mrf.mxu2 }
 0x268   : > { %v1321_v19 = vadd.f32 %v1269_v39, %v910_v54  ;;  %v1677_v5 = vpop.f32.mrf.mxu3  ;;  %v912_v15 = vpop.f32.mrf.mxu1 }
 0x269   : > { %v913_v0 = vadd.f32 %v912_v15, %v6473_v49 }
 0x26a   : > { %v1729_v1 = vadd.f32 %v1677_v5, %v1321_v19  ;;  %v4588_v19 = vld [vmem:[%s5038_s29 + $0xb0] sm:$0xff] }
 0x26b   : > { %v2088_v24 = vpop.f32.mrf.mxu0  ;;  %4539 = vmatmul.msk.f32.gmra.mxu1 %vm297_vm1, %v4780_v50 }
 0x26c   : > { %v5936_v40 = vadd.f32 %v2085_v18, %v1729_v1  ;;  %4637 = vmatmul.msk.f32.gmra.mxu2 %vm297_vm1, %v4587_v14  ;;  %v4784_v1 = vld [vmem:[%s5038_s29 + $0xb2] sm:$0xff] }
 0x26d   : > { %4735 = vmatmul.msk.f32.gmra.mxu3 %vm297_vm1, %v4685_v56 }
 0x26e   : > { %4833 = vmatmul.msk.f32.gmra.mxu0 %vm297_vm1, %v4783_v9 }
 0x26f   : > { %v1272_v46 = vpop.f32.mrf.mxu2 }
 0x270   : > { %v1322_v53 = vadd.f32 %v1272_v46, %v913_v0  ;;  %v1680_v54 = vpop.f32.mrf.mxu3  ;;  %v2355_v39 = vpop.f32.mrf.mxu1  ;;  %v4589_v46 = vld [vmem:[%s5038_s29 + $0xb8] sm:$0xff] }
 0x271   : > { %v2499_v15 = vadd.f32 %v2355_v39, %v5472_v32 }
 0x272   : > { %v1730_v5 = vadd.f32 %v1680_v54, %v1322_v53 }
 0x273   : > { %v3579_v18 = vpop.f32.mrf.mxu0  ;;  %4540 = vmatmul.msk.f32.gmra.mxu1 %vm297_vm1, %v4781_v22  ;;  %v4687_v22 = vld [vmem:[%s5038_s29 + $0xb9] sm:$0xff] }
 0x274   : > { %v5946_v50 = vadd.f32 %v2088_v24, %v1730_v5  ;;  %4638 = vmatmul.msk.f32.gmra.mxu2 %vm297_vm1, %v4588_v19  ;;  %v5957_v24 = vld [vmem:[%s6436_s2] ss:$0 sm:$0xff] }
 0x275   : > { %4736 = vmatmul.msk.f32.gmra.mxu3 %vm297_vm1, %v4686_v4  ;;  %v4785_v19 = vld [vmem:[%s5038_s29 + $0xba] sm:$0xff] }
 0x276   : > { %6474 = vst [vmem:[#allocation13_spill] sm:$0xff] %v5946_v50  ;;  %4834 = vmatmul.msk.f32.gmra.mxu0 %vm297_vm1, %v4784_v1 }
 0x277   : > { %v2763_v14 = vpop.f32.mrf.mxu2 }
 0x278   : > { %v2907_v56 = vadd.f32 %v2763_v14, %v2499_v15  ;;  %v3171_v49 = vpop.f32.mrf.mxu3  ;;  %v2358_v0 = vpop.f32.mrf.mxu1 }
 0x279   : > { %v2500_v32 = vadd.f32 %v2358_v0, %v5482_v63  ;;  %v4688_v63 = vld [vmem:[%s5038_s29 + $0xc1] sm:$0xff] }
 0x27a   : > { %v3315_v53 = vadd.f32 %v3171_v49, %v2907_v56  ;;  %v4590_v49 = vld [vmem:[%s5038_s29 + $0xc0] sm:$0xff] }
 0x27b   : > { %v3582_v54 = vpop.f32.mrf.mxu0  ;;  %4541 = vmatmul.msk.f32.gmra.mxu1 %vm297_vm1, %v4782_v12  ;;  %v4898_v12 = vld [vmem:[%s5038_s29 + $0x19] sm:$0xff] }
 0x27c   : > { %v3723_v4 = vadd.f32 %v3579_v18, %v3315_v53  ;;  %4639 = vmatmul.msk.f32.gmra.mxu2 %vm297_vm1, %v4589_v46  ;;  %v4786_v53 = vld [vmem:[%s5038_s29 + $0xc2] sm:$0xff] }
 0x27d   : > { %4737 = vmatmul.msk.f32.gmra.mxu3 %vm297_vm1, %v4687_v22 }
 0x27e   : > { %4835 = vmatmul.msk.f32.gmra.mxu0 %vm297_vm1, %v4785_v19  ;;  %v3775_v39 = vadd.f32 %v5957_v24, %v3723_v4 }
 0x27f   : > { %v2766_v5 = vpop.f32.mrf.mxu2 }
 0x280   : > { %v3823_v18 = vadd.f32 %v4898_v12, %v3775_v39  ;;  %v2908_v15 = vadd.f32 %v2766_v5, %v2500_v32  ;;  %v3174_v14 = vpop.f32.mrf.mxu3  ;;  %v2361_v56 = vpop.f32.mrf.mxu1  ;;  %v4899_v5 = vld [vmem:[%s5038_s29 + $0x21] sm:$0xff] }
 0x281   : > { %v2501_v4 = vadd.f32 %v2361_v56, %v5492_v47 }
 0x282   : > { %3871 = vst.msk [vmem:[%s5971_s20] sm:$0xff] %vm297_vm1, %v3823_v18  ;;  %v3316_v46 = vadd.f32 %v3174_v14, %v2908_v15  ;;  %v4591_v14 = vld [vmem:[%s5038_s29 + $0xc8] sm:$0xff] }
 0x283   : > { %v3585_v0 = vpop.f32.mrf.mxu0  ;;  %4542 = vmatmul.msk.f32.gmra.mxu1 %vm297_vm1, %v4783_v9 }
 0x284   : > { %v3724_v22 = vadd.f32 %v3582_v54, %v3316_v46  ;;  %4640 = vmatmul.msk.f32.gmra.mxu2 %vm297_vm1, %v4590_v49  ;;  %v4689_v49 = vld [vmem:[%s5038_s29 + $0xc9] sm:$0xff] }
 0x285   : > { %4738 = vmatmul.msk.f32.gmra.mxu3 %vm297_vm1, %v4688_v63  ;;  %v4787_v63 = vld [vmem:[%s5038_s29 + $0xca] sm:$0xff] }
 0x286   : > { %4836 = vmatmul.msk.f32.gmra.mxu0 %vm297_vm1, %v4786_v53  ;;  %v3776_v32 = vadd.f32 %v5957_v24, %v3724_v22 }
 0x287   : > { %v2769_v39 = vpop.f32.mrf.mxu2 }
 0x288   : > { %v3824_v12 = vadd.f32 %v4899_v5, %v3776_v32  ;;  %v2909_v18 = vadd.f32 %v2769_v39, %v2501_v4  ;;  %v3177_v15 = vpop.f32.mrf.mxu3  ;;  %v2364_v54 = vpop.f32.mrf.mxu1  ;;  %v4900_v4 = vld [vmem:[%s5038_s29 + $0x29] sm:$0xff] }
 0x289   : > { %v2502_v47 = vadd.f32 %v2364_v54, %v5502_v27 }
 0x28a   : > { %3872 = vst.msk [vmem:[%s5971_s20 + $0x8] sm:$0xff] %vm297_vm1, %v3824_v12  ;;  %v3317_v9 = vadd.f32 %v3177_v15, %v2909_v18  ;;  %v4592_v12 = vld [vmem:[%s5038_s29 + $0xd0] sm:$0xff] }
 0x28b   : > { %v3588_v46 = vpop.f32.mrf.mxu0  ;;  %4543 = vmatmul.msk.f32.gmra.mxu1 %vm297_vm1, %v4784_v1  ;;  %v4690_v18 = vld [vmem:[%s5038_s29 + $0xd1] sm:$0xff] }
 0x28c   : > { %v3725_v50 = vadd.f32 %v3585_v0, %v3317_v9  ;;  %4641 = vmatmul.msk.f32.gmra.mxu2 %vm297_vm1, %v4591_v14  ;;  %v4788_v14 = vld [vmem:[%s5038_s29 + $0xd2] sm:$0xff] }
 0x28d   : > { %4739 = vmatmul.msk.f32.gmra.mxu3 %vm297_vm1, %v4689_v49  ;;  %v4901_v49 = vld [vmem:[%s5038_s29 + $0x31] sm:$0xff] }
 0x28e   : > { %4837 = vmatmul.msk.f32.gmra.mxu0 %vm297_vm1, %v4787_v63  ;;  %v3777_v56 = vadd.f32 %v5957_v24, %v3725_v50 }
 0x28f   : > { %v2772_v22 = vpop.f32.mrf.mxu2 }
 0x290   : > { %v3825_v32 = vadd.f32 %v4900_v4, %v3777_v56  ;;  %v2910_v39 = vadd.f32 %v2772_v22, %v2502_v47  ;;  %v3180_v5 = vpop.f32.mrf.mxu3  ;;  %v2367_v0 = vpop.f32.mrf.mxu1  ;;  %v4593_v4 = vld [vmem:[%s5038_s29 + $0xd8] sm:$0xff] }
 0x291   : > { %v2503_v27 = vadd.f32 %v2367_v0, %v5512_v13 }
 0x292   : > { %3873 = vst.msk [vmem:[%s5971_s20 + $0x10] sm:$0xff] %vm297_vm1, %v3825_v32  ;;  %v3318_v1 = vadd.f32 %v3180_v5, %v2910_v39  ;;  %v4691_v32 = vld [vmem:[%s5038_s29 + $0xd9] sm:$0xff] }
 0x293   : > { %v3591_v15 = vpop.f32.mrf.mxu0  ;;  %4544 = vmatmul.msk.f32.gmra.mxu1 %vm297_vm1, %v4785_v19  ;;  %v4789_v5 = vld [vmem:[%s5038_s29 + $0xda] sm:$0xff] }
 0x294   : > { %v3726_v9 = vadd.f32 %v3588_v46, %v3318_v1  ;;  %4642 = vmatmul.msk.f32.gmra.mxu2 %vm297_vm1, %v4592_v12 }
 0x295   : > { %4740 = vmatmul.msk.f32.gmra.mxu3 %vm297_vm1, %v4690_v18  ;;  %v4902_v18 = vld [vmem:[%s5038_s29 + $0x39] sm:$0xff] }
 0x296   : > { %4838 = vmatmul.msk.f32.gmra.mxu0 %vm297_vm1, %v4788_v14  ;;  %v3778_v50 = vadd.f32 %v5957_v24, %v3726_v9 }
 0x297   : > { %v2775_v54 = vpop.f32.mrf.mxu2 }
 0x298   : > { %v3826_v47 = vadd.f32 %v4901_v49, %v3778_v50  ;;  %v2911_v56 = vadd.f32 %v2775_v54, %v2503_v27  ;;  %v3183_v22 = vpop.f32.mrf.mxu3  ;;  %v2370_v46 = vpop.f32.mrf.mxu1  ;;  %v4594_v54 = vld [vmem:[%s5038_s29 + $0xe0] sm:$0xff] }
 0x299   : > { %v2504_v13 = vadd.f32 %v2370_v46, %v5522_v17  ;;  %v4692_v49 = vld [vmem:[%s5038_s29 + $0xe1] sm:$0xff] }
 0x29a   : > { %3874 = vst.msk [vmem:[%s5971_s20 + $0x18] sm:$0xff] %vm297_vm1, %v3826_v47  ;;  %v3319_v19 = vadd.f32 %v3183_v22, %v2911_v56  ;;  %v4790_v56 = vld [vmem:[%s5038_s29 + $0xe2] sm:$0xff] }
 0x29b   : > { %v3594_v39 = vpop.f32.mrf.mxu0  ;;  %4545 = vmatmul.msk.f32.gmra.mxu1 %vm297_vm1, %v4786_v53 }
 0x29c   : > { %v3727_v12 = vadd.f32 %v3591_v15, %v3319_v19  ;;  %4643 = vmatmul.msk.f32.gmra.mxu2 %vm297_vm1, %v4593_v4  ;;  %v4903_v19 = vld [vmem:[%s5038_s29 + $0x41] sm:$0xff] }
 0x29d   : > { %4741 = vmatmul.msk.f32.gmra.mxu3 %vm297_vm1, %v4691_v32 }
 0x29e   : > { %4839 = vmatmul.msk.f32.gmra.mxu0 %vm297_vm1, %v4789_v5  ;;  %v3779_v0 = vadd.f32 %v5957_v24, %v3727_v12 }
 0x29f   : > { %v2778_v1 = vpop.f32.mrf.mxu2 }
 0x2a0   : > { %v3827_v9 = vadd.f32 %v4902_v18, %v3779_v0  ;;  %v2912_v27 = vadd.f32 %v2778_v1, %v2504_v13  ;;  %v3186_v50 = vpop.f32.mrf.mxu3  ;;  %v2373_v15 = vpop.f32.mrf.mxu1  ;;  %v4595_v0 = vld [vmem:[%s5038_s29 + $0xe8] sm:$0xff] }
 0x2a1   : > { %v2505_v17 = vadd.f32 %v2373_v15, %v5532_v11  ;;  %v4693_v1 = vld [vmem:[%s5038_s29 + $0xe9] sm:$0xff] }
 0x2a2   : > { %3875 = vst.msk [vmem:[%s5971_s20 + $0x20] sm:$0xff] %vm297_vm1, %v3827_v9  ;;  %v3320_v53 = vadd.f32 %v3186_v50, %v2912_v27  ;;  %v4791_v9 = vld [vmem:[%s5038_s29 + $0xea] sm:$0xff] }
 0x2a3   : > { %v3597_v47 = vpop.f32.mrf.mxu0  ;;  %4546 = vmatmul.msk.f32.gmra.mxu1 %vm297_vm1, %v4787_v63 }
 0x2a4   : > { %v3728_v22 = vadd.f32 %v3594_v39, %v3320_v53  ;;  %4644 = vmatmul.msk.f32.gmra.mxu2 %vm297_vm1, %v4594_v54  ;;  %v4904_v54 = vld [vmem:[%s5038_s29 + $0x49] sm:$0xff] }
 0x2a5   : > { %4742 = vmatmul.msk.f32.gmra.mxu3 %vm297_vm1, %v4692_v49 }
 0x2a6   : > { %4840 = vmatmul.msk.f32.gmra.mxu0 %vm297_vm1, %v4790_v56  ;;  %v3780_v46 = vadd.f32 %v5957_v24, %v3728_v22 }
 0x2a7   : > { %v2781_v4 = vpop.f32.mrf.mxu2 }
 0x2a8   : > { %v3828_v32 = vadd.f32 %v4903_v19, %v3780_v46  ;;  %v2913_v12 = vadd.f32 %v2781_v4, %v2505_v17  ;;  %v3189_v13 = vpop.f32.mrf.mxu3  ;;  %v2376_v39 = vpop.f32.mrf.mxu1  ;;  %v4596_v17 = vld [vmem:[%s5038_s29 + $0xf0] sm:$0xff] }
 0x2a9   : > { %v2506_v11 = vadd.f32 %v2376_v39, %v5542_v37  ;;  %v4694_v46 = vld [vmem:[%s5038_s29 + $0xf1] sm:$0xff] }
 0x2aa   : > { %3876 = vst.msk [vmem:[%s5971_s20 + $0x28] sm:$0xff] %vm297_vm1, %v3828_v32  ;;  %v3321_v63 = vadd.f32 %v3189_v13, %v2913_v12  ;;  %v4792_v19 = vld [vmem:[%s5038_s29 + $0xf2] sm:$0xff] }
 0x2ab   : > { %v3600_v18 = vpop.f32.mrf.mxu0  ;;  %4547 = vmatmul.msk.f32.gmra.mxu1 %vm297_vm1, %v4788_v14  ;;  %v4905_v39 = vld [vmem:[%s5038_s29 + $0x51] sm:$0xff] }
 0x2ac   : > { %v3729_v27 = vadd.f32 %v3597_v47, %v3321_v63  ;;  %4645 = vmatmul.msk.f32.gmra.mxu2 %vm297_vm1, %v4595_v0 }
 0x2ad   : > { %4743 = vmatmul.msk.f32.gmra.mxu3 %vm297_vm1, %v4693_v1 }
 0x2ae   : > { %4841 = vmatmul.msk.f32.gmra.mxu0 %vm297_vm1, %v4791_v9  ;;  %v3781_v50 = vadd.f32 %v5957_v24, %v3729_v27  ;;  %v4597_v27 = vld [vmem:[%s5038_s29 + $0xf8] sm:$0xff] }
 0x2af   : > { %v2784_v15 = vpop.f32.mrf.mxu2 }
 0x2b0   : > { %v3829_v53 = vadd.f32 %v4904_v54, %v3781_v50  ;;  %v2914_v49 = vadd.f32 %v2784_v15, %v2506_v11  ;;  %v3192_v22 = vpop.f32.mrf.mxu3  ;;  %v2379_v47 = vpop.f32.mrf.mxu1  ;;  %v4695_v11 = vld [vmem:[%s5038_s29 + $0xf9] sm:$0xff] }
 0x2b1   : > { %v2507_v37 = vadd.f32 %v2379_v47, %v5552_v2  ;;  %v4793_v15 = vld [vmem:[%s5038_s29 + $0xfa] sm:$0xff] }
 0x2b2   : > { %3877 = vst.msk [vmem:[%s5971_s20 + $0x30] sm:$0xff] %vm297_vm1, %v3829_v53  ;;  %v3322_v14 = vadd.f32 %v3192_v22, %v2914_v49  ;;  %v4906_v22 = vld [vmem:[%s5038_s29 + $0x59] sm:$0xff] }
 0x2b3   : > { %v3603_v4 = vpop.f32.mrf.mxu0  ;;  %4548 = vmatmul.msk.f32.gmra.mxu1 %vm297_vm1, %v4789_v5 }
 0x2b4   : > { %v3730_v32 = vadd.f32 %v3600_v18, %v3322_v14  ;;  %4646 = vmatmul.msk.f32.gmra.mxu2 %vm297_vm1, %v4596_v17 }
 0x2b5   : > { %4744 = vmatmul.msk.f32.gmra.mxu3 %vm297_vm1, %v4694_v46 }
 0x2b6   : > { %4842 = vmatmul.msk.f32.gmra.mxu0 %vm297_vm1, %v4792_v19  ;;  %v3782_v12 = vadd.f32 %v5957_v24, %v3730_v32  ;;  %v4696_v32 = vld [vmem:[%s5038_s29 + $0x101] sm:$0xff] }
 0x2b7   : > { %v2787_v13 = vpop.f32.mrf.mxu2 }
 0x2b8   : > { %v3830_v0 = vadd.f32 %v4905_v39, %v3782_v12  ;;  %v2915_v63 = vadd.f32 %v2787_v13, %v2507_v37  ;;  %v3195_v1 = vpop.f32.mrf.mxu3  ;;  %v2382_v18 = vpop.f32.mrf.mxu1  ;;  %v4794_v12 = vld [vmem:[%s5038_s29 + $0x102] sm:$0xff] }
 0x2b9   : > { %v2508_v2 = vadd.f32 %v2382_v18, %v5562_v51 }
 0x2ba   : > { %3878 = vst.msk [vmem:[%s5971_s20 + $0x38] sm:$0xff] %vm297_vm1, %v3830_v0  ;;  %v3323_v5 = vadd.f32 %v3195_v1, %v2915_v63  ;;  %v4907_v63 = vld [vmem:[%s5038_s29 + $0x61] sm:$0xff] }
 0x2bb   : > { %v3606_v50 = vpop.f32.mrf.mxu0  ;;  %4549 = vmatmul.msk.f32.gmra.mxu1 %vm297_vm1, %v4790_v56 }
 0x2bc   : > { %v3731_v54 = vadd.f32 %v3603_v4, %v3323_v5  ;;  %4647 = vmatmul.msk.f32.gmra.mxu2 %vm297_vm1, %v4597_v27  ;;  %v4598_v4 = vld [vmem:[%s5038_s29 + $0x100] sm:$0xff] }
 0x2bd   : > { %4745 = vmatmul.msk.f32.gmra.mxu3 %vm297_vm1, %v4695_v11  ;;  %v4599_v11 = vld [vmem:[%s5038_s29 + $0x108] sm:$0xff] }
 0x2be   : > { %4843 = vmatmul.msk.f32.gmra.mxu0 %vm297_vm1, %v4793_v15  ;;  %v3783_v53 = vadd.f32 %v5957_v24, %v3731_v54 }
 0x2bf   : > { %v2790_v49 = vpop.f32.mrf.mxu2 }
 0x2c0   : > { %v3831_v47 = vadd.f32 %v4906_v22, %v3783_v53  ;;  %v2916_v17 = vadd.f32 %v2790_v49, %v2508_v2  ;;  %v3198_v14 = vpop.f32.mrf.mxu3  ;;  %v2385_v46 = vpop.f32.mrf.mxu1  ;;  %v4795_v2 = vld [vmem:[%s5038_s29 + $0x10a] sm:$0xff] }
 0x2c1   : > { %v2509_v51 = vadd.f32 %v2385_v46, %v5572_v33 }
 0x2c2   : > { %3879 = vst.msk [vmem:[%s5971_s20 + $0x40] sm:$0xff] %vm297_vm1, %v3831_v47  ;;  %v3324_v56 = vadd.f32 %v3198_v14, %v2916_v17  ;;  %v4908_v47 = vld [vmem:[%s5038_s29 + $0x69] sm:$0xff] }
 0x2c3   : > { %v3609_v37 = vpop.f32.mrf.mxu0  ;;  %4550 = vmatmul.msk.f32.gmra.mxu1 %vm297_vm1, %v4791_v9 }
 0x2c4   : > { %v3732_v13 = vadd.f32 %v3606_v50, %v3324_v56  ;;  %4648 = vmatmul.msk.f32.gmra.mxu2 %vm297_vm1, %v4598_v4  ;;  %v4697_v50 = vld [vmem:[%s5038_s29 + $0x109] sm:$0xff] }
 0x2c5   : > { %4746 = vmatmul.msk.f32.gmra.mxu3 %vm297_vm1, %v4696_v32  ;;  %v4600_v56 = vld [vmem:[%s5038_s29 + $0x110] sm:$0xff] }
 0x2c6   : > { %4844 = vmatmul.msk.f32.gmra.mxu0 %vm297_vm1, %v4794_v12  ;;  %v3784_v39 = vadd.f32 %v5957_v24, %v3732_v13  ;;  %v4698_v32 = vld [vmem:[%s5038_s29 + $0x111] sm:$0xff] }
 0x2c7   : > { %v2793_v0 = vpop.f32.mrf.mxu2  ;;  %v4796_v13 = vld [vmem:[%s5038_s29 + $0x112] sm:$0xff] }
 0x2c8   : > { %v3832_v1 = vadd.f32 %v4907_v63, %v3784_v39  ;;  %v2917_v18 = vadd.f32 %v2793_v0, %v2509_v51  ;;  %v3201_v27 = vpop.f32.mrf.mxu3  ;;  %v2388_v5 = vpop.f32.mrf.mxu1  ;;  %v4909_v63 = vld [vmem:[%s5038_s29 + $0x71] sm:$0xff] }
 0x2c9   : > { %v2510_v33 = vadd.f32 %v2388_v5, %v5582_v25 }
 0x2ca   : > { %3880 = vst.msk [vmem:[%s5971_s20 + $0x48] sm:$0xff] %vm297_vm1, %v3832_v1  ;;  %v3325_v9 = vadd.f32 %v3201_v27, %v2917_v18 }
 0x2cb   : > { %v3612_v54 = vpop.f32.mrf.mxu0  ;;  %4551 = vmatmul.msk.f32.gmra.mxu1 %vm297_vm1, %v4792_v19 }
 0x2cc   : > { %v3733_v53 = vadd.f32 %v3609_v37, %v3325_v9  ;;  %4649 = vmatmul.msk.f32.gmra.mxu2 %vm297_vm1, %v4599_v11  ;;  %v4601_v11 = vld [vmem:[%s5038_s29 + $0x118] sm:$0xff] }
 0x2cd   : > { %4747 = vmatmul.msk.f32.gmra.mxu3 %vm297_vm1, %v4697_v50  ;;  %v4699_v9 = vld [vmem:[%s5038_s29 + $0x119] sm:$0xff] }
 0x2ce   : > { %4845 = vmatmul.msk.f32.gmra.mxu0 %vm297_vm1, %v4795_v2  ;;  %v3785_v49 = vadd.f32 %v5957_v24, %v3733_v53 }
 0x2cf   : > { %v2796_v22 = vpop.f32.mrf.mxu2 }
 0x2d0   : > { %v3833_v17 = vadd.f32 %v4908_v47, %v3785_v49  ;;  %v2918_v14 = vadd.f32 %v2796_v22, %v2510_v33  ;;  %v3204_v46 = vpop.f32.mrf.mxu3  ;;  %v2391_v4 = vpop.f32.mrf.mxu1  ;;  %v4910_v22 = vld [vmem:[%s5038_s29 + $0x79] sm:$0xff] }
 0x2d1   : > { %v2511_v25 = vadd.f32 %v2391_v4, %v5592_v43  ;;  %v4602_v4 = vld [vmem:[%s5038_s29 + $0x120] sm:$0xff] }
 0x2d2   : > { %3881 = vst.msk [vmem:[%s5971_s20 + $0x50] sm:$0xff] %vm297_vm1, %v3833_v17  ;;  %v3326_v19 = vadd.f32 %v3204_v46, %v2918_v14 }
 0x2d3   : > { %v3615_v37 = vpop.f32.mrf.mxu0  ;;  %4552 = vmatmul.msk.f32.gmra.mxu1 %vm297_vm1, %v4793_v15 }
 0x2d4   : > { %v3734_v51 = vadd.f32 %v3612_v54, %v3326_v19  ;;  %4650 = vmatmul.msk.f32.gmra.mxu2 %vm297_vm1, %v4600_v56  ;;  %v4797_v54 = vld [vmem:[%s5038_s29 + $0x11a] sm:$0xff] }
 0x2d5   : > { %4748 = vmatmul.msk.f32.gmra.mxu3 %vm297_vm1, %v4698_v32  ;;  %v4700_v56 = vld [vmem:[%s5038_s29 + $0x121] sm:$0xff] }
 0x2d6   : > { %4846 = vmatmul.msk.f32.gmra.mxu0 %vm297_vm1, %v4796_v13  ;;  %v3786_v39 = vadd.f32 %v5957_v24, %v3734_v51  ;;  %v4798_v32 = vld [vmem:[%s5038_s29 + $0x122] sm:$0xff] }
 0x2d7   : > { %v2799_v0 = vpop.f32.mrf.mxu2 }
 0x2d8   : > { %v3834_v1 = vadd.f32 %v4909_v63, %v3786_v39  ;;  %v2919_v18 = vadd.f32 %v2799_v0, %v2511_v25  ;;  %v3207_v27 = vpop.f32.mrf.mxu3  ;;  %v2394_v5 = vpop.f32.mrf.mxu1  ;;  %v4911_v39 = vld [vmem:[%s5038_s29 + $0x81] sm:$0xff] }
 0x2d9   : > { %v2512_v43 = vadd.f32 %v2394_v5, %v5602_v44  ;;  %v4701_v5 = vld [vmem:[%s5038_s29 + $0x129] sm:$0xff] }
 0x2da   : > { %3882 = vst.msk [vmem:[%s5971_s20 + $0x58] sm:$0xff] %vm297_vm1, %v3834_v1  ;;  %v3327_v15 = vadd.f32 %v3207_v27, %v2919_v18  ;;  %v4603_v27 = vld [vmem:[%s5038_s29 + $0x128] sm:$0xff] }
 0x2db   : > { %v3618_v50 = vpop.f32.mrf.mxu0  ;;  %4553 = vmatmul.msk.f32.gmra.mxu1 %vm297_vm1, %v4794_v12 }
 0x2dc   : > { %v3735_v53 = vadd.f32 %v3615_v37, %v3327_v15  ;;  %4651 = vmatmul.msk.f32.gmra.mxu2 %vm297_vm1, %v4601_v11  ;;  %v4799_v15 = vld [vmem:[%s5038_s29 + $0x12a] sm:$0xff] }
 0x2dd   : > { %4749 = vmatmul.msk.f32.gmra.mxu3 %vm297_vm1, %v4699_v9 }
 0x2de   : > { %4847 = vmatmul.msk.f32.gmra.mxu0 %vm297_vm1, %v4797_v54  ;;  %v3787_v33 = vadd.f32 %v5957_v24, %v3735_v53 }
 0x2df   : > { %v2802_v49 = vpop.f32.mrf.mxu2 }
 0x2e0   : > { %v3835_v47 = vadd.f32 %v4910_v22, %v3787_v33  ;;  %v2920_v17 = vadd.f32 %v2802_v49, %v2512_v43  ;;  %v3210_v14 = vpop.f32.mrf.mxu3  ;;  %v2397_v46 = vpop.f32.mrf.mxu1  ;;  %v4912_v43 = vld [vmem:[%s5038_s29 + $0x89] sm:$0xff] }
 0x2e1   : > { %v2513_v44 = vadd.f32 %v2397_v46, %v5612_v31 }
 0x2e2   : > { %3883 = vst.msk [vmem:[%s5971_s20 + $0x60] sm:$0xff] %vm297_vm1, %v3835_v47  ;;  %v3328_v12 = vadd.f32 %v3210_v14, %v2920_v17  ;;  %v4604_v17 = vld [vmem:[%s5038_s29 + $0x130] sm:$0xff] }
 0x2e3   : > { %v3621_v19 = vpop.f32.mrf.mxu0  ;;  %4554 = vmatmul.msk.f32.gmra.mxu1 %vm297_vm1, %v4795_v2  ;;  %v4702_v14 = vld [vmem:[%s5038_s29 + $0x131] sm:$0xff] }
 0x2e4   : > { %v3736_v37 = vadd.f32 %v3618_v50, %v3328_v12  ;;  %4652 = vmatmul.msk.f32.gmra.mxu2 %vm297_vm1, %v4602_v4  ;;  %v4800_v4 = vld [vmem:[%s5038_s29 + $0x132] sm:$0xff] }
 0x2e5   : > { %4750 = vmatmul.msk.f32.gmra.mxu3 %vm297_vm1, %v4700_v56 }
 0x2e6   : > { %4848 = vmatmul.msk.f32.gmra.mxu0 %vm297_vm1, %v4798_v32  ;;  %v3788_v51 = vadd.f32 %v5957_v24, %v3736_v37  ;;  %v4913_v37 = vld [vmem:[%s5038_s29 + $0x91] sm:$0xff] }
 0x2e7   : > { %v2805_v25 = vpop.f32.mrf.mxu2 }
 0x2e8   : > { %v3836_v0 = vadd.f32 %v4911_v39, %v3788_v51  ;;  %v2921_v63 = vadd.f32 %v2805_v25, %v2513_v44  ;;  %v3213_v1 = vpop.f32.mrf.mxu3  ;;  %v2400_v18 = vpop.f32.mrf.mxu1 }
 0x2e9   : > { %v2514_v31 = vadd.f32 %v2400_v18, %v5622_v10  ;;  %v4801_v18 = vld [vmem:[%s5038_s29 + $0x13a] sm:$0xff] }
 0x2ea   : > { %3884 = vst.msk [vmem:[%s5971_s20 + $0x68] sm:$0xff] %vm297_vm1, %v3836_v0  ;;  %v3329_v2 = vadd.f32 %v3213_v1, %v2921_v63  ;;  %v4605_v0 = vld [vmem:[%s5038_s29 + $0x138] sm:$0xff] }
 0x2eb   : > { %v3624_v11 = vpop.f32.mrf.mxu0  ;;  %4555 = vmatmul.msk.f32.gmra.mxu1 %vm297_vm1, %v4796_v13  ;;  %v4703_v63 = vld [vmem:[%s5038_s29 + $0x139] sm:$0xff] }
 0x2ec   : > { %v3737_v9 = vadd.f32 %v3621_v19, %v3329_v2  ;;  %4653 = vmatmul.msk.f32.gmra.mxu2 %vm297_vm1, %v4603_v27 }
 0x2ed   : > { %4751 = vmatmul.msk.f32.gmra.mxu3 %vm297_vm1, %v4701_v5 }
 0x2ee   : > { %4849 = vmatmul.msk.f32.gmra.mxu0 %vm297_vm1, %v4799_v15  ;;  %v3789_v50 = vadd.f32 %v5957_v24, %v3737_v9 }
 0x2ef   : > { %v2808_v53 = vpop.f32.mrf.mxu2 }
 0x2f0   : > { %v3837_v33 = vadd.f32 %v4912_v43, %v3789_v50  ;;  %v2922_v49 = vadd.f32 %v2808_v53, %v2514_v31  ;;  %v3216_v22 = vpop.f32.mrf.mxu3  ;;  %v2403_v47 = vpop.f32.mrf.mxu1  ;;  %v4606_v43 = vld [vmem:[%s5038_s29 + $0x140] sm:$0xff] }
 0x2f1   : > { %v2515_v10 = vadd.f32 %v2403_v47, %v5633_v55 }
 0x2f2   : > { %3885 = vst.msk [vmem:[%s5971_s20 + $0x70] sm:$0xff] %vm297_vm1, %v3837_v33  ;;  %v3330_v13 = vadd.f32 %v3216_v22, %v2922_v49  ;;  %v4704_v33 = vld [vmem:[%s5038_s29 + $0x141] sm:$0xff] }
 0x2f3   : > { %v3627_v46 = vpop.f32.mrf.mxu0  ;;  %4556 = vmatmul.msk.f32.gmra.mxu1 %vm297_vm1, %v4797_v54  ;;  %v4802_v22 = vld [vmem:[%s5038_s29 + $0x142] sm:$0xff] }
 0x2f4   : > { %v3738_v12 = vadd.f32 %v3624_v11, %v3330_v13  ;;  %4654 = vmatmul.msk.f32.gmra.mxu2 %vm297_vm1, %v4604_v17  ;;  %v4914_v11 = vld [vmem:[%s5038_s29 + $0x99] sm:$0xff] }
 0x2f5   : > { %4752 = vmatmul.msk.f32.gmra.mxu3 %vm297_vm1, %v4702_v14  ;;  %v4915_v14 = vld [vmem:[%s5038_s29 + $0xa1] sm:$0xff] }
 0x2f6   : > { %4850 = vmatmul.msk.f32.gmra.mxu0 %vm297_vm1, %v4800_v4  ;;  %v3790_v56 = vadd.f32 %v5957_v24, %v3738_v12 }
 0x2f7   : > { %v2811_v19 = vpop.f32.mrf.mxu2 }
 0x2f8   : > { %v3838_v44 = vadd.f32 %v4913_v37, %v3790_v56  ;;  %v2923_v51 = vadd.f32 %v2811_v19, %v2515_v10  ;;  %v3219_v25 = vpop.f32.mrf.mxu3  ;;  %v2406_v39 = vpop.f32.mrf.mxu1  ;;  %v4607_v19 = vld [vmem:[%s5038_s29 + $0x148] sm:$0xff] }
 0x2f9   : > { %v2516_v55 = vadd.f32 %v2406_v39, %v5643_v6  ;;  %v4705_v37 = vld [vmem:[%s5038_s29 + $0x149] sm:$0xff] }
 0x2fa   : > { %3886 = vst.msk [vmem:[%s5971_s20 + $0x78] sm:$0xff] %vm297_vm1, %v3838_v44  ;;  %v3331_v54 = vadd.f32 %v3219_v25, %v2923_v51  ;;  %v4803_v51 = vld [vmem:[%s5038_s29 + $0x14a] sm:$0xff] }
 0x2fb   : > { %v3630_v1 = vpop.f32.mrf.mxu0  ;;  %4557 = vmatmul.msk.f32.gmra.mxu1 %vm297_vm1, %v4798_v32 }
 0x2fc   : > { %v3739_v27 = vadd.f32 %v3627_v46, %v3331_v54  ;;  %4655 = vmatmul.msk.f32.gmra.mxu2 %vm297_vm1, %v4605_v0  ;;  %v4916_v54 = vld [vmem:[%s5038_s29 + $0xa9] sm:$0xff] }
 0x2fd   : > { %4753 = vmatmul.msk.f32.gmra.mxu3 %vm297_vm1, %v4703_v63 }
 0x2fe   : > { %4851 = vmatmul.msk.f32.gmra.mxu0 %vm297_vm1, %v4801_v18  ;;  %v3791_v2 = vadd.f32 %v5957_v24, %v3739_v27 }
 0x2ff   : > { %v2814_v5 = vpop.f32.mrf.mxu2 }
 0x300   : > { %v3839_v9 = vadd.f32 %v4914_v11, %v3791_v2  ;;  %v2924_v31 = vadd.f32 %v2814_v5, %v2516_v55  ;;  %v3222_v50 = vpop.f32.mrf.mxu3  ;;  %v2409_v53 = vpop.f32.mrf.mxu1  ;;  %v4608_v2 = vld [vmem:[%s5038_s29 + $0x150] sm:$0xff] }
 0x301   : > { %v2517_v6 = vadd.f32 %v2409_v53, %v5653_v61  ;;  %v4706_v5 = vld [vmem:[%s5038_s29 + $0x151] sm:$0xff] }
 0x302   : > { %3887 = vst.msk [vmem:[%s5971_s20 + $0x80] sm:$0xff] %vm297_vm1, %v3839_v9  ;;  %v3332_v32 = vadd.f32 %v3222_v50, %v2924_v31  ;;  %v4804_v9 = vld [vmem:[%s5038_s29 + $0x152] sm:$0xff] }
 0x303   : > { %v3633_v49 = vpop.f32.mrf.mxu0  ;;  %4558 = vmatmul.msk.f32.gmra.mxu1 %vm297_vm1, %v4799_v15 }
 0x304   : > { %v3740_v47 = vadd.f32 %v3630_v1, %v3332_v32  ;;  %4656 = vmatmul.msk.f32.gmra.mxu2 %vm297_vm1, %v4606_v43  ;;  %v4917_v43 = vld [vmem:[%s5038_s29 + $0xb1] sm:$0xff] }
 0x305   : > { %4754 = vmatmul.msk.f32.gmra.mxu3 %vm297_vm1, %v4704_v33 }
 0x306   : > { %4852 = vmatmul.msk.f32.gmra.mxu0 %vm297_vm1, %v4802_v22  ;;  %v3792_v17 = vadd.f32 %v5957_v24, %v3740_v47 }
 0x307   : > { %v2817_v13 = vpop.f32.mrf.mxu2 }
 0x308   : > { %v3840_v46 = vadd.f32 %v4915_v14, %v3792_v17  ;;  %v2925_v12 = vadd.f32 %v2817_v13, %v2517_v6  ;;  %v3225_v10 = vpop.f32.mrf.mxu3  ;;  %v2412_v56 = vpop.f32.mrf.mxu1  ;;  %v4609_v6 = vld [vmem:[%s5038_s29 + $0x158] sm:$0xff] }
 0x309   : > { %v2518_v61 = vadd.f32 %v2412_v56, %v5663_v35  ;;  %v4707_v17 = vld [vmem:[%s5038_s29 + $0x159] sm:$0xff] }
 0x30a   : > { %3888 = vst.msk [vmem:[%s5971_s20 + $0x88] sm:$0xff] %vm297_vm1, %v3840_v46  ;;  %v3333_v15 = vadd.f32 %v3225_v10, %v2925_v12  ;;  %v4805_v14 = vld [vmem:[%s5038_s29 + $0x15a] sm:$0xff] }
 0x30b   : > { %v3636_v44 = vpop.f32.mrf.mxu0  ;;  %4559 = vmatmul.msk.f32.gmra.mxu1 %vm297_vm1, %v4800_v4  ;;  %v4918_v56 = vld [vmem:[%s5038_s29 + $0xb9] sm:$0xff] }
 0x30c   : > { %v3741_v25 = vadd.f32 %v3633_v49, %v3333_v15  ;;  %4657 = vmatmul.msk.f32.gmra.mxu2 %vm297_vm1, %v4607_v19 }
 0x30d   : > { %4755 = vmatmul.msk.f32.gmra.mxu3 %vm297_vm1, %v4705_v37 }
 0x30e   : > { %4853 = vmatmul.msk.f32.gmra.mxu0 %vm297_vm1, %v4803_v51  ;;  %v3793_v39 = vadd.f32 %v5957_v24, %v3741_v25  ;;  %v4610_v25 = vld [vmem:[%s5038_s29 + $0x160] sm:$0xff] }
 0x30f   : > { %v2820_v0 = vpop.f32.mrf.mxu2 }
 0x310   : > { %v3841_v63 = vadd.f32 %v4916_v54, %v3793_v39  ;;  %v2926_v1 = vadd.f32 %v2820_v0, %v2518_v61  ;;  %v3228_v27 = vpop.f32.mrf.mxu3  ;;  %v2415_v55 = vpop.f32.mrf.mxu1  ;;  %v4708_v61 = vld [vmem:[%s5038_s29 + $0x161] sm:$0xff] }
 0x311   : > { %v2519_v35 = vadd.f32 %v2415_v55, %v5673_v23  ;;  %v4806_v0 = vld [vmem:[%s5038_s29 + $0x162] sm:$0xff] }
 0x312   : > { %3889 = vst.msk [vmem:[%s5971_s20 + $0x90] sm:$0xff] %vm297_vm1, %v3841_v63  ;;  %v3334_v4 = vadd.f32 %v3228_v27, %v2926_v1  ;;  %v4919_v27 = vld [vmem:[%s5038_s29 + $0xc1] sm:$0xff] }
 0x313   : > { %v3639_v11 = vpop.f32.mrf.mxu0  ;;  %4560 = vmatmul.msk.f32.gmra.mxu1 %vm297_vm1, %v4801_v18 }
 0x314   : > { %v3742_v31 = vadd.f32 %v3636_v44, %v3334_v4  ;;  %4658 = vmatmul.msk.f32.gmra.mxu2 %vm297_vm1, %v4608_v2 }
 0x315   : > { %4756 = vmatmul.msk.f32.gmra.mxu3 %vm297_vm1, %v4706_v5 }
 0x316   : > { %4854 = vmatmul.msk.f32.gmra.mxu0 %vm297_vm1, %v4804_v9  ;;  %v3794_v50 = vadd.f32 %v5957_v24, %v3742_v31  ;;  %v4709_v31 = vld [vmem:[%s5038_s29 + $0x169] sm:$0xff] }
 0x317   : > { %v2823_v53 = vpop.f32.mrf.mxu2 }
 0x318   : > { %v3842_v32 = vadd.f32 %v4917_v43, %v3794_v50  ;;  %v2927_v33 = vadd.f32 %v2823_v53, %v2519_v35  ;;  %v3231_v49 = vpop.f32.mrf.mxu3  ;;  %v2418_v47 = vpop.f32.mrf.mxu1  ;;  %v4807_v50 = vld [vmem:[%s5038_s29 + $0x16a] sm:$0xff] }
 0x319   : > { %v2520_v23 = vadd.f32 %v2418_v47, %v5683_v20 }
 0x31a   : > { %3890 = vst.msk [vmem:[%s5971_s20 + $0x98] sm:$0xff] %vm297_vm1, %v3842_v32  ;;  %v3335_v18 = vadd.f32 %v3231_v49, %v2927_v33  ;;  %v4920_v33 = vld [vmem:[%s5038_s29 + $0xc9] sm:$0xff] }
 0x31b   : > { %v3642_v13 = vpop.f32.mrf.mxu0  ;;  %4561 = vmatmul.msk.f32.gmra.mxu1 %vm297_vm1, %v4802_v22 }
 0x31c   : > { %v3743_v46 = vadd.f32 %v3639_v11, %v3335_v18  ;;  %4659 = vmatmul.msk.f32.gmra.mxu2 %vm297_vm1, %v4609_v6  ;;  %v4611_v11 = vld [vmem:[%s5038_s29 + $0x168] sm:$0xff] }
 0x31d   : > { %4757 = vmatmul.msk.f32.gmra.mxu3 %vm297_vm1, %v4707_v17  ;;  %v4612_v17 = vld [vmem:[%s5038_s29 + $0x170] sm:$0xff] }
 0x31e   : > { %4855 = vmatmul.msk.f32.gmra.mxu0 %vm297_vm1, %v4805_v14  ;;  %v3795_v12 = vadd.f32 %v5957_v24, %v3743_v46 }
 0x31f   : > { %v2826_v10 = vpop.f32.mrf.mxu2 }
 0x320   : > { %v3843_v19 = vadd.f32 %v4918_v56, %v3795_v12  ;;  %v2928_v15 = vadd.f32 %v2826_v10, %v2520_v23  ;;  %v3234_v37 = vpop.f32.mrf.mxu3  ;;  %v2421_v44 = vpop.f32.mrf.mxu1  ;;  %v4808_v23 = vld [vmem:[%s5038_s29 + $0x172] sm:$0xff] }
 0x321   : > { %v2521_v20 = vadd.f32 %v2421_v44, %v5693_v7 }
 0x322   : > { %3891 = vst.msk [vmem:[%s5971_s20 + $0xa0] sm:$0xff] %vm297_vm1, %v3843_v19  ;;  %v3336_v22 = vadd.f32 %v3234_v37, %v2928_v15  ;;  %v4921_v19 = vld [vmem:[%s5038_s29 + $0xd1] sm:$0xff] }
 0x323   : > { %v3645_v39 = vpop.f32.mrf.mxu0  ;;  %4562 = vmatmul.msk.f32.gmra.mxu1 %vm297_vm1, %v4803_v51 }
 0x324   : > { %v3744_v54 = vadd.f32 %v3642_v13, %v3336_v22  ;;  %4660 = vmatmul.msk.f32.gmra.mxu2 %vm297_vm1, %v4610_v25  ;;  %v4710_v13 = vld [vmem:[%s5038_s29 + $0x171] sm:$0xff] }
 0x325   : > { %4758 = vmatmul.msk.f32.gmra.mxu3 %vm297_vm1, %v4708_v61  ;;  %v4613_v22 = vld [vmem:[%s5038_s29 + $0x178] sm:$0xff] }
 0x326   : > { %4856 = vmatmul.msk.f32.gmra.mxu0 %vm297_vm1, %v4806_v0  ;;  %v3796_v63 = vadd.f32 %v5957_v24, %v3744_v54  ;;  %v4711_v61 = vld [vmem:[%s5038_s29 + $0x179] sm:$0xff] }
 0x327   : > { %v2829_v1 = vpop.f32.mrf.mxu2  ;;  %v4809_v54 = vld [vmem:[%s5038_s29 + $0x17a] sm:$0xff] }
 0x328   : > { %v3844_v55 = vadd.f32 %v4919_v27, %v3796_v63  ;;  %v2929_v2 = vadd.f32 %v2829_v1, %v2521_v20  ;;  %v3237_v4 = vpop.f32.mrf.mxu3  ;;  %v2424_v5 = vpop.f32.mrf.mxu1  ;;  %v4922_v27 = vld [vmem:[%s5038_s29 + $0xd9] sm:$0xff] }
 0x329   : > { %v2522_v7 = vadd.f32 %v2424_v5, %v5703_v26 }
 0x32a   : > { %3892 = vst.msk [vmem:[%s5971_s20 + $0xa8] sm:$0xff] %vm297_vm1, %v3844_v55  ;;  %v3337_v51 = vadd.f32 %v3237_v4, %v2929_v2 }
 0x32b   : > { %v3648_v35 = vpop.f32.mrf.mxu0  ;;  %4563 = vmatmul.msk.f32.gmra.mxu1 %vm297_vm1, %v4804_v9 }
 0x32c   : > { %v3745_v53 = vadd.f32 %v3645_v39, %v3337_v51  ;;  %4661 = vmatmul.msk.f32.gmra.mxu2 %vm297_vm1, %v4611_v11  ;;  %v4614_v11 = vld [vmem:[%s5038_s29 + $0x180] sm:$0xff] }
 0x32d   : > { %4759 = vmatmul.msk.f32.gmra.mxu3 %vm297_vm1, %v4709_v31  ;;  %v4712_v51 = vld [vmem:[%s5038_s29 + $0x181] sm:$0xff] }
 0x32e   : > { %4857 = vmatmul.msk.f32.gmra.mxu0 %vm297_vm1, %v4807_v50  ;;  %v3797_v43 = vadd.f32 %v5957_v24, %v3745_v53 }
 0x32f   : > { %v2832_v32 = vpop.f32.mrf.mxu2 }
 0x330   : > { %v3845_v49 = vadd.f32 %v4920_v33, %v3797_v43  ;;  %v2930_v47 = vadd.f32 %v2832_v32, %v2522_v7  ;;  %v3240_v6 = vpop.f32.mrf.mxu3  ;;  %v2427_v18 = vpop.f32.mrf.mxu1  ;;  %v4923_v32 = vld [vmem:[%s5038_s29 + $0xe1] sm:$0xff] }
 0x331   : > { %v2523_v26 = vadd.f32 %v2427_v18, %v5713_v30  ;;  %v4615_v18 = vld [vmem:[%s5038_s29 + $0x188] sm:$0xff] }
 0x332   : > { %3893 = vst.msk [vmem:[%s5971_s20 + $0xb0] sm:$0xff] %vm297_vm1, %v3845_v49  ;;  %v3338_v9 = vadd.f32 %v3240_v6, %v2930_v47 }
 0x333   : > { %v3651_v46 = vpop.f32.mrf.mxu0  ;;  %4564 = vmatmul.msk.f32.gmra.mxu1 %vm297_vm1, %v4805_v14 }
 0x334   : > { %v3746_v12 = vadd.f32 %v3648_v35, %v3338_v9  ;;  %4662 = vmatmul.msk.f32.gmra.mxu2 %vm297_vm1, %v4612_v17  ;;  %v4810_v35 = vld [vmem:[%s5038_s29 + $0x182] sm:$0xff] }
 0x335   : > { %4760 = vmatmul.msk.f32.gmra.mxu3 %vm297_vm1, %v4710_v13  ;;  %v4713_v17 = vld [vmem:[%s5038_s29 + $0x189] sm:$0xff] }
 0x336   : > { %4858 = vmatmul.msk.f32.gmra.mxu0 %vm297_vm1, %v4808_v23  ;;  %v3798_v10 = vadd.f32 %v5957_v24, %v3746_v12  ;;  %v4811_v13 = vld [vmem:[%s5038_s29 + $0x18a] sm:$0xff] }
 0x337   : > { %v2835_v56 = vpop.f32.mrf.mxu2 }
 0x338   : > { %v3846_v15 = vadd.f32 %v4921_v19, %v3798_v10  ;;  %v2931_v37 = vadd.f32 %v2835_v56, %v2523_v26  ;;  %v3243_v44 = vpop.f32.mrf.mxu3  ;;  %v2430_v25 = vpop.f32.mrf.mxu1  ;;  %v4924_v10 = vld [vmem:[%s5038_s29 + $0xe9] sm:$0xff] }
 0x339   : > { %v2524_v30 = vadd.f32 %v2430_v25, %v5723_v34  ;;  %v4714_v25 = vld [vmem:[%s5038_s29 + $0x191] sm:$0xff] }
 0x33a   : > { %3894 = vst.msk [vmem:[%s5971_s20 + $0xb8] sm:$0xff] %vm297_vm1, %v3846_v15  ;;  %v3339_v14 = vadd.f32 %v3243_v44, %v2931_v37  ;;  %v4616_v44 = vld [vmem:[%s5038_s29 + $0x190] sm:$0xff] }
 0x33b   : > { %v3654_v39 = vpop.f32.mrf.mxu0  ;;  %4565 = vmatmul.msk.f32.gmra.mxu1 %vm297_vm1, %v4806_v0 }
 0x33c   : > { %v3747_v20 = vadd.f32 %v3651_v46, %v3339_v14  ;;  %4663 = vmatmul.msk.f32.gmra.mxu2 %vm297_vm1, %v4613_v22  ;;  %v4812_v14 = vld [vmem:[%s5038_s29 + $0x192] sm:$0xff] }
 0x33d   : > { %4761 = vmatmul.msk.f32.gmra.mxu3 %vm297_vm1, %v4711_v61 }
 0x33e   : > { %4859 = vmatmul.msk.f32.gmra.mxu0 %vm297_vm1, %v4809_v54  ;;  %v3799_v63 = vadd.f32 %v5957_v24, %v3747_v20 }
 0x33f   : > { %v2838_v1 = vpop.f32.mrf.mxu2 }
 0x340   : > { %v3847_v55 = vadd.f32 %v4922_v27, %v3799_v63  ;;  %v2932_v2 = vadd.f32 %v2838_v1, %v2524_v30  ;;  %v3246_v4 = vpop.f32.mrf.mxu3  ;;  %v2433_v5 = vpop.f32.mrf.mxu1  ;;  %v4925_v30 = vld [vmem:[%s5038_s29 + $0xf1] sm:$0xff] }
 0x341   : > { %v2525_v34 = vadd.f32 %v2433_v5, %v5733_v38 }
 0x342   : > { %3895 = vst.msk [vmem:[%s5971_s20 + $0xc0] sm:$0xff] %vm297_vm1, %v3847_v55  ;;  %v3340_v0 = vadd.f32 %v3246_v4, %v2932_v2  ;;  %v4617_v2 = vld [vmem:[%s5038_s29 + $0x198] sm:$0xff] }
 0x343   : > { %v3657_v31 = vpop.f32.mrf.mxu0  ;;  %4566 = vmatmul.msk.f32.gmra.mxu1 %vm297_vm1, %v4807_v50  ;;  %v4715_v4 = vld [vmem:[%s5038_s29 + $0x199] sm:$0xff] }
 0x344   : > { %v3748_v53 = vadd.f32 %v3654_v39, %v3340_v0  ;;  %4664 = vmatmul.msk.f32.gmra.mxu2 %vm297_vm1, %v4614_v11  ;;  %v4813_v11 = vld [vmem:[%s5038_s29 + $0x19a] sm:$0xff] }
 0x345   : > { %4762 = vmatmul.msk.f32.gmra.mxu3 %vm297_vm1, %v4712_v51 }
 0x346   : > { %4860 = vmatmul.msk.f32.gmra.mxu0 %vm297_vm1, %v4810_v35  ;;  %v3800_v7 = vadd.f32 %v5957_v24, %v3748_v53  ;;  %v4927_v53 = vld [vmem:[%s5038_s29 + $0xf9] sm:$0xff] }
 0x347   : > { %v2841_v43 = vpop.f32.mrf.mxu2 }
 0x348   : > { %v3848_v33 = vadd.f32 %v4923_v32, %v3800_v7  ;;  %v2933_v49 = vadd.f32 %v2841_v43, %v2525_v34  ;;  %v3249_v47 = vpop.f32.mrf.mxu3  ;;  %v2436_v6 = vpop.f32.mrf.mxu1  ;;  %v4618_v32 = vld [vmem:[%s5038_s29 + $0x1a0] sm:$0xff] }
 0x349   : > { %v2526_v38 = vadd.f32 %v2436_v6, %v5743_v28 }
 0x34a   : > { %3896 = vst.msk [vmem:[%s5971_s20 + $0xc8] sm:$0xff] %vm297_vm1, %v3848_v33  ;;  %v3341_v50 = vadd.f32 %v3249_v47, %v2933_v49  ;;  %v4716_v49 = vld [vmem:[%s5038_s29 + $0x1a1] sm:$0xff] }
 0x34b   : > { %v3660_v9 = vpop.f32.mrf.mxu0  ;;  %4567 = vmatmul.msk.f32.gmra.mxu1 %vm297_vm1, %v4808_v23  ;;  %v4814_v47 = vld [vmem:[%s5038_s29 + $0x1a2] sm:$0xff] }
 0x34c   : > { %v3749_v46 = vadd.f32 %v3657_v31, %v3341_v50  ;;  %4665 = vmatmul.msk.f32.gmra.mxu2 %vm297_vm1, %v4615_v18 }
 0x34d   : > { %4763 = vmatmul.msk.f32.gmra.mxu3 %vm297_vm1, %v4713_v17 }
 0x34e   : > { %4861 = vmatmul.msk.f32.gmra.mxu0 %vm297_vm1, %v4811_v13  ;;  %v3801_v12 = vadd.f32 %v5957_v24, %v3749_v46 }
 0x34f   : > { %v2844_v26 = vpop.f32.mrf.mxu2 }
 0x350   : > { %v3849_v56 = vadd.f32 %v4924_v10, %v3801_v12  ;;  %v2934_v19 = vadd.f32 %v2844_v26, %v2526_v38  ;;  %v3252_v15 = vpop.f32.mrf.mxu3  ;;  %v2439_v37 = vpop.f32.mrf.mxu1  ;;  %v4619_v10 = vld [vmem:[%s5038_s29 + $0x1a8] sm:$0xff] }
 0x351   : > { %v2527_v28 = vadd.f32 %v2439_v37, %v5753_v3 }
 0x352   : > { %3897 = vst.msk [vmem:[%s5971_s20 + $0xd0] sm:$0xff] %vm297_vm1, %v3849_v56  ;;  %v3342_v23 = vadd.f32 %v3252_v15, %v2934_v19  ;;  %v4717_v56 = vld [vmem:[%s5038_s29 + $0x1a9] sm:$0xff] }
 0x353   : > { %v3663_v22 = vpop.f32.mrf.mxu0  ;;  %4568 = vmatmul.msk.f32.gmra.mxu1 %vm297_vm1, %v4809_v54  ;;  %v4815_v15 = vld [vmem:[%s5038_s29 + $0x1aa] sm:$0xff] }
 0x354   : > { %v3750_v61 = vadd.f32 %v3660_v9, %v3342_v23  ;;  %4666 = vmatmul.msk.f32.gmra.mxu2 %vm297_vm1, %v4616_v44  ;;  %v4928_v9 = vld [vmem:[%s5038_s29 + $0x101] sm:$0xff] }
 0x355   : > { %4764 = vmatmul.msk.f32.gmra.mxu3 %vm297_vm1, %v4714_v25  ;;  %v4929_v25 = vld [vmem:[%s5038_s29 + $0x109] sm:$0xff] }
 0x356   : > { %4862 = vmatmul.msk.f32.gmra.mxu0 %vm297_vm1, %v4812_v14  ;;  %v3802_v39 = vadd.f32 %v5957_v24, %v3750_v61  ;;  %v6311_v24 = vld [vmem:[%s6436_s2] ss:$0 sm:$0xff] }
 0x357   : > { %v2847_v20 = vpop.f32.mrf.mxu2 }
 0x358   : > { %v3850_v63 = vadd.f32 %v4925_v30, %v3802_v39  ;;  %v2935_v1 = vadd.f32 %v2847_v20, %v2527_v28  ;;  %v3255_v27 = vpop.f32.mrf.mxu3  ;;  %v2442_v55 = vpop.f32.mrf.mxu1 }
 0x359   : > { %v2528_v3 = vadd.f32 %v2442_v55, %v5763_v29 }
 0x35a   : > { %3898 = vst.msk [vmem:[%s5971_s20 + $0xd8] sm:$0xff] %vm297_vm1, %v3850_v63  ;;  %v3343_v54 = vadd.f32 %v3255_v27, %v2935_v1  ;;  %v4930_v27 = vld [vmem:[%s5038_s29 + $0x111] sm:$0xff] }
 0x35b   : > { %v3666_v5 = vpop.f32.mrf.mxu0  ;;  %4569 = vmatmul.msk.f32.gmra.mxu1 %vm297_vm1, %v4810_v35 }
 0x35c   : > { %v3751_v0 = vadd.f32 %v3663_v22, %v3343_v54  ;;  %4667 = vmatmul.msk.f32.gmra.mxu2 %vm297_vm1, %v4617_v2 }
 0x35d   : > { %4765 = vmatmul.msk.f32.gmra.mxu3 %vm297_vm1, %v4715_v4 }
 0x35e   : > { %4863 = vmatmul.msk.f32.gmra.mxu0 %vm297_vm1, %v4813_v11  ;;  %v3803_v51 = vadd.f32 %v6311_v24, %v3751_v0 }
 0x35f   : > { %v2850_v31 = vpop.f32.mrf.mxu2 }
 0x360   : > { %v3851_v35 = vadd.f32 %v4927_v53, %v3803_v51  ;;  %v2936_v34 = vadd.f32 %v2850_v31, %v2528_v3  ;;  %v3258_v7 = vpop.f32.mrf.mxu3  ;;  %v2445_v43 = vpop.f32.mrf.mxu1  ;;  %v4931_v31 = vld [vmem:[%s5038_s29 + $0x119] sm:$0xff] }
 0x361   : > { %v2529_v18 = vadd.f32 %v2445_v43, %v5773_v21 }
 0x362   : > { %3899 = vst.msk [vmem:[%s5971_s20 + $0xe0] sm:$0xff] %vm297_vm1, %v3851_v35  ;;  %v3344_v33 = vadd.f32 %v3258_v7, %v2936_v34 }
 0x363   : > { %v3669_v29 = vpop.f32.mrf.mxu0  ;;  %4570 = vmatmul.msk.f32.gmra.mxu1 %vm297_vm1, %v4811_v13 }
 0x364   : > { %v3752_v6 = vadd.f32 %v3666_v5, %v3344_v33  ;;  %4668 = vmatmul.msk.f32.gmra.mxu2 %vm297_vm1, %v4618_v32 }
 0x365   : > { %4766 = vmatmul.msk.f32.gmra.mxu3 %vm297_vm1, %v4716_v49 }
 0x366   : > { %4864 = vmatmul.msk.f32.gmra.mxu0 %vm297_vm1, %v4814_v47  ;;  %v3804_v50 = vadd.f32 %v6311_v24, %v3752_v6  ;;  %v4932_v47 = vld [vmem:[%s5038_s29 + $0x121] sm:$0xff] }
 0x367   : > { %v2853_v17 = vpop.f32.mrf.mxu2 }
 0x368   : > { %v3852_v46 = vadd.f32 %v4928_v9, %v3804_v50  ;;  %v2937_v38 = vadd.f32 %v2853_v17, %v2529_v18  ;;  %v3261_v12 = vpop.f32.mrf.mxu3  ;;  %v2448_v26 = vpop.f32.mrf.mxu1 }
 0x369   : > { %v2530_v21 = vadd.f32 %v2448_v26, %v5784_v45 }
 0x36a   : > { %3900 = vst.msk [vmem:[%s5971_s20 + $0xe8] sm:$0xff] %vm297_vm1, %v3852_v46  ;;  %v3345_v13 = vadd.f32 %v3261_v12, %v2937_v38 }
 0x36b   : > { %v3672_v19 = vpop.f32.mrf.mxu0  ;;  %4571 = vmatmul.msk.f32.gmra.mxu1 %vm297_vm1, %v4812_v14 }
 0x36c   : > { %v3753_v37 = vadd.f32 %v3669_v29, %v3345_v13  ;;  %4669 = vmatmul.msk.f32.gmra.mxu2 %vm297_vm1, %v4619_v10  ;;  %v4933_v10 = vld [vmem:[%s5038_s29 + $0x129] sm:$0xff] }
 0x36d   : > { %4767 = vmatmul.msk.f32.gmra.mxu3 %vm297_vm1, %v4717_v56 }
 0x36e   : > { %4865 = vmatmul.msk.f32.gmra.mxu0 %vm297_vm1, %v4815_v15  ;;  %v3805_v44 = vadd.f32 %v6311_v24, %v3753_v37 }
 0x36f   : > { %v2856_v23 = vpop.f32.mrf.mxu2 }
 0x370   : > { %v3853_v22 = vadd.f32 %v4929_v25, %v3805_v44  ;;  %v2938_v61 = vadd.f32 %v2856_v23, %v2530_v21  ;;  %v3264_v28 = vpop.f32.mrf.mxu3  ;;  %v2451_v39 = vpop.f32.mrf.mxu1 }
 0x371   : > { %v2531_v63 = vadd.f32 %v2451_v39, %v5795_v36 }
 0x372   : > { %3901 = vst.msk [vmem:[%s5971_s20 + $0xf0] sm:$0xff] %vm297_vm1, %v3853_v22  ;;  %v3346_v14 = vadd.f32 %v3264_v28, %v2938_v61  ;;  %v4934_v22 = vld [vmem:[%s5038_s29 + $0x131] sm:$0xff] }
 0x373   : > { %v3675_v20 = vpop.f32.mrf.mxu0 }
 0x374   : > { %v3754_v30 = vadd.f32 %v3672_v19, %v3346_v14 }
 0x376   : > { %v3806_v1 = vadd.f32 %v6311_v24, %v3754_v30 }
 0x377   : > { %v2859_v45 = vpop.f32.mrf.mxu2 }
 0x378   : > { %v3854_v55 = vadd.f32 %v4930_v27, %v3806_v1  ;;  %v2939_v2 = vadd.f32 %v2859_v45, %v2531_v63  ;;  %v3267_v54 = vpop.f32.mrf.mxu3  ;;  %v2454_v4 = vpop.f32.mrf.mxu1  ;;  %v4935_v27 = vld [vmem:[%s5038_s29 + $0x139] sm:$0xff] }
 0x379   : > { %v2532_v3 = vadd.f32 %v2454_v4, %v5806_v58 }
 0x37a   : > { %3902 = vst.msk [vmem:[%s5971_s20 + $0xf8] sm:$0xff] %vm297_vm1, %v3854_v55  ;;  %v3347_v5 = vadd.f32 %v3267_v54, %v2939_v2 }
 0x37b   : > { %v3678_v11 = vpop.f32.mrf.mxu0 }
 0x37c   : > { %v3755_v0 = vadd.f32 %v3675_v20, %v3347_v5 }
 0x37e   : > { %v3807_v51 = vadd.f32 %v6311_v24, %v3755_v0 }
 0x37f   : > { %v2862_v36 = vpop.f32.mrf.mxu2 }
 0x380   : > { %v3855_v53 = vadd.f32 %v4931_v31, %v3807_v51  ;;  %v2940_v35 = vadd.f32 %v2862_v36, %v2532_v3  ;;  %v3270_v34 = vpop.f32.mrf.mxu3  ;;  %v2457_v7 = vpop.f32.mrf.mxu1  ;;  %v4936_v36 = vld [vmem:[%s5038_s29 + $0x141] sm:$0xff] }
 0x381   : > { %v2533_v49 = vadd.f32 %v2457_v7, %v5816_v8 }
 0x382   : > { %3903 = vst.msk [vmem:[%s5971_s20 + $0x100] sm:$0xff] %vm297_vm1, %v3855_v53  ;;  %v3348_v43 = vadd.f32 %v3270_v34, %v2940_v35 }
 0x383   : > { %v3681_v32 = vpop.f32.mrf.mxu0 }
 0x384   : > { %v3756_v33 = vadd.f32 %v3678_v11, %v3348_v43 }
 0x386   : > { %v3808_v29 = vadd.f32 %v6311_v24, %v3756_v33 }
 0x387   : > { %v2865_v58 = vpop.f32.mrf.mxu2 }
 0x388   : > { %v3856_v6 = vadd.f32 %v4932_v47, %v3808_v29  ;;  %v2941_v18 = vadd.f32 %v2865_v58, %v2533_v49  ;;  %v3273_v50 = vpop.f32.mrf.mxu3  ;;  %v2460_v17 = vpop.f32.mrf.mxu1  ;;  %v4937_v29 = vld [vmem:[%s5038_s29 + $0x149] sm:$0xff] }
 0x389   : > { %v2534_v12 = vadd.f32 %v2460_v17, %v5826_v48 }
 0x38a   : > { %3904 = vst.msk [vmem:[%s5971_s20 + $0x108] sm:$0xff] %vm297_vm1, %v3856_v6  ;;  %v3349_v9 = vadd.f32 %v3273_v50, %v2941_v18 }
 0x38b   : > { %v3684_v46 = vpop.f32.mrf.mxu0 }
 0x38c   : > { %v3757_v38 = vadd.f32 %v3681_v32, %v3349_v9 }
 0x38e   : > { %v3809_v26 = vadd.f32 %v6311_v24, %v3757_v38 }
 0x38f   : > { %v2868_v8 = vpop.f32.mrf.mxu2 }
 0x390   : > { %v3857_v13 = vadd.f32 %v4933_v10, %v3809_v26  ;;  %v2942_v56 = vadd.f32 %v2868_v8, %v2534_v12  ;;  %v3276_v19 = vpop.f32.mrf.mxu3  ;;  %v2463_v15 = vpop.f32.mrf.mxu1  ;;  %v4938_v12 = vld [vmem:[%s5038_s29 + $0x151] sm:$0xff] }
 0x391   : > { %v2535_v23 = vadd.f32 %v2463_v15, %v5836_v60 }
 0x392   : > { %3905 = vst.msk [vmem:[%s5971_s20 + $0x110] sm:$0xff] %vm297_vm1, %v3857_v13  ;;  %v3350_v37 = vadd.f32 %v3276_v19, %v2942_v56 }
 0x393   : > { %v3687_v21 = vpop.f32.mrf.mxu0 }
 0x394   : > { %v3758_v44 = vadd.f32 %v3684_v46, %v3350_v37 }
 0x396   : > { %v3810_v25 = vadd.f32 %v6311_v24, %v3758_v44  ;;  %v4939_v44 = vld [vmem:[%s5038_s29 + $0x159] sm:$0xff] }
 0x397   : > { %v2871_v48 = vpop.f32.mrf.mxu2 }
 0x398   : > { %v3858_v61 = vadd.f32 %v4934_v22, %v3810_v25  ;;  %v2943_v28 = vadd.f32 %v2871_v48, %v2535_v23  ;;  %v3279_v39 = vpop.f32.mrf.mxu3  ;;  %v2466_v14 = vpop.f32.mrf.mxu1 }
 0x399   : > { %v2536_v1 = vadd.f32 %v2466_v14, %v5846_v41 }
 0x39a   : > { %3906 = vst.msk [vmem:[%s5971_s20 + $0x118] sm:$0xff] %vm297_vm1, %v3858_v61  ;;  %v3351_v20 = vadd.f32 %v3279_v39, %v2943_v28 }
 0x39b   : > { %v3690_v30 = vpop.f32.mrf.mxu0 }
 0x39c   : > { %v3759_v63 = vadd.f32 %v3687_v21, %v3351_v20 }
 0x39e   : > { %v3811_v45 = vadd.f32 %v6311_v24, %v3759_v63 }
 0x39f   : > { %v2874_v60 = vpop.f32.mrf.mxu2 }
 0x3a0   : > { %v3859_v55 = vadd.f32 %v4935_v27, %v3811_v45  ;;  %v2944_v2 = vadd.f32 %v2874_v60, %v2536_v1  ;;  %v3282_v54 = vpop.f32.mrf.mxu3  ;;  %v2469_v4 = vpop.f32.mrf.mxu1 }
 0x3a1   : > { %v2537_v3 = vadd.f32 %v2469_v4, %v5856_v62 }
 0x3a2   : > { %3907 = vst.msk [vmem:[%s5971_s20 + $0x120] sm:$0xff] %vm297_vm1, %v3859_v55  ;;  %v3352_v5 = vadd.f32 %v3282_v54, %v2944_v2 }
 0x3a3   : > { %v3693_v11 = vpop.f32.mrf.mxu0 }
 0x3a4   : > { %v3760_v0 = vadd.f32 %v3690_v30, %v3352_v5  ;;  %v4940_v30 = vld [vmem:[%s5038_s29 + $0x161] sm:$0xff]  ;;  %v4941_v5 = vld [vmem:[%s5038_s29 + $0x169] sm:$0xff] }
 0x3a6   : > { %v3812_v51 = vadd.f32 %v6311_v24, %v3760_v0 }
 0x3a7   : > { %v2877_v41 = vpop.f32.mrf.mxu2 }
 0x3a8   : > { %v3860_v31 = vadd.f32 %v4936_v36, %v3812_v51  ;;  %v2945_v53 = vadd.f32 %v2877_v41, %v2537_v3  ;;  %v3285_v35 = vpop.f32.mrf.mxu3  ;;  %v2472_v34 = vpop.f32.mrf.mxu1 }
 0x3a9   : > { %v2538_v33 = vadd.f32 %v2472_v34, %v5866_v57 }
 0x3aa   : > { %3908 = vst.msk [vmem:[%s5971_s20 + $0x128] sm:$0xff] %vm297_vm1, %v3860_v31  ;;  %v3353_v7 = vadd.f32 %v3285_v35, %v2945_v53  ;;  %v6475_v53 = vld [vmem:[#allocation9_spill] sm:$0xff] }
 0x3ab   : > { %v3696_v43 = vpop.f32.mrf.mxu0 }
 0x3ac   : > { %v3761_v32 = vadd.f32 %v3693_v11, %v3353_v7  ;;  %v4942_v7 = vld [vmem:[%s5038_s29 + $0x171] sm:$0xff] }
 0x3ae   : > { %v3813_v49 = vadd.f32 %v6311_v24, %v3761_v32 }
 0x3af   : > { %v2880_v62 = vpop.f32.mrf.mxu2 }
 0x3b0   : > { %v3861_v58 = vadd.f32 %v4937_v29, %v3813_v49  ;;  %v2946_v47 = vadd.f32 %v2880_v62, %v2538_v33  ;;  %v3288_v6 = vpop.f32.mrf.mxu3  ;;  %v2475_v18 = vpop.f32.mrf.mxu1 }
 0x3b1   : > { %v2539_v46 = vadd.f32 %v2475_v18, %v5876_v52 }
 0x3b2   : > { %3909 = vst.msk [vmem:[%s5971_s20 + $0x130] sm:$0xff] %vm297_vm1, %v3861_v58  ;;  %v3354_v50 = vadd.f32 %v3288_v6, %v2946_v47  ;;  %v6476_v47 = vld [vmem:[#allocation11_spill] sm:$0xff] }
 0x3b3   : > { %v3699_v17 = vpop.f32.mrf.mxu0 }
 0x3b4   : > { %v3762_v9 = vadd.f32 %v3696_v43, %v3354_v50 }
 0x3b6   : > { %v3814_v38 = vadd.f32 %v6311_v24, %v3762_v9 }
 0x3b7   : > { %v2883_v57 = vpop.f32.mrf.mxu2 }
 0x3b8   : > { %v3862_v26 = vadd.f32 %v4938_v12, %v3814_v38  ;;  %v2947_v8 = vadd.f32 %v2883_v57, %v2539_v46  ;;  %v3291_v10 = vpop.f32.mrf.mxu3  ;;  %v2478_v13 = vpop.f32.mrf.mxu1 }
 0x3b9   : > { %v2540_v37 = vadd.f32 %v2478_v13, %v5886_v59 }
 0x3ba   : > { %3910 = vst.msk [vmem:[%s5971_s20 + $0x138] sm:$0xff] %vm297_vm1, %v3862_v26  ;;  %v3355_v56 = vadd.f32 %v3291_v10, %v2947_v8 }
 0x3bb   : > { %v3702_v19 = vpop.f32.mrf.mxu0 }
 0x3bc   : > { %v3763_v15 = vadd.f32 %v3699_v17, %v3355_v56  ;;  %v4943_v17 = vld [vmem:[%s5038_s29 + $0x179] sm:$0xff] }
 0x3be   : > { %v3815_v21 = vadd.f32 %v6311_v24, %v3763_v15 }
 0x3bf   : > { %v2886_v52 = vpop.f32.mrf.mxu2 }
 0x3c0   : > { %v3863_v23 = vadd.f32 %v4939_v44, %v3815_v21  ;;  %v2948_v25 = vadd.f32 %v2886_v52, %v2540_v37  ;;  %v3294_v48 = vpop.f32.mrf.mxu3  ;;  %v2481_v22 = vpop.f32.mrf.mxu1 }
 0x3c1   : > { %v2541_v14 = vadd.f32 %v2481_v22, %v5896_v42 }
 0x3c2   : > { %3911 = vst.msk [vmem:[%s5971_s20 + $0x140] sm:$0xff] %vm297_vm1, %v3863_v23  ;;  %v3356_v61 = vadd.f32 %v3294_v48, %v2948_v25  ;;  %v6477_v25 = vld [vmem:[#allocation13_spill] sm:$0xff] }
 0x3c3   : > { %v3705_v28 = vpop.f32.mrf.mxu0 }
 0x3c4   : > { %v3764_v39 = vadd.f32 %v3702_v19, %v3356_v61  ;;  %v4944_v19 = vld [vmem:[%s5038_s29 + $0x181] sm:$0xff]  ;;  %v4945_v61 = vld [vmem:[%s5038_s29 + $0x189] sm:$0xff] }
 0x3c6   : > { %v3816_v20 = vadd.f32 %v6311_v24, %v3764_v39 }
 0x3c7   : > { %v2889_v59 = vpop.f32.mrf.mxu2 }
 0x3c8   : > { %v3864_v63 = vadd.f32 %v4940_v30, %v3816_v20  ;;  %v2949_v1 = vadd.f32 %v2889_v59, %v2541_v14  ;;  %v3297_v45 = vpop.f32.mrf.mxu3  ;;  %v2484_v60 = vpop.f32.mrf.mxu1 }
 0x3c9   : > { %v2542_v54 = vadd.f32 %v2484_v60, %v5906_v16 }
 0x3ca   : > { %3912 = vst.msk [vmem:[%s5971_s20 + $0x148] sm:$0xff] %vm297_vm1, %v3864_v63  ;;  %v3357_v27 = vadd.f32 %v3297_v45, %v2949_v1  ;;  %v4946_v1 = vld [vmem:[%s5038_s29 + $0x191] sm:$0xff] }
 0x3cb   : > { %v3708_v55 = vpop.f32.mrf.mxu0 }
 0x3cc   : > { %v3765_v2 = vadd.f32 %v3705_v28, %v3357_v27 }
 0x3ce   : > { %v3817_v4 = vadd.f32 %v6311_v24, %v3765_v2 }
 0x3cf   : > { %v2892_v42 = vpop.f32.mrf.mxu2 }
 0x3d0   : > { %v3865_v11 = vadd.f32 %v4941_v5, %v3817_v4  ;;  %v2950_v0 = vadd.f32 %v2892_v42, %v2542_v54  ;;  %v3300_v3 = vpop.f32.mrf.mxu3  ;;  %v2487_v51 = vpop.f32.mrf.mxu1 }
 0x3d1   : > { %v2543_v35 = vadd.f32 %v2487_v51, %v6475_v53 }
 0x3d2   : > { %3913 = vst.msk [vmem:[%s5971_s20 + $0x150] sm:$0xff] %vm297_vm1, %v3865_v11  ;;  %v3358_v41 = vadd.f32 %v3300_v3, %v2950_v0 }
 0x3d3   : > { %v3711_v36 = vpop.f32.mrf.mxu0 }
 0x3d4   : > { %v3766_v31 = vadd.f32 %v3708_v55, %v3358_v41 }
 0x3d6   : > { %v3818_v34 = vadd.f32 %v6311_v24, %v3766_v31 }
 0x3d7   : > { %v2895_v16 = vpop.f32.mrf.mxu2 }
 0x3d8   : > { %v3866_v43 = vadd.f32 %v4942_v7, %v3818_v34  ;;  %v2951_v32 = vadd.f32 %v2895_v16, %v2543_v35  ;;  %v3303_v33 = vpop.f32.mrf.mxu3  ;;  %v2490_v49 = vpop.f32.mrf.mxu1 }
 0x3d9   : > { %v2544_v6 = vadd.f32 %v2490_v49, %v6476_v47 }
 0x3da   : > { %3914 = vst.msk [vmem:[%s5971_s20 + $0x158] sm:$0xff] %vm297_vm1, %v3866_v43  ;;  %v3359_v62 = vadd.f32 %v3303_v33, %v2951_v32 }
 0x3db   : > { %v3714_v58 = vpop.f32.mrf.mxu0 }
 0x3dc   : > { %v3767_v29 = vadd.f32 %v3711_v36, %v3359_v62 }
 0x3de   : > { %v3819_v18 = vadd.f32 %v6311_v24, %v3767_v29 }
 0x3df   : > { %v2898_v50 = vpop.f32.mrf.mxu2 }
 0x3e0   : > { %v3867_v9 = vadd.f32 %v4943_v17, %v3819_v18  ;;  %v2952_v46 = vadd.f32 %v2898_v50, %v2544_v6  ;;  %v3306_v38 = vpop.f32.mrf.mxu3  ;;  %v2493_v57 = vpop.f32.mrf.mxu1 }
 0x3e1   : > { %v2545_v8 = vadd.f32 %v2493_v57, %v5936_v40 }
 0x3e2   : > { %3915 = vst.msk [vmem:[%s5971_s20 + $0x160] sm:$0xff] %vm297_vm1, %v3867_v9  ;;  %v3360_v12 = vadd.f32 %v3306_v38, %v2952_v46 }
 0x3e3   : > { %v3717_v56 = vpop.f32.mrf.mxu0 }
 0x3e4   : > { %v3768_v26 = vadd.f32 %v3714_v58, %v3360_v12 }
 0x3e6   : > { %v3820_v10 = vadd.f32 %v6311_v24, %v3768_v26 }
 0x3e7   : > { %v2901_v13 = vpop.f32.mrf.mxu2 }
 0x3e8   : > { %v3868_v15 = vadd.f32 %v4944_v19, %v3820_v10  ;;  %v2953_v37 = vadd.f32 %v2901_v13, %v2545_v8  ;;  %v3309_v21 = vpop.f32.mrf.mxu3  ;;  %v2496_v44 = vpop.f32.mrf.mxu1 }
 0x3e9   : > { %v2546_v48 = vadd.f32 %v2496_v44, %v6477_v25 }
 0x3ea   : > { %3916 = vst.msk [vmem:[%s5971_s20 + $0x168] sm:$0xff] %vm297_vm1, %v3868_v15  ;;  %v3361_v52 = vadd.f32 %v3309_v21, %v2953_v37 }
 0x3eb   : > { %v3720_v20 = vpop.f32.mrf.mxu0 }
 0x3ec   : > { %v3769_v23 = vadd.f32 %v3717_v56, %v3361_v52 }
 0x3ee   : > { %v3821_v40 = vadd.f32 %v6311_v24, %v3769_v23 }
 0x3ef   : > { %v2904_v22 = vpop.f32.mrf.mxu2 }
 0x3f0   : > { %v3869_v28 = vadd.f32 %v4945_v61, %v3821_v40  ;;  %v2954_v39 = vadd.f32 %v2904_v22, %v2546_v48  ;;  %v3312_v14 = vpop.f32.mrf.mxu3 }
 0x3f2   : > { %3917 = vst.msk [vmem:[%s5971_s20 + $0x170] sm:$0xff] %vm297_vm1, %v3869_v28  ;;  %v3362_v59 = vadd.f32 %v3312_v14, %v2954_v39 }
 0x3f4   : > { %v3770_v30 = vadd.f32 %v3720_v20, %v3362_v59 }
 0x3f6   : > { %v3822_v63 = vadd.f32 %v6311_v24, %v3770_v30 }
 0x3f8   : > { %v3870_v45 = vadd.f32 %v4946_v1, %v3822_v63 }
 0x3fa   : > { %3918 = vst.msk [vmem:[%s5971_s20 + $0x178] sm:$0xff] %vm297_vm1, %v3870_v45 }
 0x3fb PF: > { %s13_s14 = sadd.s32 1, %s4969_s14   ;;  %s6478_s12 = smov %s4965_s13 }
 0x3fc   : > { %p10_p5 = scmp.ge.s32.totalorder %s13_s14, 4   ;;  %s6479_s13 = smov %s6481_s15 }
 0x3fe   :  { %12 = sbr.rel (!%p10_p5) target bundleno = 2 (0x2), region = 79 }

</bundles_post_ra>
